<compile_context>
chip_gen: v7x
topology: tpu7x:2x2x1
jax: 0.10.0
libtpu: 0.0.40
codegen_flags: <defaults>
</compile_context>

<pallas_src>
import functools
import math

import jax
import jax.numpy as jnp
from jax import lax
from jax.experimental import pallas as pl
from jax.experimental.pallas import tpu as pltpu


# ----------------------------- activations (shared by kernels & reference) -----------------------------

def _elu(y, alpha=1.0):
    # exp(min(y,0)) avoids overflow in the untaken branch of where().
    return jnp.where(y > 0, y, alpha * (jnp.exp(jnp.minimum(y, 0.0)) - 1.0))


def _apply_act(y, act):
    if act == "none":
        return y
    if act == "relu":
        return jnp.maximum(y, 0.0)
    if act == "elu":
        return _elu(y)
    if act == "elu_ielu":
        # L1 = ELU followed by ImprovedELU(z) = relu(z) + (exp(min(z,0)) - 1)
        z = _elu(y)
        return jnp.maximum(z, 0.0) + (jnp.exp(jnp.minimum(z, 0.0)) - 1.0)
    raise ValueError(f"unknown act {act}")


# ----------------------------- Pallas kernels -----------------------------

def _matmul_bias_act_kernel(x_ref, w_ref, b_ref, o_ref, *, act):
    # bf16 MXU matmul (f32 accumulate), then fused bias + activation epilogue.
    # BN scale is pre-folded into w, BN shift (and any folded depthwise-BN shift) lives in b.
    acc = jnp.dot(x_ref[...].astype(jnp.bfloat16), w_ref[...],
                  preferred_element_type=jnp.float32)
    o_ref[...] = _apply_act(acc + b_ref[...], act).astype(o_ref.dtype)


def _simam_kernel(x_ref, o_ref, *, e_lambda, inv_hw, inv_n):
    # One step over the whole tensor: x (N, HW, C); channels on lanes, spatial on sublanes.
    x = x_ref[...]                                          # (N, HW, C)
    mu = jnp.sum(x, axis=1, keepdims=True) * inv_hw         # (N, 1, C)
    d = (x - mu) * (x - mu)
    s = jnp.sum(d, axis=1, keepdims=True)                   # (N, 1, C)
    # y >= 0.5 always (d >= 0, denom > 0) so exp(-y) <= exp(-0.5): reciprocals are safe.
    y = d * pl.reciprocal(4.0 * (s * inv_n + e_lambda), approx=True) + 0.5
    sig = pl.reciprocal(1.0 + jnp.exp(-y), approx=True)
    o_ref[...] = (x * sig).astype(o_ref.dtype)


def _conv5_pool_fc_kernel(x_ref, w5_ref, b5_ref, wfc_ref, bfc_ref, o_ref, *, inv_hw):
    # Fused tail: 1x1 conv5 (BN folded) + ReLU + global average pool + FC, all in one kernel.
    h = jnp.dot(x_ref[...].astype(jnp.bfloat16), w5_ref[...],
                preferred_element_type=jnp.float32)          # (N*HW, C5)
    h = jnp.maximum(h + b5_ref[...], 0.0)
    n_b = o_ref.shape[0]
    hw = h.shape[0] // n_b
    pooled = jnp.concatenate(
        [jnp.sum(h[i * hw:(i + 1) * hw, :], axis=0, keepdims=True) for i in range(n_b)],
        axis=0) * inv_hw                                     # (N, C5)
    out = jnp.dot(pooled.astype(jnp.bfloat16), wfc_ref[...],
                  preferred_element_type=jnp.float32) + bfc_ref[...]
    o_ref[...] = out.astype(o_ref.dtype)


# Per-block byte budget: 6 MiB keeps the double-buffered working set (2x in + 2x out + weight)
# comfortably inside v7x's 32 MiB scoped VMEM (64 MiB physical) while being large enough to
# amortize the ~0.35us per-grid-step overhead on v5e/v6e.
_VMEM_BLOCK_BUDGET = 6 * 1024 * 1024


def _pick_tile_m(m, row_bytes):
    """Row tile that divides m, fits the VMEM budget, and (when m is big enough) leaves >=2
    grid steps so v7x's two TensorCores both get work."""
    cap = max(8, _VMEM_BLOCK_BUDGET // max(row_bytes, 1))
    target = min(cap, m // 2) if m >= 16 else m
    t = 1 << 14
    while t >= 8:
        if t <= target and m % t == 0:
            return t
        t //= 2
    return m  # small / odd m: one full block (legal: equals the full array dim)


# ----------------------------- kernel wrappers (pallas + matching jnp reference path) -----------------------------

def matmul_bias_act(x2, w, bias, act, use_pallas):
    m, k = x2.shape
    n = w.shape[1]
    b2 = bias.reshape(1, n)
    if not use_pallas:
        y = jnp.dot(x2.astype(jnp.bfloat16), w, preferred_element_type=jnp.float32)
        return _apply_act(y + b2, act)

    tm = _pick_tile_m(m, 4 * (k + n))
    return pl.pallas_call(
        functools.partial(_matmul_bias_act_kernel, act=act),
        out_shape=jax.ShapeDtypeStruct((m, n), jnp.float32),
        grid=(m // tm,),
        in_specs=[
            pl.BlockSpec((tm, k), lambda i: (i, 0)),
            pl.BlockSpec((k, n), lambda i: (0, 0)),
            pl.BlockSpec((1, n), lambda i: (0, 0)),
        ],
        out_specs=pl.BlockSpec((tm, n), lambda i: (i, 0)),
        compiler_params=pltpu.CompilerParams(dimension_semantics=("parallel",)),
    )(x2, w, b2)


def simam(x, use_pallas, e_lambda=1e-4):
    n, h, w, c = x.shape
    hw = h * w
    if not use_pallas:
        mu = jnp.mean(x, axis=(1, 2), keepdims=True)
        d = (x - mu) ** 2
        y = d / (4.0 * (jnp.sum(d, axis=(1, 2), keepdims=True) / (hw - 1) + e_lambda)) + 0.5
        return x * (1.0 / (1.0 + jnp.exp(-y)))

    x3 = x.reshape(n, hw, c)
    out = pl.pallas_call(
        functools.partial(_simam_kernel, e_lambda=e_lambda,
                          inv_hw=1.0 / hw, inv_n=1.0 / (hw - 1)),
        out_shape=jax.ShapeDtypeStruct((n, hw, c), x.dtype),
        grid=(1,),
        in_specs=[pl.BlockSpec((n, hw, c), lambda i: (0, 0, 0))],
        out_specs=pl.BlockSpec((n, hw, c), lambda i: (0, 0, 0)),
    )(x3)
    return out.reshape(n, h, w, c)


def conv5_pool_fc(x, w5, b5, wfc, bfc, use_pallas):
    n, h, wd, cin = x.shape
    m = n * h * wd
    c5 = w5.shape[1]
    nc = wfc.shape[1]
    x2 = x.reshape(m, cin)
    b5r = b5.reshape(1, c5)
    bfcr = bfc.reshape(1, nc)
    if not use_pallas:
        hid = jnp.maximum(
            jnp.dot(x2.astype(jnp.bfloat16), w5, preferred_element_type=jnp.float32) + b5r, 0.0)
        pooled = jnp.mean(hid.reshape(n, h * wd, c5), axis=1)
        return jnp.dot(pooled.astype(jnp.bfloat16), wfc,
                       preferred_element_type=jnp.float32) + bfcr

    return pl.pallas_call(
        functools.partial(_conv5_pool_fc_kernel, inv_hw=1.0 / (h * wd)),
        out_shape=jax.ShapeDtypeStruct((n, nc), jnp.float32),
        grid=(1,),
        in_specs=[
            pl.BlockSpec((m, cin), lambda i: (0, 0)),
            pl.BlockSpec((cin, c5), lambda i: (0, 0)),
            pl.BlockSpec((1, c5), lambda i: (0, 0)),
            pl.BlockSpec((c5, nc), lambda i: (0, 0)),
            pl.BlockSpec((1, nc), lambda i: (0, 0)),
        ],
        out_specs=pl.BlockSpec((n, nc), lambda i: (0, 0)),
    )(x2, w5, b5r, wfc, bfcr)


# ----------------------------- spatial ops left to XLA -----------------------------
# TODO(synk): overlapping-window spatial convs (3x3 stem, 5x5 depthwise) and the 3x3 maxpool stay
#             in lax (an im2col Pallas kernel would only add HBM traffic at these tiny sizes).

def conv2d_nhwc(x, w, stride, padding):
    return lax.conv_general_dilated(
        x, w, window_strides=(stride, stride),
        padding=((padding, padding), (padding, padding)),
        dimension_numbers=("NHWC", "HWIO", "NHWC"))


def depthwise_conv5x5_nhwc(x, w, stride):
    c = x.shape[-1]
    return lax.conv_general_dilated(
        x, w, window_strides=(stride, stride), padding=((2, 2), (2, 2)),
        dimension_numbers=("NHWC", "HWIO", "NHWC"), feature_group_count=c)


def maxpool_3x3_s2_p1(x):
    return lax.reduce_window(
        x, -jnp.inf, lax.max,
        window_dimensions=(1, 3, 3, 1), window_strides=(1, 2, 2, 1),
        padding=((0, 0), (1, 1), (1, 1), (0, 0)))


# ----------------------------- model building blocks -----------------------------

def pointwise_conv(x, w, b, act, use_pallas):
    n, h, wd, cin = x.shape
    cout = w.shape[1]
    y = matmul_bias_act(x.reshape(n * h * wd, cin), w, b, act, use_pallas)
    return y.reshape(n, h, wd, cout)


def conv2x2_s2_bias_act(x, p, act, use_pallas):
    # Exact rewrite of a 2x2 stride-2 conv as space-to-depth + 1x1 conv -> fused MXU matmul.
    # The relayout is left to XLA so it fuses with the producing residual add / maxpool.
    n, h, wd, c = x.shape
    ho, wo = h // 2, wd // 2
    xs = (x.reshape(n, ho, 2, wo, 2, c)
           .transpose(0, 1, 3, 2, 4, 5)
           .reshape(n, ho, wo, 4 * c))
    return pointwise_conv(xs, p["w"], p["b"], act, use_pallas)


def concat_channel_shuffle(a, b):
    # channel_shuffle(cat([a, b], C), groups=2) == interleave the channels of a and b.
    n, h, w, ca = a.shape
    return jnp.stack([a, b], axis=-1).reshape(n, h, w, 2 * ca)


def inverted_residual(x, p, use_pallas):
    # BN after each depthwise conv is folded away: scale is baked into the dw weights,
    # shift is baked into the following pointwise conv's bias (exact, eval-mode BN).
    if p["stride"] == 2:
        b1 = depthwise_conv5x5_nhwc(x, p["b1_dw_w"], stride=2)
        b1 = pointwise_conv(b1, p["b1_pw_w"], p["b1_pw_b"], "relu", use_pallas)
        b2_in = x
    else:
        bf = x.shape[-1] // 2
        b1 = x[..., :bf]
        b2_in = x[..., bf:]

    b2 = pointwise_conv(b2_in, p["b2_pw1_w"], p["b2_pw1_b"], "relu", use_pallas)
    b2 = depthwise_conv5x5_nhwc(b2, p["b2_dw_w"], stride=p["stride"])
    b2 = pointwise_conv(b2, p["b2_pw2_w"], p["b2_pw2_b"], "relu", use_pallas)
    return concat_channel_shuffle(b1, b2)


def stage_forward(x, blocks, use_pallas):
    for p in blocks:
        if p["type"] == "simam":
            x = simam(x, use_pallas)
        else:
            x = inverted_residual(x, p, use_pallas)
    return x


def shufflenetv2_forward(params, x_nchw, use_pallas=True):
    x = jnp.transpose(x_nchw, (0, 2, 3, 1))  # NCHW -> NHWC (channels on TPU lanes)

    x1 = conv2d_nhwc(x, params["conv1_w"], stride=2, padding=1)
    # Plain jnp so XLA fuses BN+ReLU into the conv epilogue (no extra HBM pass / launch).
    x1 = jnp.maximum(x1 * params["conv1_s"] + params["conv1_b"], 0.0)
    x2 = maxpool_3x3_s2_p1(x1)

    n = conv2x2_s2_bias_act(x2, params["L1"], "elu_ielu", use_pallas)   # Conv->BN->ELU->ImprovedELU
    x3 = stage_forward(x2, params["stage2"], use_pallas)
    m = n + x3

    x4 = stage_forward(m, params["stage3"], use_pallas)
    n1 = conv2x2_s2_bias_act(m, params["L2"], "elu", use_pallas)
    m1 = n1 + x4

    x5 = stage_forward(m1, params["stage4"], use_pallas)
    n2 = conv2x2_s2_bias_act(m1, params["L3"], "elu", use_pallas)
    m2 = n2 + x5

    # Fused conv5 + BN + ReLU + global-average-pool + FC tail (single Pallas call).
    return conv5_pool_fc(m2, params["conv5_w"], params["conv5_b"],
                         params["fc_w"], params["fc_b"], use_pallas)


# ----------------------------- parameter init (deterministic, BN pre-folded) -----------------------------

def init_params(key, stages_repeats, stages_out_channels, num_classes):
    it = iter(jax.random.split(key, 512))

    def nk():
        return next(it)

    def conv_w(shape, fan_in):
        return jax.random.normal(nk(), shape, jnp.float32) * math.sqrt(2.0 / fan_in)

    def bn(c):
        # eval-mode BatchNorm folded into a per-channel affine: y = x * s + b
        s = 1.0 + 0.1 * jax.random.normal(nk(), (c,), jnp.float32)
        b = 0.1 * jax.random.normal(nk(), (c,), jnp.float32)
        return s, b

    def fold_pw(cin, cout, extra_shift=None):
        # pointwise conv + BN: fold scale into the weight (stored bf16 for the MXU),
        # optionally fold a preceding depthwise-BN shift through the conv into the bias.
        w_raw = conv_w((cin, cout), cin)
        s, b = bn(cout)
        w_f = w_raw * s[None, :]
        bias = b if extra_shift is None else b + extra_shift @ w_f
        return w_f.astype(jnp.bfloat16), bias

    p = {}
    c0 = stages_out_channels[0]
    p["conv1_w"] = conv_w((3, 3, 3, c0), 27)
    p["conv1_s"], p["conv1_b"] = bn(c0)

    in_c = c0
    for name, repeats, out_c in zip(["stage2", "stage3", "stage4"],
                                    stages_repeats, stages_out_channels[1:4]):
        bf_c = out_c // 2
        blocks = []

        # stride-2 block
        blk = {"type": "ir", "stride": 2}
        dw_w = conv_w((5, 5, 1, in_c), 25)
        s_dw, b_dw = bn(in_c)
        blk["b1_dw_w"] = dw_w * s_dw                      # BN scale folded into dw weights
        blk["b1_pw_w"], blk["b1_pw_b"] = fold_pw(in_c, bf_c, extra_shift=b_dw)

        blk["b2_pw1_w"], blk["b2_pw1_b"] = fold_pw(in_c, bf_c)
        dw2_w = conv_w((5, 5, 1, bf_c), 25)
        s_dw2, b_dw2 = bn(bf_c)
        blk["b2_dw_w"] = dw2_w * s_dw2
        blk["b2_pw2_w"], blk["b2_pw2_b"] = fold_pw(bf_c, bf_c, extra_shift=b_dw2)
        blocks.append(blk)

        # stride-1 blocks (+ SimAM after each, per the spec's always-true condition)
        for _ in range(repeats - 1):
            blk = {"type": "ir", "stride": 1}
            blk["b2_pw1_w"], blk["b2_pw1_b"] = fold_pw(bf_c, bf_c)
            dw2_w = conv_w((5, 5, 1, bf_c), 25)
            s_dw2, b_dw2 = bn(bf_c)
            blk["b2_dw_w"] = dw2_w * s_dw2
            blk["b2_pw2_w"], blk["b2_pw2_b"] = fold_pw(bf_c, bf_c, extra_shift=b_dw2)
            blocks.append(blk)
            blocks.append({"type": "simam"})
        p[name] = blocks
        in_c = out_c

    # L1/L2/L3: 2x2 stride-2 convs stored directly as (4*in_c, out_c) matmul weights, BN folded.
    for lname, lin, lout in [("L1", stages_out_channels[0], stages_out_channels[1]),
                             ("L2", stages_out_channels[1], stages_out_channels[2]),
                             ("L3", stages_out_channels[2], stages_out_channels[3])]:
        w = conv_w((4 * lin, lout), 4 * lin)
        s, b = bn(lout)
        p[lname] = {"w": (w * s[None, :]).astype(jnp.bfloat16), "b": b}

    c_last = stages_out_channels[-1]
    w5 = conv_w((in_c, c_last), in_c)
    s5, b5 = bn(c_last)
    p["conv5_w"] = (w5 * s5[None, :]).astype(jnp.bfloat16)
    p["conv5_b"] = b5

    p["fc_w"] = conv_w((c_last, num_classes), c_last).astype(jnp.bfloat16)
    p["fc_b"] = 0.1 * jax.random.normal(nk(), (num_classes,), jnp.float32)
    return p


# ----------------------------- main -----------------------------

if __name__ == "__main__":
    root = jax.random.PRNGKey(0)
    kp, kx = jax.random.split(root)

    # Small config that keeps every layer type (stride-2 IR, stride-1 IR + SimAM, L1/L2/L3, conv5, fc).
    stages_repeats = [1, 2, 1]
    stages_out_channels = [24, 116, 232, 464, 1024]   # fixed by the hard-coded L1/L2/L3 channel counts
    num_classes = 16

    params = init_params(kp, stages_repeats, stages_out_channels, num_classes)
    x = jax.random.normal(kx, (2, 3, 64, 64), jnp.float32)  # NCHW, like the PyTorch module

    fwd_pallas = jax.jit(lambda inp: shufflenetv2_forward(params, inp, use_pallas=True))
    fwd_ref = jax.jit(lambda inp: shufflenetv2_forward(params, inp, use_pallas=False))

    out = jax.block_until_ready(fwd_pallas(x))
    expected = jax.block_until_ready(fwd_ref(x))

    assert out.shape == (2, num_classes) and out.dtype == jnp.float32
    err = float(jnp.max(jnp.abs(out - expected)))
    scale = float(jnp.max(jnp.abs(expected))) + 1e-6
    assert err / scale < 2e-2, f"mismatch vs pure-JAX reference: max|diff|={err}, scale={scale}"

    print("KERNEL_OK")
</pallas_src>

<mosaic_0001>
module attributes {stable_mosaic.version = 11 : i64} {
  func.func @_matmul_bias_act_kernel(%arg0: i32, %arg1: memref<256x24xf32, #tpu.memory_space<vmem>>, %arg2: memref<24x58xbf16, #tpu.memory_space<vmem>>, %arg3: memref<1x58xf32, #tpu.memory_space<vmem>>, %arg4: memref<256x58xf32, #tpu.memory_space<vmem>>) attributes {dimension_semantics = [#tpu.dimension_semantics<parallel>], iteration_bounds = array<i64: 2>, scalar_prefetch = 0 : i64, scratch_operands = 0 : i64, tpu.core_type = #tpu.core_type<tc>, window_params = [{transform_indices = @transform_0, window_bounds = array<i64: 256, 24>}, {pipeline_mode = #tpu.pipeline_mode<synchronous>, transform_indices = @transform_1, window_bounds = array<i64: 24, 58>}, {pipeline_mode = #tpu.pipeline_mode<synchronous>, transform_indices = @transform_2, window_bounds = array<i64: 1, 58>}, {transform_indices = @transform_3, window_bounds = array<i64: 256, 58>}]} {
    %c0 = arith.constant 0 : index
    %c0_0 = arith.constant 0 : index
    %0 = vector.load %arg1[%c0, %c0_0] : memref<256x24xf32, #tpu.memory_space<vmem>>, vector<256x24xf32>
    %1 = arith.truncf %0 : vector<256x24xf32> to vector<256x24xbf16>
    %c0_1 = arith.constant 0 : index
    %c0_2 = arith.constant 0 : index
    %2 = vector.load %arg2[%c0_1, %c0_2] : memref<24x58xbf16, #tpu.memory_space<vmem>>, vector<24x58xbf16>
    %cst = arith.constant dense<0.000000e+00> : vector<256x58xf32>
    %3 = tpu.matmul %1, %2, %cst {dimension_numbers = #tpu.dot_dimension_numbers<[1], [0], [0], [1], [0, 0, 1, 1], [], []>} : vector<256x24xbf16>, vector<24x58xbf16>, vector<256x58xf32> -> vector<256x58xf32>
    %c0_3 = arith.constant 0 : index
    %c0_4 = arith.constant 0 : index
    %4 = vector.load %arg3[%c0_3, %c0_4] : memref<1x58xf32, #tpu.memory_space<vmem>>, vector<1x58xf32>
    %5 = vector.broadcast %4 : vector<1x58xf32> to vector<256x58xf32>
    %6 = arith.addf %3, %5 : vector<256x58xf32>
    %cst_5 = arith.constant 0.000000e+00 : f32
    %7 = vector.broadcast %cst_5 : f32 to vector<256x58xf32>
    %8 = arith.maximumf %6, %7 : vector<256x58xf32>
    %c0_6 = arith.constant 0 : index
    %c0_7 = arith.constant 0 : index
    %9 = vector.load %arg4[%c0_6, %c0_7] : memref<256x58xf32, #tpu.memory_space<vmem>>, vector<256x58xf32>
    tpu.vector_store %arg4[%c0_6, %c0_7], %8 {strides = array<i32>} : memref<256x58xf32, #tpu.memory_space<vmem>>, vector<256x58xf32>,
    return
  }
  func.func @transform_0(%arg0: i32) -> (i32, i32) {
    %c0_i32 = arith.constant 0 : i32
    %c0_i32_0 = arith.constant 0 : i32
    return %arg0, %c0_i32 : i32, i32
  }
  func.func @transform_1(%arg0: i32) -> (i32, i32) {
    %c0_i32 = arith.constant 0 : i32
    %c0_i32_0 = arith.constant 0 : i32
    %c0_i32_1 = arith.constant 0 : i32
    return %c0_i32, %c0_i32_0 : i32, i32
  }
  func.func @transform_2(%arg0: i32) -> (i32, i32) {
    %c0_i32 = arith.constant 0 : i32
    %c0_i32_0 = arith.constant 0 : i32
    %c0_i32_1 = arith.constant 0 : i32
    return %c0_i32, %c0_i32_0 : i32, i32
  }
  func.func @transform_3(%arg0: i32) -> (i32, i32) {
    %c0_i32 = arith.constant 0 : i32
    %c0_i32_0 = arith.constant 0 : i32
    return %arg0, %c0_i32 : i32, i32
  }
}

module attributes {stable_mosaic.version = 11 : i64} {
  func.func @_matmul_bias_act_kernel(%arg0: i32, %arg1: memref<64x58xf32, #tpu.memory_space<vmem>>, %arg2: memref<58x58xbf16, #tpu.memory_space<vmem>>, %arg3: memref<1x58xf32, #tpu.memory_space<vmem>>, %arg4: memref<64x58xf32, #tpu.memory_space<vmem>>) attributes {dimension_semantics = [#tpu.dimension_semantics<parallel>], iteration_bounds = array<i64: 2>, scalar_prefetch = 0 : i64, scratch_operands = 0 : i64, tpu.core_type = #tpu.core_type<tc>, window_params = [{transform_indices = @transform_0, window_bounds = array<i64: 64, 58>}, {pipeline_mode = #tpu.pipeline_mode<synchronous>, transform_indices = @transform_1, window_bounds = array<i64: 58, 58>}, {pipeline_mode = #tpu.pipeline_mode<synchronous>, transform_indices = @transform_2, window_bounds = array<i64: 1, 58>}, {transform_indices = @transform_3, window_bounds = array<i64: 64, 58>}]} {
    %c0 = arith.constant 0 : index
    %c0_0 = arith.constant 0 : index
    %0 = vector.load %arg1[%c0, %c0_0] : memref<64x58xf32, #tpu.memory_space<vmem>>, vector<64x58xf32>
    %1 = arith.truncf %0 : vector<64x58xf32> to vector<64x58xbf16>
    %c0_1 = arith.constant 0 : index
    %c0_2 = arith.constant 0 : index
    %2 = vector.load %arg2[%c0_1, %c0_2] : memref<58x58xbf16, #tpu.memory_space<vmem>>, vector<58x58xbf16>
    %cst = arith.constant dense<0.000000e+00> : vector<64x58xf32>
    %3 = tpu.matmul %1, %2, %cst {dimension_numbers = #tpu.dot_dimension_numbers<[1], [0], [0], [1], [0, 0, 1, 1], [], []>} : vector<64x58xbf16>, vector<58x58xbf16>, vector<64x58xf32> -> vector<64x58xf32>
    %c0_3 = arith.constant 0 : index
    %c0_4 = arith.constant 0 : index
    %4 = vector.load %arg3[%c0_3, %c0_4] : memref<1x58xf32, #tpu.memory_space<vmem>>, vector<1x58xf32>
    %5 = vector.broadcast %4 : vector<1x58xf32> to vector<64x58xf32>
    %6 = arith.addf %3, %5 : vector<64x58xf32>
    %cst_5 = arith.constant 0.000000e+00 : f32
    %7 = vector.broadcast %cst_5 : f32 to vector<64x58xf32>
    %8 = arith.maximumf %6, %7 : vector<64x58xf32>
    %c0_6 = arith.constant 0 : index
    %c0_7 = arith.constant 0 : index
    %9 = vector.load %arg4[%c0_6, %c0_7] : memref<64x58xf32, #tpu.memory_space<vmem>>, vector<64x58xf32>
    tpu.vector_store %arg4[%c0_6, %c0_7], %8 {strides = array<i32>} : memref<64x58xf32, #tpu.memory_space<vmem>>, vector<64x58xf32>,
    return
  }
  func.func @transform_0(%arg0: i32) -> (i32, i32) {
    %c0_i32 = arith.constant 0 : i32
    %c0_i32_0 = arith.constant 0 : i32
    return %arg0, %c0_i32 : i32, i32
  }
  func.func @transform_1(%arg0: i32) -> (i32, i32) {
    %c0_i32 = arith.constant 0 : i32
    %c0_i32_0 = arith.constant 0 : i32
    %c0_i32_1 = arith.constant 0 : i32
    return %c0_i32, %c0_i32_0 : i32, i32
  }
  func.func @transform_2(%arg0: i32) -> (i32, i32) {
    %c0_i32 = arith.constant 0 : i32
    %c0_i32_0 = arith.constant 0 : i32
    %c0_i32_1 = arith.constant 0 : i32
    return %c0_i32, %c0_i32_0 : i32, i32
  }
  func.func @transform_3(%arg0: i32) -> (i32, i32) {
    %c0_i32 = arith.constant 0 : i32
    %c0_i32_0 = arith.constant 0 : i32
    return %arg0, %c0_i32 : i32, i32
  }
}

module attributes {stable_mosaic.version = 11 : i64} {
  func.func @_matmul_bias_act_kernel(%arg0: i32, %arg1: memref<64x24xf32, #tpu.memory_space<vmem>>, %arg2: memref<24x58xbf16, #tpu.memory_space<vmem>>, %arg3: memref<1x58xf32, #tpu.memory_space<vmem>>, %arg4: memref<64x58xf32, #tpu.memory_space<vmem>>) attributes {dimension_semantics = [#tpu.dimension_semantics<parallel>], iteration_bounds = array<i64: 2>, scalar_prefetch = 0 : i64, scratch_operands = 0 : i64, tpu.core_type = #tpu.core_type<tc>, window_params = [{transform_indices = @transform_0, window_bounds = array<i64: 64, 24>}, {pipeline_mode = #tpu.pipeline_mode<synchronous>, transform_indices = @transform_1, window_bounds = array<i64: 24, 58>}, {pipeline_mode = #tpu.pipeline_mode<synchronous>, transform_indices = @transform_2, window_bounds = array<i64: 1, 58>}, {transform_indices = @transform_3, window_bounds = array<i64: 64, 58>}]} {
    %c0 = arith.constant 0 : index
    %c0_0 = arith.constant 0 : index
    %0 = vector.load %arg1[%c0, %c0_0] : memref<64x24xf32, #tpu.memory_space<vmem>>, vector<64x24xf32>
    %1 = arith.truncf %0 : vector<64x24xf32> to vector<64x24xbf16>
    %c0_1 = arith.constant 0 : index
    %c0_2 = arith.constant 0 : index
    %2 = vector.load %arg2[%c0_1, %c0_2] : memref<24x58xbf16, #tpu.memory_space<vmem>>, vector<24x58xbf16>
    %cst = arith.constant dense<0.000000e+00> : vector<64x58xf32>
    %3 = tpu.matmul %1, %2, %cst {dimension_numbers = #tpu.dot_dimension_numbers<[1], [0], [0], [1], [0, 0, 1, 1], [], []>} : vector<64x24xbf16>, vector<24x58xbf16>, vector<64x58xf32> -> vector<64x58xf32>
    %c0_3 = arith.constant 0 : index
    %c0_4 = arith.constant 0 : index
    %4 = vector.load %arg3[%c0_3, %c0_4] : memref<1x58xf32, #tpu.memory_space<vmem>>, vector<1x58xf32>
    %5 = vector.broadcast %4 : vector<1x58xf32> to vector<64x58xf32>
    %6 = arith.addf %3, %5 : vector<64x58xf32>
    %cst_5 = arith.constant 0.000000e+00 : f32
    %7 = vector.broadcast %cst_5 : f32 to vector<64x58xf32>
    %8 = arith.maximumf %6, %7 : vector<64x58xf32>
    %c0_6 = arith.constant 0 : index
    %c0_7 = arith.constant 0 : index
    %9 = vector.load %arg4[%c0_6, %c0_7] : memref<64x58xf32, #tpu.memory_space<vmem>>, vector<64x58xf32>
    tpu.vector_store %arg4[%c0_6, %c0_7], %8 {strides = array<i32>} : memref<64x58xf32, #tpu.memory_space<vmem>>, vector<64x58xf32>,
    return
  }
  func.func @transform_0(%arg0: i32) -> (i32, i32) {
    %c0_i32 = arith.constant 0 : i32
    %c0_i32_0 = arith.constant 0 : i32
    return %arg0, %c0_i32 : i32, i32
  }
  func.func @transform_1(%arg0: i32) -> (i32, i32) {
    %c0_i32 = arith.constant 0 : i32
    %c0_i32_0 = arith.constant 0 : i32
    %c0_i32_1 = arith.constant 0 : i32
    return %c0_i32, %c0_i32_0 : i32, i32
  }
  func.func @transform_2(%arg0: i32) -> (i32, i32) {
    %c0_i32 = arith.constant 0 : i32
    %c0_i32_0 = arith.constant 0 : i32
    %c0_i32_1 = arith.constant 0 : i32
    return %c0_i32, %c0_i32_0 : i32, i32
  }
  func.func @transform_3(%arg0: i32) -> (i32, i32) {
    %c0_i32 = arith.constant 0 : i32
    %c0_i32_0 = arith.constant 0 : i32
    return %arg0, %c0_i32 : i32, i32
  }
}

module attributes {stable_mosaic.version = 11 : i64} {
  func.func @_matmul_bias_act_kernel(%arg0: i32, %arg1: memref<64x96xf32, #tpu.memory_space<vmem>>, %arg2: memref<96x116xbf16, #tpu.memory_space<vmem>>, %arg3: memref<1x116xf32, #tpu.memory_space<vmem>>, %arg4: memref<64x116xf32, #tpu.memory_space<vmem>>) attributes {dimension_semantics = [#tpu.dimension_semantics<parallel>], iteration_bounds = array<i64: 2>, scalar_prefetch = 0 : i64, scratch_operands = 0 : i64, tpu.core_type = #tpu.core_type<tc>, window_params = [{transform_indices = @transform_0, window_bounds = array<i64: 64, 96>}, {pipeline_mode = #tpu.pipeline_mode<synchronous>, transform_indices = @transform_1, window_bounds = array<i64: 96, 116>}, {pipeline_mode = #tpu.pipeline_mode<synchronous>, transform_indices = @transform_2, window_bounds = array<i64: 1, 116>}, {transform_indices = @transform_3, window_bounds = array<i64: 64, 116>}]} {
    %c0 = arith.constant 0 : index
    %c0_0 = arith.constant 0 : index
    %0 = vector.load %arg1[%c0, %c0_0] : memref<64x96xf32, #tpu.memory_space<vmem>>, vector<64x96xf32>
    %1 = arith.truncf %0 : vector<64x96xf32> to vector<64x96xbf16>
    %c0_1 = arith.constant 0 : index
    %c0_2 = arith.constant 0 : index
    %2 = vector.load %arg2[%c0_1, %c0_2] : memref<96x116xbf16, #tpu.memory_space<vmem>>, vector<96x116xbf16>
    %cst = arith.constant dense<0.000000e+00> : vector<64x116xf32>
    %3 = tpu.matmul %1, %2, %cst {dimension_numbers = #tpu.dot_dimension_numbers<[1], [0], [0], [1], [0, 0, 1, 1], [], []>} : vector<64x96xbf16>, vector<96x116xbf16>, vector<64x116xf32> -> vector<64x116xf32>
    %c0_3 = arith.constant 0 : index
    %c0_4 = arith.constant 0 : index
    %4 = vector.load %arg3[%c0_3, %c0_4] : memref<1x116xf32, #tpu.memory_space<vmem>>, vector<1x116xf32>
    %5 = vector.broadcast %4 : vector<1x116xf32> to vector<64x116xf32>
    %6 = arith.addf %3, %5 : vector<64x116xf32>
    %cst_5 = arith.constant 0.000000e+00 : f32
    %7 = vector.broadcast %cst_5 : f32 to vector<64x116xf32>
    %8 = arith.cmpf ogt, %6, %7 : vector<64x116xf32>
    %cst_6 = arith.constant 0.000000e+00 : f32
    %9 = vector.broadcast %cst_6 : f32 to vector<64x116xf32>
    %10 = arith.minimumf %6, %9 : vector<64x116xf32>
    %11 = math.exp %10 : vector<64x116xf32>
    %cst_7 = arith.constant 1.000000e+00 : f32
    %12 = vector.broadcast %cst_7 : f32 to vector<64x116xf32>
    %13 = arith.subf %11, %12 : vector<64x116xf32>
    %cst_8 = arith.constant 1.000000e+00 : f32
    %14 = vector.broadcast %cst_8 : f32 to vector<64x116xf32>
    %15 = arith.mulf %14, %13 : vector<64x116xf32>
    %16 = arith.select %8, %6, %15 : vector<64x116xi1>, vector<64x116xf32>
    %cst_9 = arith.constant 0.000000e+00 : f32
    %17 = vector.broadcast %cst_9 : f32 to vector<64x116xf32>
    %18 = arith.maximumf %16, %17 : vector<64x116xf32>
    %cst_10 = arith.constant 0.000000e+00 : f32
    %19 = vector.broadcast %cst_10 : f32 to vector<64x116xf32>
    %20 = arith.minimumf %16, %19 : vector<64x116xf32>
    %21 = math.exp %20 : vector<64x116xf32>
    %cst_11 = arith.constant 1.000000e+00 : f32
    %22 = vector.broadcast %cst_11 : f32 to vector<64x116xf32>
    %23 = arith.subf %21, %22 : vector<64x116xf32>
    %24 = arith.addf %18, %23 : vector<64x116xf32>
    %c0_12 = arith.constant 0 : index
    %c0_13 = arith.constant 0 : index
    %25 = vector.load %arg4[%c0_12, %c0_13] : memref<64x116xf32, #tpu.memory_space<vmem>>, vector<64x116xf32>
    tpu.vector_store %arg4[%c0_12, %c0_13], %24 {strides = array<i32>} : memref<64x116xf32, #tpu.memory_space<vmem>>, vector<64x116xf32>,
    return
  }
  func.func @transform_0(%arg0: i32) -> (i32, i32) {
    %c0_i32 = arith.constant 0 : i32
    %c0_i32_0 = arith.constant 0 : i32
    return %arg0, %c0_i32 : i32, i32
  }
  func.func @transform_1(%arg0: i32) -> (i32, i32) {
    %c0_i32 = arith.constant 0 : i32
    %c0_i32_0 = arith.constant 0 : i32
    %c0_i32_1 = arith.constant 0 : i32
    return %c0_i32, %c0_i32_0 : i32, i32
  }
  func.func @transform_2(%arg0: i32) -> (i32, i32) {
    %c0_i32 = arith.constant 0 : i32
    %c0_i32_0 = arith.constant 0 : i32
    %c0_i32_1 = arith.constant 0 : i32
    return %c0_i32, %c0_i32_0 : i32, i32
  }
  func.func @transform_3(%arg0: i32) -> (i32, i32) {
    %c0_i32 = arith.constant 0 : i32
    %c0_i32_0 = arith.constant 0 : i32
    return %arg0, %c0_i32 : i32, i32
  }
}

module attributes {stable_mosaic.version = 11 : i64} {
  func.func @_matmul_bias_act_kernel(%arg0: i32, %arg1: memref<16x116xf32, #tpu.memory_space<vmem>>, %arg2: memref<116x116xbf16, #tpu.memory_space<vmem>>, %arg3: memref<1x116xf32, #tpu.memory_space<vmem>>, %arg4: memref<16x116xf32, #tpu.memory_space<vmem>>) attributes {dimension_semantics = [#tpu.dimension_semantics<parallel>], iteration_bounds = array<i64: 2>, scalar_prefetch = 0 : i64, scratch_operands = 0 : i64, tpu.core_type = #tpu.core_type<tc>, window_params = [{transform_indices = @transform_0, window_bounds = array<i64: 16, 116>}, {pipeline_mode = #tpu.pipeline_mode<synchronous>, transform_indices = @transform_1, window_bounds = array<i64: 116, 116>}, {pipeline_mode = #tpu.pipeline_mode<synchronous>, transform_indices = @transform_2, window_bounds = array<i64: 1, 116>}, {transform_indices = @transform_3, window_bounds = array<i64: 16, 116>}]} {
    %c0 = arith.constant 0 : index
    %c0_0 = arith.constant 0 : index
    %0 = vector.load %arg1[%c0, %c0_0] : memref<16x116xf32, #tpu.memory_space<vmem>>, vector<16x116xf32>
    %1 = arith.truncf %0 : vector<16x116xf32> to vector<16x116xbf16>
    %c0_1 = arith.constant 0 : index
    %c0_2 = arith.constant 0 : index
    %2 = vector.load %arg2[%c0_1, %c0_2] : memref<116x116xbf16, #tpu.memory_space<vmem>>, vector<116x116xbf16>
    %cst = arith.constant dense<0.000000e+00> : vector<16x116xf32>
    %3 = tpu.matmul %1, %2, %cst {dimension_numbers = #tpu.dot_dimension_numbers<[1], [0], [0], [1], [0, 0, 1, 1], [], []>} : vector<16x116xbf16>, vector<116x116xbf16>, vector<16x116xf32> -> vector<16x116xf32>
    %c0_3 = arith.constant 0 : index
    %c0_4 = arith.constant 0 : index
    %4 = vector.load %arg3[%c0_3, %c0_4] : memref<1x116xf32, #tpu.memory_space<vmem>>, vector<1x116xf32>
    %5 = vector.broadcast %4 : vector<1x116xf32> to vector<16x116xf32>
    %6 = arith.addf %3, %5 : vector<16x116xf32>
    %cst_5 = arith.constant 0.000000e+00 : f32
    %7 = vector.broadcast %cst_5 : f32 to vector<16x116xf32>
    %8 = arith.maximumf %6, %7 : vector<16x116xf32>
    %c0_6 = arith.constant 0 : index
    %c0_7 = arith.constant 0 : index
    %9 = vector.load %arg4[%c0_6, %c0_7] : memref<16x116xf32, #tpu.memory_space<vmem>>, vector<16x116xf32>
    tpu.vector_store %arg4[%c0_6, %c0_7], %8 {strides = array<i32>} : memref<16x116xf32, #tpu.memory_space<vmem>>, vector<16x116xf32>,
    return
  }
  func.func @transform_0(%arg0: i32) -> (i32, i32) {
    %c0_i32 = arith.constant 0 : i32
    %c0_i32_0 = arith.constant 0 : i32
    return %arg0, %c0_i32 : i32, i32
  }
  func.func @transform_1(%arg0: i32) -> (i32, i32) {
    %c0_i32 = arith.constant 0 : i32
    %c0_i32_0 = arith.constant 0 : i32
    %c0_i32_1 = arith.constant 0 : i32
    return %c0_i32, %c0_i32_0 : i32, i32
  }
  func.func @transform_2(%arg0: i32) -> (i32, i32) {
    %c0_i32 = arith.constant 0 : i32
    %c0_i32_0 = arith.constant 0 : i32
    %c0_i32_1 = arith.constant 0 : i32
    return %c0_i32, %c0_i32_0 : i32, i32
  }
  func.func @transform_3(%arg0: i32) -> (i32, i32) {
    %c0_i32 = arith.constant 0 : i32
    %c0_i32_0 = arith.constant 0 : i32
    return %arg0, %c0_i32 : i32, i32
  }
}

module attributes {stable_mosaic.version = 11 : i64} {
  func.func @_matmul_bias_act_kernel(%arg0: i32, %arg1: memref<64x116xf32, #tpu.memory_space<vmem>>, %arg2: memref<116x116xbf16, #tpu.memory_space<vmem>>, %arg3: memref<1x116xf32, #tpu.memory_space<vmem>>, %arg4: memref<64x116xf32, #tpu.memory_space<vmem>>) attributes {dimension_semantics = [#tpu.dimension_semantics<parallel>], iteration_bounds = array<i64: 2>, scalar_prefetch = 0 : i64, scratch_operands = 0 : i64, tpu.core_type = #tpu.core_type<tc>, window_params = [{transform_indices = @transform_0, window_bounds = array<i64: 64, 116>}, {pipeline_mode = #tpu.pipeline_mode<synchronous>, transform_indices = @transform_1, window_bounds = array<i64: 116, 116>}, {pipeline_mode = #tpu.pipeline_mode<synchronous>, transform_indices = @transform_2, window_bounds = array<i64: 1, 116>}, {transform_indices = @transform_3, window_bounds = array<i64: 64, 116>}]} {
    %c0 = arith.constant 0 : index
    %c0_0 = arith.constant 0 : index
    %0 = vector.load %arg1[%c0, %c0_0] : memref<64x116xf32, #tpu.memory_space<vmem>>, vector<64x116xf32>
    %1 = arith.truncf %0 : vector<64x116xf32> to vector<64x116xbf16>
    %c0_1 = arith.constant 0 : index
    %c0_2 = arith.constant 0 : index
    %2 = vector.load %arg2[%c0_1, %c0_2] : memref<116x116xbf16, #tpu.memory_space<vmem>>, vector<116x116xbf16>
    %cst = arith.constant dense<0.000000e+00> : vector<64x116xf32>
    %3 = tpu.matmul %1, %2, %cst {dimension_numbers = #tpu.dot_dimension_numbers<[1], [0], [0], [1], [0, 0, 1, 1], [], []>} : vector<64x116xbf16>, vector<116x116xbf16>, vector<64x116xf32> -> vector<64x116xf32>
    %c0_3 = arith.constant 0 : index
    %c0_4 = arith.constant 0 : index
    %4 = vector.load %arg3[%c0_3, %c0_4] : memref<1x116xf32, #tpu.memory_space<vmem>>, vector<1x116xf32>
    %5 = vector.broadcast %4 : vector<1x116xf32> to vector<64x116xf32>
    %6 = arith.addf %3, %5 : vector<64x116xf32>
    %cst_5 = arith.constant 0.000000e+00 : f32
    %7 = vector.broadcast %cst_5 : f32 to vector<64x116xf32>
    %8 = arith.maximumf %6, %7 : vector<64x116xf32>
    %c0_6 = arith.constant 0 : index
    %c0_7 = arith.constant 0 : index
    %9 = vector.load %arg4[%c0_6, %c0_7] : memref<64x116xf32, #tpu.memory_space<vmem>>, vector<64x116xf32>
    tpu.vector_store %arg4[%c0_6, %c0_7], %8 {strides = array<i32>} : memref<64x116xf32, #tpu.memory_space<vmem>>, vector<64x116xf32>,
    return
  }
  func.func @transform_0(%arg0: i32) -> (i32, i32) {
    %c0_i32 = arith.constant 0 : i32
    %c0_i32_0 = arith.constant 0 : i32
    return %arg0, %c0_i32 : i32, i32
  }
  func.func @transform_1(%arg0: i32) -> (i32, i32) {
    %c0_i32 = arith.constant 0 : i32
    %c0_i32_0 = arith.constant 0 : i32
    %c0_i32_1 = arith.constant 0 : i32
    return %c0_i32, %c0_i32_0 : i32, i32
  }
  func.func @transform_2(%arg0: i32) -> (i32, i32) {
    %c0_i32 = arith.constant 0 : i32
    %c0_i32_0 = arith.constant 0 : i32
    %c0_i32_1 = arith.constant 0 : i32
    return %c0_i32, %c0_i32_0 : i32, i32
  }
  func.func @transform_3(%arg0: i32) -> (i32, i32) {
    %c0_i32 = arith.constant 0 : i32
    %c0_i32_0 = arith.constant 0 : i32
    return %arg0, %c0_i32 : i32, i32
  }
}

module attributes {stable_mosaic.version = 11 : i64} {
  func.func @_simam_kernel(%arg0: i32, %arg1: memref<2x16x232xf32, #tpu.memory_space<vmem>>, %arg2: memref<2x16x232xf32, #tpu.memory_space<vmem>>) attributes {dimension_semantics = [#tpu.dimension_semantics<arbitrary>], iteration_bounds = array<i64: 1>, scalar_prefetch = 0 : i64, scratch_operands = 0 : i64, tpu.core_type = #tpu.core_type<tc>, window_params = [{pipeline_mode = #tpu.pipeline_mode<synchronous>, transform_indices = @transform_0, window_bounds = array<i64: 2, 16, 232>}, {pipeline_mode = #tpu.pipeline_mode<synchronous>, transform_indices = @transform_1, window_bounds = array<i64: 2, 16, 232>}]} {
    %c0 = arith.constant 0 : index
    %c0_0 = arith.constant 0 : index
    %c0_1 = arith.constant 0 : index
    %0 = vector.load %arg1[%c0, %c0_0, %c0_1] : memref<2x16x232xf32, #tpu.memory_space<vmem>>, vector<2x16x232xf32>
    %cst = arith.constant dense<0.000000e+00> : vector<2x232xf32>
    %1 = vector.multi_reduction <add>, %0, %cst [1] : vector<2x16x232xf32> to vector<2x232xf32>
    %2 = vector.shape_cast %1 : vector<2x232xf32> to vector<2x1x232xf32>
    %cst_2 = arith.constant 6.250000e-02 : f32
    %3 = vector.broadcast %cst_2 : f32 to vector<2x1x232xf32>
    %4 = arith.mulf %2, %3 : vector<2x1x232xf32>
    %5 = vector.broadcast %4 : vector<2x1x232xf32> to vector<2x16x232xf32>
    %6 = arith.subf %0, %5 : vector<2x16x232xf32>
    %7 = vector.broadcast %4 : vector<2x1x232xf32> to vector<2x16x232xf32>
    %8 = arith.subf %0, %7 : vector<2x16x232xf32>
    %9 = arith.mulf %6, %8 : vector<2x16x232xf32>
    %cst_3 = arith.constant dense<0.000000e+00> : vector<2x232xf32>
    %10 = vector.multi_reduction <add>, %9, %cst_3 [1] : vector<2x16x232xf32> to vector<2x232xf32>
    %11 = vector.shape_cast %10 : vector<2x232xf32> to vector<2x1x232xf32>
    %cst_4 = arith.constant 0.0666666701 : f32
    %12 = vector.broadcast %cst_4 : f32 to vector<2x1x232xf32>
    %13 = arith.mulf %11, %12 : vector<2x1x232xf32>
    %cst_5 = arith.constant 9.99999974E-5 : f32
    %14 = vector.broadcast %cst_5 : f32 to vector<2x1x232xf32>
    %15 = arith.addf %13, %14 : vector<2x1x232xf32>
    %cst_6 = arith.constant 4.000000e+00 : f32
    %16 = vector.broadcast %cst_6 : f32 to vector<2x1x232xf32>
    %17 = arith.mulf %16, %15 : vector<2x1x232xf32>
    %18 = tpu.reciprocal %17 {approx = true} : vector<2x1x232xf32> -> vector<2x1x232xf32>
    %19 = vector.broadcast %18 : vector<2x1x232xf32> to vector<2x16x232xf32>
    %20 = arith.mulf %9, %19 : vector<2x16x232xf32>
    %cst_7 = arith.constant 5.000000e-01 : f32
    %21 = vector.broadcast %cst_7 : f32 to vector<2x16x232xf32>
    %22 = arith.addf %20, %21 : vector<2x16x232xf32>
    %cst_8 = arith.constant 0.000000e+00 : f32
    %23 = vector.broadcast %cst_8 : f32 to vector<2x16x232xf32>
    %24 = arith.subf %23, %22 : vector<2x16x232xf32>
    %25 = math.exp %24 : vector<2x16x232xf32>
    %cst_9 = arith.constant 1.000000e+00 : f32
    %26 = vector.broadcast %cst_9 : f32 to vector<2x16x232xf32>
    %27 = arith.addf %26, %25 : vector<2x16x232xf32>
    %28 = tpu.reciprocal %27 {approx = true} : vector<2x16x232xf32> -> vector<2x16x232xf32>
    %29 = arith.mulf %0, %28 : vector<2x16x232xf32>
    %c0_10 = arith.constant 0 : index
    %c0_11 = arith.constant 0 : index
    %c0_12 = arith.constant 0 : index
    %30 = vector.load %arg2[%c0_10, %c0_11, %c0_12] : memref<2x16x232xf32, #tpu.memory_space<vmem>>, vector<2x16x232xf32>
    tpu.vector_store %arg2[%c0_10, %c0_11, %c0_12], %29 {strides = array<i32>} : memref<2x16x232xf32, #tpu.memory_space<vmem>>, vector<2x16x232xf32>,
    return
  }
  func.func @transform_0(%arg0: i32) -> (i32, i32, i32) {
    %c0_i32 = arith.constant 0 : i32
    %c0_i32_0 = arith.constant 0 : i32
    %c0_i32_1 = arith.constant 0 : i32
    %c0_i32_2 = arith.constant 0 : i32
    return %c0_i32, %c0_i32_0, %c0_i32_1 : i32, i32, i32
  }
  func.func @transform_1(%arg0: i32) -> (i32, i32, i32) {
    %c0_i32 = arith.constant 0 : i32
    %c0_i32_0 = arith.constant 0 : i32
    %c0_i32_1 = arith.constant 0 : i32
    %c0_i32_2 = arith.constant 0 : i32
    return %c0_i32, %c0_i32_0, %c0_i32_1 : i32, i32, i32
  }
}

module attributes {stable_mosaic.version = 11 : i64} {
  func.func @_matmul_bias_act_kernel(%arg0: i32, %arg1: memref<16x464xf32, #tpu.memory_space<vmem>>, %arg2: memref<464x232xbf16, #tpu.memory_space<vmem>>, %arg3: memref<1x232xf32, #tpu.memory_space<vmem>>, %arg4: memref<16x232xf32, #tpu.memory_space<vmem>>) attributes {dimension_semantics = [#tpu.dimension_semantics<parallel>], iteration_bounds = array<i64: 2>, scalar_prefetch = 0 : i64, scratch_operands = 0 : i64, tpu.core_type = #tpu.core_type<tc>, window_params = [{transform_indices = @transform_0, window_bounds = array<i64: 16, 464>}, {pipeline_mode = #tpu.pipeline_mode<synchronous>, transform_indices = @transform_1, window_bounds = array<i64: 464, 232>}, {pipeline_mode = #tpu.pipeline_mode<synchronous>, transform_indices = @transform_2, window_bounds = array<i64: 1, 232>}, {transform_indices = @transform_3, window_bounds = array<i64: 16, 232>}]} {
    %c0 = arith.constant 0 : index
    %c0_0 = arith.constant 0 : index
    %0 = vector.load %arg1[%c0, %c0_0] : memref<16x464xf32, #tpu.memory_space<vmem>>, vector<16x464xf32>
    %1 = arith.truncf %0 : vector<16x464xf32> to vector<16x464xbf16>
    %c0_1 = arith.constant 0 : index
    %c0_2 = arith.constant 0 : index
    %2 = vector.load %arg2[%c0_1, %c0_2] : memref<464x232xbf16, #tpu.memory_space<vmem>>, vector<464x232xbf16>
    %cst = arith.constant dense<0.000000e+00> : vector<16x232xf32>
    %3 = tpu.matmul %1, %2, %cst {dimension_numbers = #tpu.dot_dimension_numbers<[1], [0], [0], [1], [0, 0, 1, 1], [], []>} : vector<16x464xbf16>, vector<464x232xbf16>, vector<16x232xf32> -> vector<16x232xf32>
    %c0_3 = arith.constant 0 : index
    %c0_4 = arith.constant 0 : index
    %4 = vector.load %arg3[%c0_3, %c0_4] : memref<1x232xf32, #tpu.memory_space<vmem>>, vector<1x232xf32>
    %5 = vector.broadcast %4 : vector<1x232xf32> to vector<16x232xf32>
    %6 = arith.addf %3, %5 : vector<16x232xf32>
    %cst_5 = arith.constant 0.000000e+00 : f32
    %7 = vector.broadcast %cst_5 : f32 to vector<16x232xf32>
    %8 = arith.cmpf ogt, %6, %7 : vector<16x232xf32>
    %cst_6 = arith.constant 0.000000e+00 : f32
    %9 = vector.broadcast %cst_6 : f32 to vector<16x232xf32>
    %10 = arith.minimumf %6, %9 : vector<16x232xf32>
    %11 = math.exp %10 : vector<16x232xf32>
    %cst_7 = arith.constant 1.000000e+00 : f32
    %12 = vector.broadcast %cst_7 : f32 to vector<16x232xf32>
    %13 = arith.subf %11, %12 : vector<16x232xf32>
    %cst_8 = arith.constant 1.000000e+00 : f32
    %14 = vector.broadcast %cst_8 : f32 to vector<16x232xf32>
    %15 = arith.mulf %14, %13 : vector<16x232xf32>
    %16 = arith.select %8, %6, %15 : vector<16x232xi1>, vector<16x232xf32>
    %c0_9 = arith.constant 0 : index
    %c0_10 = arith.constant 0 : index
    %17 = vector.load %arg4[%c0_9, %c0_10] : memref<16x232xf32, #tpu.memory_space<vmem>>, vector<16x232xf32>
    tpu.vector_store %arg4[%c0_9, %c0_10], %16 {strides = array<i32>} : memref<16x232xf32, #tpu.memory_space<vmem>>, vector<16x232xf32>,
    return
  }
  func.func @transform_0(%arg0: i32) -> (i32, i32) {
    %c0_i32 = arith.constant 0 : i32
    %c0_i32_0 = arith.constant 0 : i32
    return %arg0, %c0_i32 : i32, i32
  }
  func.func @transform_1(%arg0: i32) -> (i32, i32) {
    %c0_i32 = arith.constant 0 : i32
    %c0_i32_0 = arith.constant 0 : i32
    %c0_i32_1 = arith.constant 0 : i32
    return %c0_i32, %c0_i32_0 : i32, i32
  }
  func.func @transform_2(%arg0: i32) -> (i32, i32) {
    %c0_i32 = arith.constant 0 : i32
    %c0_i32_0 = arith.constant 0 : i32
    %c0_i32_1 = arith.constant 0 : i32
    return %c0_i32, %c0_i32_0 : i32, i32
  }
  func.func @transform_3(%arg0: i32) -> (i32, i32) {
    %c0_i32 = arith.constant 0 : i32
    %c0_i32_0 = arith.constant 0 : i32
    return %arg0, %c0_i32 : i32, i32
  }
}

module attributes {stable_mosaic.version = 11 : i64} {
  func.func @_matmul_bias_act_kernel(%arg0: i32, %arg1: memref<8x232xf32, #tpu.memory_space<vmem>>, %arg2: memref<232x232xbf16, #tpu.memory_space<vmem>>, %arg3: memref<1x232xf32, #tpu.memory_space<vmem>>, %arg4: memref<8x232xf32, #tpu.memory_space<vmem>>) attributes {dimension_semantics = [#tpu.dimension_semantics<parallel>], iteration_bounds = array<i64: 1>, scalar_prefetch = 0 : i64, scratch_operands = 0 : i64, tpu.core_type = #tpu.core_type<tc>, window_params = [{transform_indices = @transform_0, window_bounds = array<i64: 8, 232>}, {pipeline_mode = #tpu.pipeline_mode<synchronous>, transform_indices = @transform_1, window_bounds = array<i64: 232, 232>}, {pipeline_mode = #tpu.pipeline_mode<synchronous>, transform_indices = @transform_2, window_bounds = array<i64: 1, 232>}, {transform_indices = @transform_3, window_bounds = array<i64: 8, 232>}]} {
    %c0 = arith.constant 0 : index
    %c0_0 = arith.constant 0 : index
    %0 = vector.load %arg1[%c0, %c0_0] : memref<8x232xf32, #tpu.memory_space<vmem>>, vector<8x232xf32>
    %1 = arith.truncf %0 : vector<8x232xf32> to vector<8x232xbf16>
    %c0_1 = arith.constant 0 : index
    %c0_2 = arith.constant 0 : index
    %2 = vector.load %arg2[%c0_1, %c0_2] : memref<232x232xbf16, #tpu.memory_space<vmem>>, vector<232x232xbf16>
    %cst = arith.constant dense<0.000000e+00> : vector<8x232xf32>
    %3 = tpu.matmul %1, %2, %cst {dimension_numbers = #tpu.dot_dimension_numbers<[1], [0], [0], [1], [0, 0, 1, 1], [], []>} : vector<8x232xbf16>, vector<232x232xbf16>, vector<8x232xf32> -> vector<8x232xf32>
    %c0_3 = arith.constant 0 : index
    %c0_4 = arith.constant 0 : index
    %4 = vector.load %arg3[%c0_3, %c0_4] : memref<1x232xf32, #tpu.memory_space<vmem>>, vector<1x232xf32>
    %5 = vector.broadcast %4 : vector<1x232xf32> to vector<8x232xf32>
    %6 = arith.addf %3, %5 : vector<8x232xf32>
    %cst_5 = arith.constant 0.000000e+00 : f32
    %7 = vector.broadcast %cst_5 : f32 to vector<8x232xf32>
    %8 = arith.maximumf %6, %7 : vector<8x232xf32>
    %c0_6 = arith.constant 0 : index
    %c0_7 = arith.constant 0 : index
    %9 = vector.load %arg4[%c0_6, %c0_7] : memref<8x232xf32, #tpu.memory_space<vmem>>, vector<8x232xf32>
    tpu.vector_store %arg4[%c0_6, %c0_7], %8 {strides = array<i32>} : memref<8x232xf32, #tpu.memory_space<vmem>>, vector<8x232xf32>,
    return
  }
  func.func @transform_0(%arg0: i32) -> (i32, i32) {
    %c0_i32 = arith.constant 0 : i32
    %c0_i32_0 = arith.constant 0 : i32
    return %arg0, %c0_i32 : i32, i32
  }
  func.func @transform_1(%arg0: i32) -> (i32, i32) {
    %c0_i32 = arith.constant 0 : i32
    %c0_i32_0 = arith.constant 0 : i32
    %c0_i32_1 = arith.constant 0 : i32
    return %c0_i32, %c0_i32_0 : i32, i32
  }
  func.func @transform_2(%arg0: i32) -> (i32, i32) {
    %c0_i32 = arith.constant 0 : i32
    %c0_i32_0 = arith.constant 0 : i32
    %c0_i32_1 = arith.constant 0 : i32
    return %c0_i32, %c0_i32_0 : i32, i32
  }
  func.func @transform_3(%arg0: i32) -> (i32, i32) {
    %c0_i32 = arith.constant 0 : i32
    %c0_i32_0 = arith.constant 0 : i32
    return %arg0, %c0_i32 : i32, i32
  }
}

module attributes {stable_mosaic.version = 11 : i64} {
  func.func @_matmul_bias_act_kernel(%arg0: i32, %arg1: memref<16x232xf32, #tpu.memory_space<vmem>>, %arg2: memref<232x232xbf16, #tpu.memory_space<vmem>>, %arg3: memref<1x232xf32, #tpu.memory_space<vmem>>, %arg4: memref<16x232xf32, #tpu.memory_space<vmem>>) attributes {dimension_semantics = [#tpu.dimension_semantics<parallel>], iteration_bounds = array<i64: 2>, scalar_prefetch = 0 : i64, scratch_operands = 0 : i64, tpu.core_type = #tpu.core_type<tc>, window_params = [{transform_indices = @transform_0, window_bounds = array<i64: 16, 232>}, {pipeline_mode = #tpu.pipeline_mode<synchronous>, transform_indices = @transform_1, window_bounds = array<i64: 232, 232>}, {pipeline_mode = #tpu.pipeline_mode<synchronous>, transform_indices = @transform_2, window_bounds = array<i64: 1, 232>}, {transform_indices = @transform_3, window_bounds = array<i64: 16, 232>}]} {
    %c0 = arith.constant 0 : index
    %c0_0 = arith.constant 0 : index
    %0 = vector.load %arg1[%c0, %c0_0] : memref<16x232xf32, #tpu.memory_space<vmem>>, vector<16x232xf32>
    %1 = arith.truncf %0 : vector<16x232xf32> to vector<16x232xbf16>
    %c0_1 = arith.constant 0 : index
    %c0_2 = arith.constant 0 : index
    %2 = vector.load %arg2[%c0_1, %c0_2] : memref<232x232xbf16, #tpu.memory_space<vmem>>, vector<232x232xbf16>
    %cst = arith.constant dense<0.000000e+00> : vector<16x232xf32>
    %3 = tpu.matmul %1, %2, %cst {dimension_numbers = #tpu.dot_dimension_numbers<[1], [0], [0], [1], [0, 0, 1, 1], [], []>} : vector<16x232xbf16>, vector<232x232xbf16>, vector<16x232xf32> -> vector<16x232xf32>
    %c0_3 = arith.constant 0 : index
    %c0_4 = arith.constant 0 : index
    %4 = vector.load %arg3[%c0_3, %c0_4] : memref<1x232xf32, #tpu.memory_space<vmem>>, vector<1x232xf32>
    %5 = vector.broadcast %4 : vector<1x232xf32> to vector<16x232xf32>
    %6 = arith.addf %3, %5 : vector<16x232xf32>
    %cst_5 = arith.constant 0.000000e+00 : f32
    %7 = vector.broadcast %cst_5 : f32 to vector<16x232xf32>
    %8 = arith.maximumf %6, %7 : vector<16x232xf32>
    %c0_6 = arith.constant 0 : index
    %c0_7 = arith.constant 0 : index
    %9 = vector.load %arg4[%c0_6, %c0_7] : memref<16x232xf32, #tpu.memory_space<vmem>>, vector<16x232xf32>
    tpu.vector_store %arg4[%c0_6, %c0_7], %8 {strides = array<i32>} : memref<16x232xf32, #tpu.memory_space<vmem>>, vector<16x232xf32>,
    return
  }
  func.func @transform_0(%arg0: i32) -> (i32, i32) {
    %c0_i32 = arith.constant 0 : i32
    %c0_i32_0 = arith.constant 0 : i32
    return %arg0, %c0_i32 : i32, i32
  }
  func.func @transform_1(%arg0: i32) -> (i32, i32) {
    %c0_i32 = arith.constant 0 : i32
    %c0_i32_0 = arith.constant 0 : i32
    %c0_i32_1 = arith.constant 0 : i32
    return %c0_i32, %c0_i32_0 : i32, i32
  }
  func.func @transform_2(%arg0: i32) -> (i32, i32) {
    %c0_i32 = arith.constant 0 : i32
    %c0_i32_0 = arith.constant 0 : i32
    %c0_i32_1 = arith.constant 0 : i32
    return %c0_i32, %c0_i32_0 : i32, i32
  }
  func.func @transform_3(%arg0: i32) -> (i32, i32) {
    %c0_i32 = arith.constant 0 : i32
    %c0_i32_0 = arith.constant 0 : i32
    return %arg0, %c0_i32 : i32, i32
  }
}

module attributes {stable_mosaic.version = 11 : i64} {
  func.func @_matmul_bias_act_kernel(%arg0: i32, %arg1: memref<8x928xf32, #tpu.memory_space<vmem>>, %arg2: memref<928x464xbf16, #tpu.memory_space<vmem>>, %arg3: memref<1x464xf32, #tpu.memory_space<vmem>>, %arg4: memref<8x464xf32, #tpu.memory_space<vmem>>) attributes {dimension_semantics = [#tpu.dimension_semantics<parallel>], iteration_bounds = array<i64: 1>, scalar_prefetch = 0 : i64, scratch_operands = 0 : i64, tpu.core_type = #tpu.core_type<tc>, window_params = [{transform_indices = @transform_0, window_bounds = array<i64: 8, 928>}, {pipeline_mode = #tpu.pipeline_mode<synchronous>, transform_indices = @transform_1, window_bounds = array<i64: 928, 464>}, {pipeline_mode = #tpu.pipeline_mode<synchronous>, transform_indices = @transform_2, window_bounds = array<i64: 1, 464>}, {transform_indices = @transform_3, window_bounds = array<i64: 8, 464>}]} {
    %c0 = arith.constant 0 : index
    %c0_0 = arith.constant 0 : index
    %0 = vector.load %arg1[%c0, %c0_0] : memref<8x928xf32, #tpu.memory_space<vmem>>, vector<8x928xf32>
    %1 = arith.truncf %0 : vector<8x928xf32> to vector<8x928xbf16>
    %c0_1 = arith.constant 0 : index
    %c0_2 = arith.constant 0 : index
    %2 = vector.load %arg2[%c0_1, %c0_2] : memref<928x464xbf16, #tpu.memory_space<vmem>>, vector<928x464xbf16>
    %cst = arith.constant dense<0.000000e+00> : vector<8x464xf32>
    %3 = tpu.matmul %1, %2, %cst {dimension_numbers = #tpu.dot_dimension_numbers<[1], [0], [0], [1], [0, 0, 1, 1], [], []>} : vector<8x928xbf16>, vector<928x464xbf16>, vector<8x464xf32> -> vector<8x464xf32>
    %c0_3 = arith.constant 0 : index
    %c0_4 = arith.constant 0 : index
    %4 = vector.load %arg3[%c0_3, %c0_4] : memref<1x464xf32, #tpu.memory_space<vmem>>, vector<1x464xf32>
    %5 = vector.broadcast %4 : vector<1x464xf32> to vector<8x464xf32>
    %6 = arith.addf %3, %5 : vector<8x464xf32>
    %cst_5 = arith.constant 0.000000e+00 : f32
    %7 = vector.broadcast %cst_5 : f32 to vector<8x464xf32>
    %8 = arith.cmpf ogt, %6, %7 : vector<8x464xf32>
    %cst_6 = arith.constant 0.000000e+00 : f32
    %9 = vector.broadcast %cst_6 : f32 to vector<8x464xf32>
    %10 = arith.minimumf %6, %9 : vector<8x464xf32>
    %11 = math.exp %10 : vector<8x464xf32>
    %cst_7 = arith.constant 1.000000e+00 : f32
    %12 = vector.broadcast %cst_7 : f32 to vector<8x464xf32>
    %13 = arith.subf %11, %12 : vector<8x464xf32>
    %cst_8 = arith.constant 1.000000e+00 : f32
    %14 = vector.broadcast %cst_8 : f32 to vector<8x464xf32>
    %15 = arith.mulf %14, %13 : vector<8x464xf32>
    %16 = arith.select %8, %6, %15 : vector<8x464xi1>, vector<8x464xf32>
    %c0_9 = arith.constant 0 : index
    %c0_10 = arith.constant 0 : index
    %17 = vector.load %arg4[%c0_9, %c0_10] : memref<8x464xf32, #tpu.memory_space<vmem>>, vector<8x464xf32>
    tpu.vector_store %arg4[%c0_9, %c0_10], %16 {strides = array<i32>} : memref<8x464xf32, #tpu.memory_space<vmem>>, vector<8x464xf32>,
    return
  }
  func.func @transform_0(%arg0: i32) -> (i32, i32) {
    %c0_i32 = arith.constant 0 : i32
    %c0_i32_0 = arith.constant 0 : i32
    return %arg0, %c0_i32 : i32, i32
  }
  func.func @transform_1(%arg0: i32) -> (i32, i32) {
    %c0_i32 = arith.constant 0 : i32
    %c0_i32_0 = arith.constant 0 : i32
    %c0_i32_1 = arith.constant 0 : i32
    return %c0_i32, %c0_i32_0 : i32, i32
  }
  func.func @transform_2(%arg0: i32) -> (i32, i32) {
    %c0_i32 = arith.constant 0 : i32
    %c0_i32_0 = arith.constant 0 : i32
    %c0_i32_1 = arith.constant 0 : i32
    return %c0_i32, %c0_i32_0 : i32, i32
  }
  func.func @transform_3(%arg0: i32) -> (i32, i32) {
    %c0_i32 = arith.constant 0 : i32
    %c0_i32_0 = arith.constant 0 : i32
    return %arg0, %c0_i32 : i32, i32
  }
}

module attributes {stable_mosaic.version = 11 : i64} {
  func.func @_conv5_pool_fc_kernel(%arg0: i32, %arg1: memref<8x464xf32, #tpu.memory_space<vmem>>, %arg2: memref<464x1024xbf16, #tpu.memory_space<vmem>>, %arg3: memref<1x1024xf32, #tpu.memory_space<vmem>>, %arg4: memref<1024x16xbf16, #tpu.memory_space<vmem>>, %arg5: memref<1x16xf32, #tpu.memory_space<vmem>>, %arg6: memref<2x16xf32, #tpu.memory_space<vmem>>) attributes {dimension_semantics = [#tpu.dimension_semantics<arbitrary>], iteration_bounds = array<i64: 1>, scalar_prefetch = 0 : i64, scratch_operands = 0 : i64, tpu.core_type = #tpu.core_type<tc>, window_params = [{pipeline_mode = #tpu.pipeline_mode<synchronous>, transform_indices = @transform_0, window_bounds = array<i64: 8, 464>}, {pipeline_mode = #tpu.pipeline_mode<synchronous>, transform_indices = @transform_1, window_bounds = array<i64: 464, 1024>}, {pipeline_mode = #tpu.pipeline_mode<synchronous>, transform_indices = @transform_2, window_bounds = array<i64: 1, 1024>}, {pipeline_mode = #tpu.pipeline_mode<synchronous>, transform_indices = @transform_3, window_bounds = array<i64: 1024, 16>}, {pipeline_mode = #tpu.pipeline_mode<synchronous>, transform_indices = @transform_4, window_bounds = array<i64: 1, 16>}, {pipeline_mode = #tpu.pipeline_mode<synchronous>, transform_indices = @transform_5, window_bounds = array<i64: 2, 16>}]} {
    %c0 = arith.constant 0 : index
    %c0_0 = arith.constant 0 : index
    %0 = vector.load %arg1[%c0, %c0_0] : memref<8x464xf32, #tpu.memory_space<vmem>>, vector<8x464xf32>
    %1 = arith.truncf %0 : vector<8x464xf32> to vector<8x464xbf16>
    %c0_1 = arith.constant 0 : index
    %c0_2 = arith.constant 0 : index
    %2 = vector.load %arg2[%c0_1, %c0_2] : memref<464x1024xbf16, #tpu.memory_space<vmem>>, vector<464x1024xbf16>
    %cst = arith.constant dense<0.000000e+00> : vector<8x1024xf32>
    %3 = tpu.matmul %1, %2, %cst {dimension_numbers = #tpu.dot_dimension_numbers<[1], [0], [0], [1], [0, 0, 1, 1], [], []>} : vector<8x464xbf16>, vector<464x1024xbf16>, vector<8x1024xf32> -> vector<8x1024xf32>
    %c0_3 = arith.constant 0 : index
    %c0_4 = arith.constant 0 : index
    %4 = vector.load %arg3[%c0_3, %c0_4] : memref<1x1024xf32, #tpu.memory_space<vmem>>, vector<1x1024xf32>
    %5 = vector.broadcast %4 : vector<1x1024xf32> to vector<8x1024xf32>
    %6 = arith.addf %3, %5 : vector<8x1024xf32>
    %cst_5 = arith.constant 0.000000e+00 : f32
    %7 = vector.broadcast %cst_5 : f32 to vector<8x1024xf32>
    %8 = arith.maximumf %6, %7 : vector<8x1024xf32>
    %9 = vector.extract_strided_slice %8 {offsets = [0, 0], sizes = [4, 1024], strides = [1, 1]} : vector<8x1024xf32> to vector<4x1024xf32>
    %cst_6 = arith.constant dense<0.000000e+00> : vector<1024xf32>
    %10 = vector.multi_reduction <add>, %9, %cst_6 [0] : vector<4x1024xf32> to vector<1024xf32>
    %11 = vector.shape_cast %10 : vector<1024xf32> to vector<1x1024xf32>
    %12 = vector.extract_strided_slice %8 {offsets = [4, 0], sizes = [4, 1024], strides = [1, 1]} : vector<8x1024xf32> to vector<4x1024xf32>
    %cst_7 = arith.constant dense<0.000000e+00> : vector<1024xf32>
    %13 = vector.multi_reduction <add>, %12, %cst_7 [0] : vector<4x1024xf32> to vector<1024xf32>
    %14 = vector.shape_cast %13 : vector<1024xf32> to vector<1x1024xf32>
    %15 = tpu.concatenate %11, %14 in 0 : vector<1x1024xf32>, vector<1x1024xf32> -> vector<2x1024xf32>
    %cst_8 = arith.constant 2.500000e-01 : f32
    %16 = vector.broadcast %cst_8 : f32 to vector<2x1024xf32>
    %17 = arith.mulf %15, %16 : vector<2x1024xf32>
    %18 = arith.truncf %17 : vector<2x1024xf32> to vector<2x1024xbf16>
    %c0_9 = arith.constant 0 : index
    %c0_10 = arith.constant 0 : index
    %19 = vector.load %arg4[%c0_9, %c0_10] : memref<1024x16xbf16, #tpu.memory_space<vmem>>, vector<1024x16xbf16>
    %cst_11 = arith.constant dense<0.000000e+00> : vector<2x16xf32>
    %20 = tpu.matmul %18, %19, %cst_11 {dimension_numbers = #tpu.dot_dimension_numbers<[1], [0], [0], [1], [0, 0, 1, 1], [], []>} : vector<2x1024xbf16>, vector<1024x16xbf16>, vector<2x16xf32> -> vector<2x16xf32>
    %c0_12 = arith.constant 0 : index
    %c0_13 = arith.constant 0 : index
    %21 = vector.load %arg5[%c0_12, %c0_13] : memref<1x16xf32, #tpu.memory_space<vmem>>, vector<1x16xf32>
    %22 = vector.broadcast %21 : vector<1x16xf32> to vector<2x16xf32>
    %23 = arith.addf %20, %22 : vector<2x16xf32>
    %c0_14 = arith.constant 0 : index
    %c0_15 = arith.constant 0 : index
    %24 = vector.load %arg6[%c0_14, %c0_15] : memref<2x16xf32, #tpu.memory_space<vmem>>, vector<2x16xf32>
    tpu.vector_store %arg6[%c0_14, %c0_15], %23 {strides = array<i32>} : memref<2x16xf32, #tpu.memory_space<vmem>>, vector<2x16xf32>,
    return
  }
  func.func @transform_0(%arg0: i32) -> (i32, i32) {
    %c0_i32 = arith.constant 0 : i32
    %c0_i32_0 = arith.constant 0 : i32
    %c0_i32_1 = arith.constant 0 : i32
    return %c0_i32, %c0_i32_0 : i32, i32
  }
  func.func @transform_1(%arg0: i32) -> (i32, i32) {
    %c0_i32 = arith.constant 0 : i32
    %c0_i32_0 = arith.constant 0 : i32
    %c0_i32_1 = arith.constant 0 : i32
    return %c0_i32, %c0_i32_0 : i32, i32
  }
  func.func @transform_2(%arg0: i32) -> (i32, i32) {
    %c0_i32 = arith.constant 0 : i32
    %c0_i32_0 = arith.constant 0 : i32
    %c0_i32_1 = arith.constant 0 : i32
    return %c0_i32, %c0_i32_0 : i32, i32
  }
  func.func @transform_3(%arg0: i32) -> (i32, i32) {
    %c0_i32 = arith.constant 0 : i32
    %c0_i32_0 = arith.constant 0 : i32
    %c0_i32_1 = arith.constant 0 : i32
    return %c0_i32, %c0_i32_0 : i32, i32
  }
  func.func @transform_4(%arg0: i32) -> (i32, i32) {
    %c0_i32 = arith.constant 0 : i32
    %c0_i32_0 = arith.constant 0 : i32
    %c0_i32_1 = arith.constant 0 : i32
    return %c0_i32, %c0_i32_0 : i32, i32
  }
  func.func @transform_5(%arg0: i32) -> (i32, i32) {
    %c0_i32 = arith.constant 0 : i32
    %c0_i32_0 = arith.constant 0 : i32
    %c0_i32_1 = arith.constant 0 : i32
    return %c0_i32, %c0_i32_0 : i32, i32
  }
}

</mosaic_0001>

<bundles_post_ra>
// kernel: _lambda_.18
= control target key start
LH: loop header
LB: loop body
LE: loop exit
PB: predicated region body
PF: predicated region fallthrough
CT: control target
= control target key end

     0   :  { %s705_s12 = smov 0   ;;  %s888_s0 = inlined_call_operand.vmem [shape: f32[512,24], index: 0, kind: input, shape index: {}]   ;;  %s889_s1 = inlined_call_operand.vmem [shape: bf16[24,58], index: 1, kind: input, shape index: {}]   ;;  %s890_s2 = inlined_call_operand.vmem [shape: f32[1,58], index: 2, kind: input, shape index: {}]   ;;  %s891_s3 = inlined_call_operand.vmem [shape: f32[512,58], index: 3, kind: output, shape index: {}]  }
   0x1 LB: > { %s577_s13 = sadd.s32 4294967295, %s683_s12   ;;  %p581_p0 = scmp.ge.s32.totalorder %s683_s12, 1  ;;  %s683_s12 = sphi %s705_s12, %s13_s12  }
   0x2   : > { %p138_p1 = scmp.lt.s32.totalorder %s683_s12, 3 }
   0x4   : > { %p139_p2 = pnand %p581_p0, %p138_p1 }
   0x5   : > { %v675_v0 = vld [vmem:[%s889_s1] sm:$0xff] (!%p139_p2)   ;;  %v676_v1 = vld [vmem:[%s889_s1 + $0x8] ss:$0 sps:$4 sm:$0xff] (!%p139_p2)   ;;  %vm291_vm0 = vcmask (!%p139_p2), 1043456   ;;  %s582_s18 = sshll.u32 (!%p139_p2), %s577_s13, 5  ;;  %vm242_vm1 = vcmask (!%p139_p2), 195584  }
   0x6   : > { %142 = sbr.rel (%p139_p2) target bundleno = 265 (0x109), region = 32  ;;  %625 = vmatprep.subr.bf16.mxu0 (!%p139_p2), %v675_v0  ;;  %661 = vmatprep.subr.bf16.mxu1 (!%p139_p2), %v675_v0  ;;  %p163_p3 = scmp.lt.s32.totalorder (!%p139_p2), %s582_s18, 63  ;;  %v293_v2 = vsel (!%p139_p2), %vm291_vm0, %v676_v1, 0  ;;  %v780_v51 = vld [vmem:[%s890_s2] ss:$0 sm:$0xff] (!%p139_p2)  ;;  %vm488_vm2 = vcmask (!%p139_p2), 474112  }
   0x7   : > { %626 = vmatpush3.bf16.msra.mxu0 (!%p139_p2), %v675_v0  ;;  %663 = vmatpush3.bf16.msra.mxu1 (!%p139_p2), %v675_v0 }
   0x8   : > { %665 = vmatprep.subr.msk.bf16.mxu0 (!%p139_p2), %vm291_vm0, %v676_v1  ;;  %666 = vmatprep.subr.msk.bf16.mxu1 (!%p139_p2), %vm291_vm0, %v676_v1 }
   0xb   : > { %628 = vmatpush3.bf16.msra.mxu0 (!%p139_p2), %v293_v2  ;;  %664 = vmatpush3.bf16.msra.mxu1 (!%p139_p2), %v293_v2 }
   0xd   : > { %s893_s18 = smov (!%p163_p3, %s582_s18), 63 }
   0xe   : > { %s583_s19 = sshll.u32 %s893_s18, 3 }
   0xf   : > { %s727_s22 = scalar_lea.vmem %s888_s0, %s583_s19  ;;  %s788_s27 = scalar_lea.vmem %s891_s3, %s583_s19 }
  0x10   : > { %v175_v3 = vld [vmem:[%s727_s22] sm:$0xff]  ;;  %v176_v4 = vld [vmem:[%s727_s22 + $0x8] sm:$0xff]  ;;  %v177_v8 = vld [vmem:[%s727_s22 + $0x10] sm:$0xff] }
  0x11   : > { %v191_v5 = vld [vmem:[%s727_s22 + $0x80] sm:$0xff]  ;;  %v207_v6 = vpack.c.bf16 %v176_v4, %v175_v3  ;;  %v192_v7 = vld [vmem:[%s727_s22 + $0x88] sm:$0xff]  ;;  %v178_v9 = vld [vmem:[%s727_s22 + $0x18] sm:$0xff] }
  0x12   : > { %v215_v10 = vpack.c.bf16 %v192_v7, %v191_v5  ;;  %v208_v11 = vpack.c.bf16 %v178_v9, %v177_v8  ;;  %v193_v12 = vld [vmem:[%s727_s22 + $0x90] sm:$0xff]  ;;  %v194_v13 = vld [vmem:[%s727_s22 + $0x98] sm:$0xff]  ;;  %v179_v14 = vld [vmem:[%s727_s22 + $0x20] sm:$0xff] }
  0x13   : > { %629 = vmatprep.mubr.msk.bf16.mxu0 %vm242_vm1, %v207_v6  ;;  %v216_v15 = vpack.c.bf16 %v194_v13, %v193_v12  ;;  %v180_v16 = vld [vmem:[%s727_s22 + $0x28] sm:$0xff]  ;;  %v195_v17 = vld [vmem:[%s727_s22 + $0xa0] sm:$0xff]  ;;  %v181_v21 = vld [vmem:[%s727_s22 + $0x30] sm:$0xff] }
  0x14   : > { %v196_v18 = vld [vmem:[%s727_s22 + $0xa8] sm:$0xff]  ;;  %645 = vmatprep.mubr.msk.bf16.mxu1 %vm242_vm1, %v215_v10  ;;  %630 = vmatmul.mubr.msk.bf16.vlgmr.msra.gmra.mrb[0].mxu0 %vm242_vm1, %v208_v11  ;;  %v209_v19 = vpack.c.bf16 %v180_v16, %v179_v14  ;;  %v182_v22 = vld [vmem:[%s727_s22 + $0x38] sm:$0xff]  ;;  %v197_v23 = vld [vmem:[%s727_s22 + $0xb0] sm:$0xff] }
  0x15   : > { %v217_v20 = vpack.c.bf16 %v196_v18, %v195_v17  ;;  %646 = vmatmul.mubr.msk.bf16.vlgmr.msra.gmra.mrb[0].mxu1 %vm242_vm1, %v216_v15  ;;  %v198_v24 = vld [vmem:[%s727_s22 + $0xb8] sm:$0xff]  ;;  %v183_v25 = vld [vmem:[%s727_s22 + $0x40] sm:$0xff]  ;;  %v184_v26 = vld [vmem:[%s727_s22 + $0x48] sm:$0xff]  ;;  %v210_v29 = vpack.c.bf16 %v182_v22, %v181_v21 }
  0x16   : > { %633 = vmatprep.mubr.msk.bf16.mxu0 %vm242_vm1, %v209_v19  ;;  %v199_v27 = vld [vmem:[%s727_s22 + $0xc0] sm:$0xff]  ;;  %v200_v28 = vld [vmem:[%s727_s22 + $0xc8] sm:$0xff]  ;;  %v218_v30 = vpack.c.bf16 %v198_v24, %v197_v23  ;;  %v211_v31 = vpack.c.bf16 %v184_v26, %v183_v25  ;;  %v185_v33 = vld [vmem:[%s727_s22 + $0x50] sm:$0xff] }
  0x17   : > { %649 = vmatprep.mubr.msk.bf16.mxu1 %vm242_vm1, %v217_v20  ;;  %v219_v32 = vpack.c.bf16 %v200_v28, %v199_v27  ;;  %v186_v34 = vld [vmem:[%s727_s22 + $0x58] sm:$0xff]  ;;  %v201_v35 = vld [vmem:[%s727_s22 + $0xd0] sm:$0xff]  ;;  %v187_v37 = vld [vmem:[%s727_s22 + $0x60] sm:$0xff] }
  0x18   : > { %v202_v36 = vld [vmem:[%s727_s22 + $0xd8] sm:$0xff]  ;;  %v188_v38 = vld [vmem:[%s727_s22 + $0x68] sm:$0xff]  ;;  %v203_v39 = vld [vmem:[%s727_s22 + $0xe0] sm:$0xff]  ;;  %v212_v41 = vpack.c.bf16 %v186_v34, %v185_v33 }
  0x19   : > { %v204_v40 = vld [vmem:[%s727_s22 + $0xe8] sm:$0xff]  ;;  %v220_v42 = vpack.c.bf16 %v202_v36, %v201_v35  ;;  %v213_v43 = vpack.c.bf16 %v188_v38, %v187_v37  ;;  %v189_v45 = vld [vmem:[%s727_s22 + $0x70] sm:$0xff]  ;;  %v190_v46 = vld [vmem:[%s727_s22 + $0x78] sm:$0xff] }
  0x1a   : > { %v221_v44 = vpack.c.bf16 %v204_v40, %v203_v39  ;;  %v205_v47 = vld [vmem:[%s727_s22 + $0xf0] sm:$0xff]  ;;  %v206_v48 = vld [vmem:[%s727_s22 + $0xf8] sm:$0xff]  ;;  %v214_v49 = vpack.c.bf16 %v190_v46, %v189_v45 }
  0x1b   : > { %v222_v50 = vpack.c.bf16 %v206_v48, %v205_v47 }
  0x1c   : > { %634 = vmatmul.mubr.msk.bf16.gmra.mrb[4].mxu0 %vm242_vm1, %v210_v29 }
  0x1d   : > { %650 = vmatmul.mubr.msk.bf16.gmra.mrb[4].mxu1 %vm242_vm1, %v218_v30  ;;  %637 = vmatprep.mubr.msk.bf16.mxu0 %vm242_vm1, %v211_v31 }
  0x1e   : > { %653 = vmatprep.mubr.msk.bf16.mxu1 %vm242_vm1, %v219_v32 }
  0x24   : > { %638 = vmatmul.mubr.msk.bf16.gmra.mrb[8].mxu0 %vm242_vm1, %v212_v41 }
  0x25   : > { %654 = vmatmul.mubr.msk.bf16.gmra.mrb[8].mxu1 %vm242_vm1, %v220_v42  ;;  %641 = vmatprep.mubr.msk.bf16.mxu0 %vm242_vm1, %v213_v43 }
  0x26   : > { %657 = vmatprep.mubr.msk.bf16.mxu1 %vm242_vm1, %v221_v44 }
  0x2c   : > { %642 = vmatmul.mubr.msk.bf16.gmra.mrb[12].mxu0 %vm242_vm1, %v214_v49 }
  0x2d   : > { %658 = vmatmul.mubr.msk.bf16.gmra.mrb[12].mxu1 %vm242_vm1, %v222_v50 }
  0xe7   : > { %v631_v52 = vpop.f32.mrb[0].mxu0 }
  0xe8   : > { %v338_v53 = vadd.f32 %v631_v52, %v780_v51  ;;  %v647_v54 = vpop.f32.mrb[0].mxu1  ;;  %v329_v55 = vpop.f32.mrb[1].mxu0 }
  0xe9   : > { %v402_v56 = vadd.f32 %v647_v54, %v780_v51  ;;  %v330_v57 = vadd.f32 %v780_v51, %v329_v55  ;;  %v393_v58 = vpop.f32.mrb[1].mxu1  ;;  %v632_v59 = vpop.f32.mrb[2].mxu0 }
  0xea   : > { %v458_v60 = vmax.f32 %v338_v53, 0.0  ;;  %v394_v61 = vadd.f32 %v780_v51, %v393_v58  ;;  %v341_v62 = vadd.f32 %v632_v59, %v780_v51  ;;  %v648_v63 = vpop.f32.mrb[2].mxu1  ;;  %v332_v0 = vpop.f32.mrb[3].mxu0 }
  0xeb   : > { %v474_v1 = vmax.f32 %v402_v56, 0.0  ;;  %v456_v2 = vmax.f32 %v330_v57, 0.0  ;;  %v405_v3 = vadd.f32 %v648_v63, %v780_v51  ;;  %v333_v4 = vadd.f32 %v780_v51, %v332_v0  ;;  %v396_v5 = vpop.f32.mrb[3].mxu1 }
  0xec   : > { %491 = vst.msk [vmem:[%s788_s27 + $0x10] sm:$0xff] %vm488_vm2, %v458_v60  ;;  %v472_v6 = vmax.f32 %v394_v61, 0.0  ;;  %v459_v7 = vmax.f32 %v341_v62, 0.0  ;;  %v397_v8 = vadd.f32 %v780_v51, %v396_v5 }
  0xed   : > { %507 = vst.msk [vmem:[%s788_s27 + $0x90] sm:$0xff] %vm488_vm2, %v474_v1  ;;  %489 = vst.msk [vmem:[%s788_s27] sm:$0xff] %vm488_vm2, %v456_v2  ;;  %v475_v9 = vmax.f32 %v405_v3, 0.0  ;;  %v457_v10 = vmax.f32 %v333_v4, 0.0 }
  0xee   : > { %505 = vst.msk [vmem:[%s788_s27 + $0x80] sm:$0xff] %vm488_vm2, %v472_v6  ;;  %492 = vst.msk [vmem:[%s788_s27 + $0x18] sm:$0xff] %vm488_vm2, %v459_v7  ;;  %v473_v11 = vmax.f32 %v397_v8, 0.0 }
  0xef   : > { %508 = vst.msk [vmem:[%s788_s27 + $0x98] sm:$0xff] %vm488_vm2, %v475_v9  ;;  %490 = vst.msk [vmem:[%s788_s27 + $0x8] sm:$0xff] %vm488_vm2, %v457_v10  ;;  %v635_v12 = vpop.f32.mrb[4].mxu0 }
  0xf0   : > { %506 = vst.msk [vmem:[%s788_s27 + $0x88] sm:$0xff] %vm488_vm2, %v473_v11  ;;  %v354_v13 = vadd.f32 %v635_v12, %v780_v51  ;;  %v651_v14 = vpop.f32.mrb[4].mxu1  ;;  %v345_v15 = vpop.f32.mrb[5].mxu0 }
  0xf1   : > { %v418_v16 = vadd.f32 %v651_v14, %v780_v51  ;;  %v346_v17 = vadd.f32 %v780_v51, %v345_v15  ;;  %v409_v18 = vpop.f32.mrb[5].mxu1  ;;  %v636_v19 = vpop.f32.mrb[6].mxu0 }
  0xf2   : > { %v462_v20 = vmax.f32 %v354_v13, 0.0  ;;  %v410_v21 = vadd.f32 %v780_v51, %v409_v18  ;;  %v357_v22 = vadd.f32 %v636_v19, %v780_v51  ;;  %v652_v23 = vpop.f32.mrb[6].mxu1  ;;  %v348_v24 = vpop.f32.mrb[7].mxu0 }
  0xf3   : > { %v478_v25 = vmax.f32 %v418_v16, 0.0  ;;  %v460_v26 = vmax.f32 %v346_v17, 0.0  ;;  %v421_v27 = vadd.f32 %v652_v23, %v780_v51  ;;  %v349_v28 = vadd.f32 %v780_v51, %v348_v24  ;;  %v412_v29 = vpop.f32.mrb[7].mxu1 }
  0xf4   : > { %495 = vst.msk [vmem:[%s788_s27 + $0x30] sm:$0xff] %vm488_vm2, %v462_v20  ;;  %v476_v30 = vmax.f32 %v410_v21, 0.0  ;;  %v463_v31 = vmax.f32 %v357_v22, 0.0  ;;  %v413_v32 = vadd.f32 %v780_v51, %v412_v29 }
  0xf5   : > { %511 = vst.msk [vmem:[%s788_s27 + $0xb0] sm:$0xff] %vm488_vm2, %v478_v25  ;;  %493 = vst.msk [vmem:[%s788_s27 + $0x20] sm:$0xff] %vm488_vm2, %v460_v26  ;;  %v479_v33 = vmax.f32 %v421_v27, 0.0  ;;  %v461_v34 = vmax.f32 %v349_v28, 0.0 }
  0xf6   : > { %509 = vst.msk [vmem:[%s788_s27 + $0xa0] sm:$0xff] %vm488_vm2, %v476_v30  ;;  %496 = vst.msk [vmem:[%s788_s27 + $0x38] sm:$0xff] %vm488_vm2, %v463_v31  ;;  %v477_v35 = vmax.f32 %v413_v32, 0.0 }
  0xf7   : > { %512 = vst.msk [vmem:[%s788_s27 + $0xb8] sm:$0xff] %vm488_vm2, %v479_v33  ;;  %494 = vst.msk [vmem:[%s788_s27 + $0x28] sm:$0xff] %vm488_vm2, %v461_v34  ;;  %v639_v36 = vpop.f32.mrb[8].mxu0 }
  0xf8   : > { %510 = vst.msk [vmem:[%s788_s27 + $0xa8] sm:$0xff] %vm488_vm2, %v477_v35  ;;  %v370_v37 = vadd.f32 %v639_v36, %v780_v51  ;;  %v655_v38 = vpop.f32.mrb[8].mxu1  ;;  %v361_v39 = vpop.f32.mrb[9].mxu0 }
  0xf9   : > { %v434_v40 = vadd.f32 %v655_v38, %v780_v51  ;;  %v362_v41 = vadd.f32 %v780_v51, %v361_v39  ;;  %v425_v42 = vpop.f32.mrb[9].mxu1  ;;  %v640_v43 = vpop.f32.mrb[10].mxu0 }
  0xfa   : > { %v466_v44 = vmax.f32 %v370_v37, 0.0  ;;  %v426_v45 = vadd.f32 %v780_v51, %v425_v42  ;;  %v373_v46 = vadd.f32 %v640_v43, %v780_v51  ;;  %v656_v47 = vpop.f32.mrb[10].mxu1  ;;  %v364_v48 = vpop.f32.mrb[11].mxu0 }
  0xfb   : > { %v482_v49 = vmax.f32 %v434_v40, 0.0  ;;  %v464_v50 = vmax.f32 %v362_v41, 0.0  ;;  %v437_v52 = vadd.f32 %v656_v47, %v780_v51  ;;  %v365_v53 = vadd.f32 %v780_v51, %v364_v48  ;;  %v428_v54 = vpop.f32.mrb[11].mxu1 }
  0xfc   : > { %499 = vst.msk [vmem:[%s788_s27 + $0x50] sm:$0xff] %vm488_vm2, %v466_v44  ;;  %v480_v55 = vmax.f32 %v426_v45, 0.0  ;;  %v467_v56 = vmax.f32 %v373_v46, 0.0  ;;  %v429_v57 = vadd.f32 %v780_v51, %v428_v54 }
  0xfd   : > { %515 = vst.msk [vmem:[%s788_s27 + $0xd0] sm:$0xff] %vm488_vm2, %v482_v49  ;;  %497 = vst.msk [vmem:[%s788_s27 + $0x40] sm:$0xff] %vm488_vm2, %v464_v50  ;;  %v483_v58 = vmax.f32 %v437_v52, 0.0  ;;  %v465_v59 = vmax.f32 %v365_v53, 0.0 }
  0xfe   : > { %513 = vst.msk [vmem:[%s788_s27 + $0xc0] sm:$0xff] %vm488_vm2, %v480_v55  ;;  %500 = vst.msk [vmem:[%s788_s27 + $0x58] sm:$0xff] %vm488_vm2, %v467_v56  ;;  %v481_v60 = vmax.f32 %v429_v57, 0.0 }
  0xff   : > { %516 = vst.msk [vmem:[%s788_s27 + $0xd8] sm:$0xff] %vm488_vm2, %v483_v58  ;;  %498 = vst.msk [vmem:[%s788_s27 + $0x48] sm:$0xff] %vm488_vm2, %v465_v59  ;;  %v643_v61 = vpop.f32.mrb[12].mxu0 }
 0x100   : > { %514 = vst.msk [vmem:[%s788_s27 + $0xc8] sm:$0xff] %vm488_vm2, %v481_v60  ;;  %v386_v62 = vadd.f32 %v643_v61, %v780_v51  ;;  %v659_v63 = vpop.f32.mrb[12].mxu1  ;;  %v377_v0 = vpop.f32.mrb[13].mxu0 }
 0x101   : > { %v450_v1 = vadd.f32 %v659_v63, %v780_v51  ;;  %v378_v2 = vadd.f32 %v780_v51, %v377_v0  ;;  %v441_v3 = vpop.f32.mrb[13].mxu1  ;;  %v644_v4 = vpop.f32.mrb[14].mxu0 }
 0x102   : > { %v470_v5 = vmax.f32 %v386_v62, 0.0  ;;  %v442_v6 = vadd.f32 %v780_v51, %v441_v3  ;;  %v389_v7 = vadd.f32 %v644_v4, %v780_v51  ;;  %v660_v8 = vpop.f32.mrb[14].mxu1  ;;  %v380_v9 = vpop.f32.mrb[15].mxu0 }
 0x103   : > { %v486_v10 = vmax.f32 %v450_v1, 0.0  ;;  %v468_v11 = vmax.f32 %v378_v2, 0.0  ;;  %v453_v12 = vadd.f32 %v660_v8, %v780_v51  ;;  %v381_v13 = vadd.f32 %v780_v51, %v380_v9  ;;  %v444_v14 = vpop.f32.mrb[15].mxu1 }
 0x104   : > { %503 = vst.msk [vmem:[%s788_s27 + $0x70] sm:$0xff] %vm488_vm2, %v470_v5  ;;  %v484_v15 = vmax.f32 %v442_v6, 0.0  ;;  %v471_v16 = vmax.f32 %v389_v7, 0.0  ;;  %v445_v17 = vadd.f32 %v780_v51, %v444_v14 }
 0x105   : > { %519 = vst.msk [vmem:[%s788_s27 + $0xf0] sm:$0xff] %vm488_vm2, %v486_v10  ;;  %501 = vst.msk [vmem:[%s788_s27 + $0x60] sm:$0xff] %vm488_vm2, %v468_v11  ;;  %v487_v18 = vmax.f32 %v453_v12, 0.0  ;;  %v469_v19 = vmax.f32 %v381_v13, 0.0 }
 0x106   : > { %517 = vst.msk [vmem:[%s788_s27 + $0xe0] sm:$0xff] %vm488_vm2, %v484_v15  ;;  %504 = vst.msk [vmem:[%s788_s27 + $0x78] sm:$0xff] %vm488_vm2, %v471_v16  ;;  %v485_v20 = vmax.f32 %v445_v17, 0.0 }
 0x107   : > { %520 = vst.msk [vmem:[%s788_s27 + $0xf8] sm:$0xff] %vm488_vm2, %v487_v18  ;;  %502 = vst.msk [vmem:[%s788_s27 + $0x68] sm:$0xff] %vm488_vm2, %v469_v19 }
 0x108   : > { %518 = vst.msk [vmem:[%s788_s27 + $0xe8] sm:$0xff] %vm488_vm2, %v485_v20 }
 0x109 PF: > { %s13_s12 = sadd.s32 1, %s683_s12  }
 0x10a   : > { %p10_p4 = scmp.ge.s32.totalorder %s13_s12, 4  }
 0x10c   :  { %12 = sbr.rel (!%p10_p4) target bundleno = 1 (0x1), region = 62 }

// kernel: _lambda_.19
= control target key start
LH: loop header
LB: loop body
LE: loop exit
PB: predicated region body
PF: predicated region fallthrough
CT: control target
= control target key end

     0   :  { %s473_s12 = smov 0   ;;  %s524_s0 = inlined_call_operand.vmem [shape: f32[128,58], index: 0, kind: input, shape index: {}]   ;;  %s525_s1 = inlined_call_operand.vmem [shape: bf16[58,58], index: 1, kind: input, shape index: {}]   ;;  %s526_s2 = inlined_call_operand.vmem [shape: f32[1,58], index: 2, kind: input, shape index: {}]   ;;  %s527_s3 = inlined_call_operand.vmem [shape: f32[128,58], index: 3, kind: output, shape index: {}]  }
   0x1 LB: > { %s379_s13 = sadd.s32 4294967295, %s451_s12   ;;  %p383_p0 = scmp.ge.s32.totalorder %s451_s12, 1  ;;  %s451_s12 = sphi %s473_s12, %s13_s12  }
   0x2   : > { %p138_p1 = scmp.lt.s32.totalorder %s451_s12, 3 }
   0x4   : > { %p139_p2 = pnand %p383_p0, %p138_p1 }
   0x5   : > { %v441_v0 = vld [vmem:[%s525_s1] sm:$0xff] (!%p139_p2)   ;;  %v442_v1 = vld [vmem:[%s525_s1 + $0x8] sm:$0xff] (!%p139_p2)   ;;  %s384_s18 = sshll.u32 (!%p139_p2), %s379_s13, 3  ;;  %v443_v2 = vld [vmem:[%s525_s1 + $0x10] sm:$0xff] (!%p139_p2)   ;;  %vm238_vm0 = vcmask (!%p139_p2), 1044480   ;;  %vm225_vm1 = vcmask (!%p139_p2), 474112  }
   0x6   : > { %142 = sbr.rel (%p139_p2) target bundleno = 243 (0xf3), region = 32  ;;  %407 = vmatprep.subr.bf16.mxu0 (!%p139_p2), %v441_v0  ;;  %423 = vmatprep.subr.bf16.mxu1 (!%p139_p2), %v441_v0  ;;  %p163_p3 = scmp.lt.s32.totalorder (!%p139_p2), %s384_s18, 15  ;;  %v444_v3 = vld [vmem:[%s525_s1 + $0x18] sm:$0x1f] (!%p139_p2)   ;;  %v388_v17 = vld [vmem:[%s526_s2] ss:$0 sm:$0xff] (!%p139_p2) }
   0x7   : > { %408 = vmatpush3.bf16.msra.mxu0 (!%p139_p2), %v441_v0  ;;  %427 = vmatpush3.bf16.msra.mxu1 (!%p139_p2), %v441_v0  ;;  %v240_v14 = vsel (!%p139_p2), %vm238_vm0, %v444_v3, 0 }
   0x8   : > { %409 = vmatprep.subr.bf16.mxu0 (!%p139_p2), %v442_v1  ;;  %424 = vmatprep.subr.bf16.mxu1 (!%p139_p2), %v442_v1 }
   0xb   : > { %410 = vmatpush3.bf16.msra.mxu0 (!%p139_p2), %v442_v1  ;;  %428 = vmatpush3.bf16.msra.mxu1 (!%p139_p2), %v442_v1 }
   0xc   : > { %411 = vmatprep.subr.bf16.mxu0 (!%p139_p2), %v443_v2  ;;  %425 = vmatprep.subr.bf16.mxu1 (!%p139_p2), %v443_v2 }
   0xd   : > { %s529_s18 = smov (!%p163_p3, %s384_s18), 15 }
   0xe   : > { %s385_s21 = sshll.u32 %s529_s18, 3 }
   0xf   : > { %s166_s26 = scalar_lea.vmem %s524_s0, %s385_s21  ;;  %412 = vmatpush3.bf16.msra.mxu0 %v443_v2  ;;  %429 = vmatpush3.bf16.msra.mxu1 %v443_v2  ;;  %s172_s4 = scalar_lea.vmem %s527_s3, %s385_s21 }
  0x10   : > { %v175_v4 = vld [vmem:[%s166_s26] sm:$0xff]  ;;  %v176_v5 = vld [vmem:[%s166_s26 + $0x8] sm:$0xff]  ;;  %v177_v10 = vld [vmem:[%s166_s26 + $0x10] sm:$0xff]  ;;  %431 = vmatprep.subr.msk.bf16.mxu0 %vm238_vm0, %v444_v3  ;;  %432 = vmatprep.subr.msk.bf16.mxu1 %vm238_vm0, %v444_v3 }
  0x11   : > { %v179_v6 = vld [vmem:[%s166_s26 + $0x20] sm:$0xff]  ;;  %v183_v7 = vpack.c.bf16 %v176_v5, %v175_v4  ;;  %v180_v8 = vld [vmem:[%s166_s26 + $0x28] sm:$0xff]  ;;  %v178_v11 = vld [vmem:[%s166_s26 + $0x18] sm:$0xff] }
  0x12   : > { %v185_v9 = vpack.c.bf16 %v180_v8, %v179_v6  ;;  %v181_v12 = vld [vmem:[%s166_s26 + $0x30] sm:$0xff]  ;;  %v182_v13 = vld [vmem:[%s166_s26 + $0x38] sm:$0xff]  ;;  %v184_v15 = vpack.c.bf16 %v178_v11, %v177_v10 }
  0x13   : > { %415 = vmatprep.mubr.msk.bf16.mxu0 %vm225_vm1, %v183_v7  ;;  %v186_v16 = vpack.c.bf16 %v182_v13, %v181_v12  ;;  %414 = vmatpush3.bf16.msra.mxu0 %v240_v14 }
  0x14   : > { %419 = vmatprep.mubr.msk.bf16.mxu1 %vm225_vm1, %v185_v9  ;;  %430 = vmatpush3.bf16.msra.mxu1 %v240_v14 }
  0x16   : > { %416 = vmatmul.mubr.msk.bf16.vlgmr.msra.gmra.mrb[0].mxu0 %vm225_vm1, %v184_v15 }
  0x17   : > { %420 = vmatmul.mubr.msk.bf16.vlgmr.msra.gmra.mrb[0].mxu1 %vm225_vm1, %v186_v16 }
  0xe9   : > { %v417_v18 = vpop.f32.mrb[0].mxu0 }
  0xea   : > { %v421_v19 = vpop.f32.mrb[0].mxu1  ;;  %v285_v20 = vadd.f32 %v417_v18, %v388_v17  ;;  %v276_v22 = vpop.f32.mrb[1].mxu0 }
  0xeb   : > { %v301_v21 = vadd.f32 %v421_v19, %v388_v17  ;;  %v292_v23 = vpop.f32.mrb[1].mxu1  ;;  %v277_v24 = vadd.f32 %v388_v17, %v276_v22  ;;  %v418_v26 = vpop.f32.mrb[2].mxu0 }
  0xec   : > { %v293_v25 = vadd.f32 %v388_v17, %v292_v23  ;;  %v422_v27 = vpop.f32.mrb[2].mxu1  ;;  %v309_v28 = vmax.f32 %v285_v20, 0.0  ;;  %v288_v30 = vadd.f32 %v418_v26, %v388_v17  ;;  %v279_v32 = vpop.f32.mrb[3].mxu0 }
  0xed   : > { %v313_v29 = vmax.f32 %v301_v21, 0.0  ;;  %v304_v31 = vadd.f32 %v422_v27, %v388_v17  ;;  %v295_v33 = vpop.f32.mrb[3].mxu1  ;;  %v307_v34 = vmax.f32 %v277_v24, 0.0  ;;  %v280_v36 = vadd.f32 %v388_v17, %v279_v32 }
  0xee   : > { %v311_v35 = vmax.f32 %v293_v25, 0.0  ;;  %v296_v37 = vadd.f32 %v388_v17, %v295_v33  ;;  %317 = vst.msk [vmem:[%s172_s4 + $0x10] sm:$0xff] %vm225_vm1, %v309_v28  ;;  %v310_v38 = vmax.f32 %v288_v30, 0.0 }
  0xef   : > { %321 = vst.msk [vmem:[%s172_s4 + $0x30] sm:$0xff] %vm225_vm1, %v313_v29  ;;  %v314_v39 = vmax.f32 %v304_v31, 0.0  ;;  %315 = vst.msk [vmem:[%s172_s4] sm:$0xff] %vm225_vm1, %v307_v34  ;;  %v308_v40 = vmax.f32 %v280_v36, 0.0 }
  0xf0   : > { %319 = vst.msk [vmem:[%s172_s4 + $0x20] sm:$0xff] %vm225_vm1, %v311_v35  ;;  %v312_v41 = vmax.f32 %v296_v37, 0.0  ;;  %318 = vst.msk [vmem:[%s172_s4 + $0x18] sm:$0xff] %vm225_vm1, %v310_v38 }
  0xf1   : > { %322 = vst.msk [vmem:[%s172_s4 + $0x38] sm:$0xff] %vm225_vm1, %v314_v39  ;;  %316 = vst.msk [vmem:[%s172_s4 + $0x8] sm:$0xff] %vm225_vm1, %v308_v40 }
  0xf2   : > { %320 = vst.msk [vmem:[%s172_s4 + $0x28] sm:$0xff] %vm225_vm1, %v312_v41 }
  0xf3 PF: > { %s13_s12 = sadd.s32 1, %s451_s12  }
  0xf4   : > { %p10_p4 = scmp.ge.s32.totalorder %s13_s12, 4  }
  0xf6   :  { %12 = sbr.rel (!%p10_p4) target bundleno = 1 (0x1), region = 62 }

// kernel: _lambda_.17
= control target key start
LH: loop header
LB: loop body
LE: loop exit
PB: predicated region body
PF: predicated region fallthrough
CT: control target
= control target key end

     0   :  { %s441_s12 = smov 0   ;;  %s475_s0 = inlined_call_operand.vmem [shape: f32[128,24], index: 0, kind: input, shape index: {}]   ;;  %s476_s1 = inlined_call_operand.vmem [shape: bf16[24,58], index: 1, kind: input, shape index: {}]   ;;  %s477_s2 = inlined_call_operand.vmem [shape: f32[1,58], index: 2, kind: input, shape index: {}]   ;;  %s478_s3 = inlined_call_operand.vmem [shape: f32[128,58], index: 3, kind: output, shape index: {}]  }
   0x1 LB: > { %s361_s13 = sadd.s32 4294967295, %s419_s12   ;;  %p365_p0 = scmp.ge.s32.totalorder %s419_s12, 1  ;;  %s419_s12 = sphi %s441_s12, %s13_s12  }
   0x2   : > { %p138_p1 = scmp.lt.s32.totalorder %s419_s12, 3 }
   0x4   : > { %p139_p2 = pnand %p365_p0, %p138_p1 }
   0x5   : > { %v411_v0 = vld [vmem:[%s476_s1] sm:$0xff] (!%p139_p2)   ;;  %v412_v1 = vld [vmem:[%s476_s1 + $0x8] ss:$0 sps:$4 sm:$0xff] (!%p139_p2)   ;;  %vm219_vm0 = vcmask (!%p139_p2), 1043456   ;;  %s366_s18 = sshll.u32 (!%p139_p2), %s361_s13, 3  ;;  %vm206_vm1 = vcmask (!%p139_p2), 195584  }
   0x6   : > { %142 = sbr.rel (%p139_p2) target bundleno = 241 (0xf1), region = 32  ;;  %385 = vmatprep.subr.bf16.mxu0 (!%p139_p2), %v411_v0  ;;  %397 = vmatprep.subr.bf16.mxu1 (!%p139_p2), %v411_v0  ;;  %p163_p3 = scmp.lt.s32.totalorder (!%p139_p2), %s366_s18, 15  ;;  %v221_v2 = vsel (!%p139_p2), %vm219_vm0, %v412_v1, 0  ;;  %v370_v15 = vld [vmem:[%s477_s2] ss:$0 sm:$0xff] (!%p139_p2)  ;;  %vm296_vm2 = vcmask (!%p139_p2), 474112  }
   0x7   : > { %386 = vmatpush3.bf16.msra.mxu0 (!%p139_p2), %v411_v0  ;;  %399 = vmatpush3.bf16.msra.mxu1 (!%p139_p2), %v411_v0 }
   0x8   : > { %401 = vmatprep.subr.msk.bf16.mxu0 (!%p139_p2), %vm219_vm0, %v412_v1  ;;  %402 = vmatprep.subr.msk.bf16.mxu1 (!%p139_p2), %vm219_vm0, %v412_v1 }
   0xb   : > { %388 = vmatpush3.bf16.msra.mxu0 (!%p139_p2), %v221_v2  ;;  %400 = vmatpush3.bf16.msra.mxu1 (!%p139_p2), %v221_v2 }
   0xd   : > { %s480_s18 = smov (!%p163_p3, %s366_s18), 15 }
   0xe   : > { %s367_s19 = sshll.u32 %s480_s18, 3 }
   0xf   : > { %s166_s22 = scalar_lea.vmem %s475_s0, %s367_s19  ;;  %s172_s27 = scalar_lea.vmem %s478_s3, %s367_s19 }
  0x10   : > { %v175_v3 = vld [vmem:[%s166_s22] sm:$0xff]  ;;  %v176_v4 = vld [vmem:[%s166_s22 + $0x8] sm:$0xff]  ;;  %v177_v8 = vld [vmem:[%s166_s22 + $0x10] sm:$0xff] }
  0x11   : > { %v179_v5 = vld [vmem:[%s166_s22 + $0x20] sm:$0xff]  ;;  %v183_v6 = vpack.c.bf16 %v176_v4, %v175_v3  ;;  %v180_v7 = vld [vmem:[%s166_s22 + $0x28] sm:$0xff]  ;;  %v178_v9 = vld [vmem:[%s166_s22 + $0x18] sm:$0xff] }
  0x12   : > { %v185_v10 = vpack.c.bf16 %v180_v7, %v179_v5  ;;  %v184_v11 = vpack.c.bf16 %v178_v9, %v177_v8  ;;  %v181_v12 = vld [vmem:[%s166_s22 + $0x30] sm:$0xff]  ;;  %v182_v13 = vld [vmem:[%s166_s22 + $0x38] sm:$0xff] }
  0x13   : > { %389 = vmatprep.mubr.msk.bf16.mxu0 %vm206_vm1, %v183_v6  ;;  %v186_v14 = vpack.c.bf16 %v182_v13, %v181_v12 }
  0x14   : > { %393 = vmatprep.mubr.msk.bf16.mxu1 %vm206_vm1, %v185_v10  ;;  %390 = vmatmul.mubr.msk.bf16.vlgmr.msra.gmra.mrb[0].mxu0 %vm206_vm1, %v184_v11 }
  0x15   : > { %394 = vmatmul.mubr.msk.bf16.vlgmr.msra.gmra.mrb[0].mxu1 %vm206_vm1, %v186_v14 }
  0xe7   : > { %v391_v16 = vpop.f32.mrb[0].mxu0 }
  0xe8   : > { %v266_v17 = vadd.f32 %v391_v16, %v370_v15  ;;  %v395_v18 = vpop.f32.mrb[0].mxu1  ;;  %v257_v19 = vpop.f32.mrb[1].mxu0 }
  0xe9   : > { %v282_v20 = vadd.f32 %v395_v18, %v370_v15  ;;  %v258_v21 = vadd.f32 %v370_v15, %v257_v19  ;;  %v273_v22 = vpop.f32.mrb[1].mxu1  ;;  %v392_v23 = vpop.f32.mrb[2].mxu0 }
  0xea   : > { %v290_v24 = vmax.f32 %v266_v17, 0.0  ;;  %v274_v25 = vadd.f32 %v370_v15, %v273_v22  ;;  %v269_v26 = vadd.f32 %v392_v23, %v370_v15  ;;  %v396_v27 = vpop.f32.mrb[2].mxu1  ;;  %v260_v28 = vpop.f32.mrb[3].mxu0 }
  0xeb   : > { %v294_v29 = vmax.f32 %v282_v20, 0.0  ;;  %v288_v30 = vmax.f32 %v258_v21, 0.0  ;;  %v285_v31 = vadd.f32 %v396_v27, %v370_v15  ;;  %v261_v32 = vadd.f32 %v370_v15, %v260_v28  ;;  %v276_v33 = vpop.f32.mrb[3].mxu1 }
  0xec   : > { %299 = vst.msk [vmem:[%s172_s27 + $0x10] sm:$0xff] %vm296_vm2, %v290_v24  ;;  %v292_v34 = vmax.f32 %v274_v25, 0.0  ;;  %v291_v35 = vmax.f32 %v269_v26, 0.0  ;;  %v277_v36 = vadd.f32 %v370_v15, %v276_v33 }
  0xed   : > { %303 = vst.msk [vmem:[%s172_s27 + $0x30] sm:$0xff] %vm296_vm2, %v294_v29  ;;  %297 = vst.msk [vmem:[%s172_s27] sm:$0xff] %vm296_vm2, %v288_v30  ;;  %v295_v37 = vmax.f32 %v285_v31, 0.0  ;;  %v289_v38 = vmax.f32 %v261_v32, 0.0 }
  0xee   : > { %301 = vst.msk [vmem:[%s172_s27 + $0x20] sm:$0xff] %vm296_vm2, %v292_v34  ;;  %300 = vst.msk [vmem:[%s172_s27 + $0x18] sm:$0xff] %vm296_vm2, %v291_v35  ;;  %v293_v39 = vmax.f32 %v277_v36, 0.0 }
  0xef   : > { %304 = vst.msk [vmem:[%s172_s27 + $0x38] sm:$0xff] %vm296_vm2, %v295_v37  ;;  %298 = vst.msk [vmem:[%s172_s27 + $0x8] sm:$0xff] %vm296_vm2, %v289_v38 }
  0xf0   : > { %302 = vst.msk [vmem:[%s172_s27 + $0x28] sm:$0xff] %vm296_vm2, %v293_v39 }
  0xf1 PF: > { %s13_s12 = sadd.s32 1, %s419_s12  }
  0xf2   : > { %p10_p4 = scmp.ge.s32.totalorder %s13_s12, 4  }
  0xf4   :  { %12 = sbr.rel (!%p10_p4) target bundleno = 1 (0x1), region = 62 }

// kernel: _lambda_.16
= control target key start
LH: loop header
LB: loop body
LE: loop exit
PB: predicated region body
PF: predicated region fallthrough
CT: control target
= control target key end

     0   :  { %s635_s12 = smov 0   ;;  %s712_s0 = inlined_call_operand.vmem [shape: f32[128,96], index: 0, kind: input, shape index: {}]   ;;  %s713_s1 = inlined_call_operand.vmem [shape: bf16[96,116], index: 1, kind: input, shape index: {}]   ;;  %s714_s2 = inlined_call_operand.vmem [shape: f32[1,116], index: 2, kind: input, shape index: {}]   ;;  %s715_s3 = inlined_call_operand.vmem [shape: f32[128,116], index: 3, kind: output, shape index: {}]  }
   0x1 LB: > { %s481_s13 = sadd.s32 4294967295, %s613_s12   ;;  %p485_p0 = scmp.ge.s32.totalorder %s613_s12, 1  ;;  %s613_s12 = sphi %s635_s12, %s13_s12  }
   0x2   : > { %p138_p1 = scmp.lt.s32.totalorder %s613_s12, 3 }
   0x4   : > { %p139_p2 = pnand %p485_p0, %p138_p1 }
   0x5   : > { %v569_v0 = vld [vmem:[%s713_s1] sm:$0xff] (!%p139_p2)   ;;  %s486_s16 = sshll.u32 (!%p139_p2), %s481_s13, 3  ;;  %v570_v1 = vld [vmem:[%s713_s1 + $0x8] sm:$0xff] (!%p139_p2)   ;;  %v571_v2 = vld [vmem:[%s713_s1 + $0x10] sm:$0xff] (!%p139_p2)   ;;  %vm242_vm0 = vcmask (!%p139_p2), 785408   ;;  %vm416_vm9 = vcmask (!%p139_p2), 949248  }
   0x6   : > { %142 = sbr.rel (%p139_p2) target bundleno = 290 (0x122), region = 32  ;;  %p163_p3 = scmp.lt.s32.totalorder (!%p139_p2), %s486_s16, 15  ;;  %529 = vmatprep.subr.bf16.mxu0 (!%p139_p2), %v569_v0  ;;  %549 = vmatprep.subr.bf16.mxu1 (!%p139_p2), %v569_v0  ;;  %v572_v6 = vld [vmem:[%s713_s1 + $0x18] sm:$0xff] (!%p139_p2)   ;;  %v573_v10 = vld [vmem:[%s713_s1 + $0x20] sm:$0xff] (!%p139_p2)   ;;  %v574_v11 = vld [vmem:[%s713_s1 + $0x28] sm:$0xff] (!%p139_p2)  }
   0x7   : > { %530 = vmatpush3.bf16.msra.mxu0 (!%p139_p2), %v569_v0  ;;  %555 = vmatpush3.bf16.msra.mxu1 (!%p139_p2), %v569_v0  ;;  %v490_v18 = vld [vmem:[%s714_s2] ss:$0 sm:$0xff] (!%p139_p2) }
   0x8   : > { %531 = vmatprep.subr.bf16.mxu0 (!%p139_p2), %v570_v1  ;;  %550 = vmatprep.subr.bf16.mxu1 (!%p139_p2), %v570_v1 }
   0xb   : > { %532 = vmatpush3.bf16.msra.mxu0 (!%p139_p2), %v570_v1  ;;  %556 = vmatpush3.bf16.msra.mxu1 (!%p139_p2), %v570_v1 }
   0xc   : > { %533 = vmatprep.subr.bf16.mxu0 (!%p139_p2), %v571_v2  ;;  %551 = vmatprep.subr.bf16.mxu1 (!%p139_p2), %v571_v2 }
   0xd   : > { %s717_s16 = smov (!%p163_p3, %s486_s16), 15 }
   0xe   : > { %s487_s21 = sshll.u32 %s717_s16, 3 }
   0xf   : > { %s166_s24 = scalar_lea.vmem %s712_s0, %s487_s21  ;;  %534 = vmatpush3.bf16.msra.mxu0 %v571_v2  ;;  %557 = vmatpush3.bf16.msra.mxu1 %v571_v2  ;;  %s691_s8 = scalar_lea.vmem %s715_s3, %s487_s21 }
  0x10   : > { %v175_v3 = vld [vmem:[%s166_s24] sm:$0xff]  ;;  %v176_v4 = vld [vmem:[%s166_s24 + $0x8] sm:$0xff]  ;;  %535 = vmatprep.subr.bf16.mxu0 %v572_v6  ;;  %552 = vmatprep.subr.bf16.mxu1 %v572_v6  ;;  %v177_v12 = vld [vmem:[%s166_s24 + $0x10] sm:$0xff] }
  0x11   : > { %v179_v5 = vld [vmem:[%s166_s24 + $0x20] sm:$0xff]  ;;  %v183_v7 = vpack.c.bf16 %v176_v4, %v175_v3  ;;  %v180_v8 = vld [vmem:[%s166_s24 + $0x28] sm:$0xff]  ;;  %v178_v13 = vld [vmem:[%s166_s24 + $0x18] sm:$0xff] }
  0x12   : > { %v185_v9 = vpack.c.bf16 %v180_v8, %v179_v5  ;;  %v181_v14 = vld [vmem:[%s166_s24 + $0x30] sm:$0xff]  ;;  %v182_v15 = vld [vmem:[%s166_s24 + $0x38] sm:$0xff]  ;;  %v184_v16 = vpack.c.bf16 %v178_v13, %v177_v12 }
  0x13   : > { %541 = vmatprep.mubr.msk.bf16.mxu0 %vm242_vm0, %v183_v7  ;;  %536 = vmatpush3.bf16.msra.mxu0 %v572_v6  ;;  %v186_v17 = vpack.c.bf16 %v182_v15, %v181_v14 }
  0x14   : > { %545 = vmatprep.mubr.msk.bf16.mxu1 %vm242_vm0, %v185_v9  ;;  %558 = vmatpush3.bf16.msra.mxu1 %v572_v6 }
  0x15   : > { %537 = vmatprep.subr.bf16.mxu0 %v573_v10  ;;  %553 = vmatprep.subr.bf16.mxu1 %v573_v10 }
  0x17   : > { %538 = vmatpush3.bf16.msra.mxu0 %v573_v10 }
  0x18   : > { %559 = vmatpush3.bf16.msra.mxu1 %v573_v10  ;;  %539 = vmatprep.subr.bf16.mxu0 %v574_v11 }
  0x19   : > { %554 = vmatprep.subr.bf16.mxu1 %v574_v11 }
  0x1b   : > { %540 = vmatpush3.bf16.msra.mxu0 %v574_v11 }
  0x1c   : > { %560 = vmatpush3.bf16.msra.mxu1 %v574_v11 }
  0x1e   : > { %542 = vmatmul.mubr.msk.bf16.vlgmr.msra.gmra.mrb[0].mxu0 %vm242_vm0, %v184_v16 }
  0x1f   : > { %546 = vmatmul.mubr.msk.bf16.vlgmr.msra.gmra.mrb[0].mxu1 %vm242_vm0, %v186_v17 }
  0xf1   : > { %v543_v19 = vpop.f32.mrb[0].mxu0 }
  0xf2   : > { %v547_v20 = vpop.f32.mrb[0].mxu1  ;;  %v298_v21 = vadd.f32 %v543_v19, %v490_v18  ;;  %v289_v23 = vpop.f32.mrb[1].mxu0 }
  0xf3   : > { %v314_v22 = vadd.f32 %v547_v20, %v490_v18  ;;  %v305_v24 = vpop.f32.mrb[1].mxu1  ;;  %v290_v25 = vadd.f32 %v490_v18, %v289_v23  ;;  %v544_v27 = vpop.f32.mrb[2].mxu0 }
  0xf4   : > { %v306_v26 = vadd.f32 %v490_v18, %v305_v24  ;;  %v548_v28 = vpop.f32.mrb[2].mxu1  ;;  %v330_v29 = vmin.f32 %v298_v21, 0.0  ;;  %v292_v31 = vpop.f32.mrb[3].mxu0  ;;  %v301_v37 = vadd.f32 %v544_v27, %v490_v18  ;;  %vm322_vm1 = vcmp.gt.f32.partialorder %v298_v21, 0.0 }
  0xf5   : > { %v334_v30 = vmin.f32 %v314_v22, 0.0  ;;  %v308_v32 = vpop.f32.mrb[3].mxu1  ;;  %v328_v33 = vmin.f32 %v290_v25, 0.0  ;;  %v676_v38 = vadd.f32 %v548_v28, %v490_v18  ;;  %v293_v41 = vadd.f32 %v490_v18, %v292_v31 }
  0xf6   : > { %v332_v34 = vmin.f32 %v306_v26, 0.0  ;;  %v340_v35 = vmul.f32 1.442695, %v330_v29  ;;  %v678_v42 = vadd.f32 %v490_v18, %v308_v32  ;;  %v331_v43 = vmin.f32 %v301_v37, 0.0 }
  0xf7   : > { %v348_v36 = vmul.f32 1.442695, %v334_v30  ;;  %v336_v39 = vmul.f32 1.442695, %v328_v33  ;;  %v335_v44 = vmin.f32 %v676_v38, 0.0  ;;  %v329_v45 = vmin.f32 %v293_v41, 0.0 }
  0xf8   : > { %v344_v40 = vmul.f32 1.442695, %v332_v34  ;;  %575 = vpow2.f32 %v340_v35  ;;  %v342_v46 = vmul.f32 1.442695, %v331_v43  ;;  %v333_v47 = vmin.f32 %v678_v42, 0.0 }
  0xf9   : > { %577 = vpow2.f32 %v348_v36  ;;  %v350_v48 = vmul.f32 1.442695, %v335_v44  ;;  %v338_v49 = vmul.f32 1.442695, %v329_v45  ;;  %vm326_vm2 = vcmp.gt.f32.partialorder %v314_v22, 0.0 }
  0xfa   : > { %579 = vpow2.f32 %v336_v39  ;;  %v346_v50 = vmul.f32 1.442695, %v333_v47  ;;  %vm320_vm3 = vcmp.gt.f32.partialorder %v290_v25, 0.0  ;;  %vm324_vm4 = vcmp.gt.f32.partialorder %v306_v26, 0.0 }
  0xfb   : > { %581 = vpow2.f32 %v344_v40  ;;  %vm323_vm5 = vcmp.gt.f32.partialorder %v301_v37, 0.0  ;;  %vm327_vm6 = vcmp.gt.f32.partialorder %v676_v38, 0.0  ;;  %vm321_vm7 = vcmp.gt.f32.partialorder %v293_v41, 0.0 }
  0xfc   : > { %583 = vpow2.f32 %v342_v46  ;;  %vm325_vm8 = vcmp.gt.f32.partialorder %v678_v42, 0.0 }
  0xfd   : > { %585 = vpow2.f32 %v350_v48 }
  0xfe   : > { %587 = vpow2.f32 %v338_v49 }
  0xff   : > { %589 = vpow2.f32 %v346_v50 }
 0x102   : > { %v576_v51 = vpop.eup %575 }
 0x103   : > { %v578_v52 = vpop.eup %577  ;;  %v503_v53 = vadd.f32 -1.0, %v576_v51 }
 0x104   : > { %v580_v54 = vpop.eup %579  ;;  %v507_v55 = vadd.f32 -1.0, %v578_v52 }
 0x105   : > { %v582_v56 = vpop.eup %581  ;;  %v362_v57 = vsel %vm322_vm1, %v298_v21, %v503_v53  ;;  %v501_v58 = vadd.f32 -1.0, %v580_v54 }
 0x106   : > { %v584_v59 = vpop.eup %583  ;;  %v378_v60 = vmin.f32 %v362_v57, 0.0  ;;  %v366_v61 = vsel %vm326_vm2, %v314_v22, %v507_v55  ;;  %v505_v62 = vadd.f32 -1.0, %v582_v56  ;;  %v370_v29 = vmax.f32 %v362_v57, 0.0 }
 0x107   : > { %v586_v63 = vpop.eup %585  ;;  %v382_v0 = vmin.f32 %v366_v61, 0.0  ;;  %v360_v1 = vsel %vm320_vm3, %v290_v25, %v501_v58  ;;  %v504_v2 = vadd.f32 -1.0, %v584_v59  ;;  %v374_v32 = vmax.f32 %v366_v61, 0.0 }
 0x108   : > { %v588_v3 = vpop.eup %587  ;;  %v388_v4 = vmul.f32 1.442695, %v378_v60  ;;  %v376_v5 = vmin.f32 %v360_v1, 0.0  ;;  %v364_v6 = vsel %vm324_vm4, %v306_v26, %v505_v62  ;;  %v508_v14 = vadd.f32 -1.0, %v586_v63 }
 0x109   : > { %v590_v7 = vpop.eup %589  ;;  %v396_v8 = vmul.f32 1.442695, %v382_v0  ;;  %v380_v9 = vmin.f32 %v364_v6, 0.0  ;;  %v363_v10 = vsel %vm323_vm5, %v301_v37, %v504_v2  ;;  %v502_v15 = vadd.f32 -1.0, %v588_v3 }
 0x10a   : > { %591 = vpow2.f32 %v388_v4  ;;  %v384_v11 = vmul.f32 1.442695, %v376_v5  ;;  %v379_v12 = vmin.f32 %v363_v10, 0.0  ;;  %v506_v17 = vadd.f32 -1.0, %v590_v7 }
 0x10b   : > { %593 = vpow2.f32 %v396_v8  ;;  %v392_v13 = vmul.f32 1.442695, %v380_v9  ;;  %v367_v18 = vsel %vm327_vm6, %v676_v38, %v508_v14  ;;  %v361_v19 = vsel %vm321_vm7, %v293_v41, %v502_v15 }
 0x10c   : > { %595 = vpow2.f32 %v384_v11  ;;  %v390_v16 = vmul.f32 1.442695, %v379_v12  ;;  %v383_v20 = vmin.f32 %v367_v18, 0.0  ;;  %v377_v21 = vmin.f32 %v361_v19, 0.0 }
 0x10d   : > { %597 = vpow2.f32 %v392_v13  ;;  %v365_v22 = vsel %vm325_vm8, %v678_v42, %v506_v17  ;;  %v368_v36 = vmax.f32 %v360_v1, 0.0  ;;  %v372_v40 = vmax.f32 %v364_v6, 0.0 }
 0x10e   : > { %599 = vpow2.f32 %v390_v16  ;;  %v398_v23 = vmul.f32 1.442695, %v383_v20  ;;  %v381_v24 = vmin.f32 %v365_v22, 0.0  ;;  %v386_v25 = vmul.f32 1.442695, %v377_v21 }
 0x10f   : > { %v371_v43 = vmax.f32 %v363_v10, 0.0  ;;  %v375_v49 = vmax.f32 %v367_v18, 0.0  ;;  %v369_v52 = vmax.f32 %v361_v19, 0.0  ;;  %v373_v55 = vmax.f32 %v365_v22, 0.0 }
 0x110   : > { %601 = vpow2.f32 %v398_v23  ;;  %v394_v26 = vmul.f32 1.442695, %v381_v24 }
 0x111   : > { %603 = vpow2.f32 %v386_v25 }
 0x112   : > { %605 = vpow2.f32 %v394_v26 }
 0x114   : > { %v592_v27 = vpop.eup %591 }
 0x115   : > { %v594_v28 = vpop.eup %593  ;;  %v511_v30 = vadd.f32 -1.0, %v592_v27 }
 0x116   : > { %v596_v31 = vpop.eup %595  ;;  %v515_v33 = vadd.f32 -1.0, %v594_v28 }
 0x117   : > { %v598_v34 = vpop.eup %597  ;;  %v410_v35 = vadd.f32 %v511_v30, %v370_v29  ;;  %v509_v37 = vadd.f32 -1.0, %v596_v31 }
 0x118   : > { %v600_v38 = vpop.eup %599  ;;  %v414_v39 = vadd.f32 %v515_v33, %v374_v32  ;;  %v513_v41 = vadd.f32 -1.0, %v598_v34 }
 0x119   : > { %419 = vst.msk [vmem:[%s691_s8 + $0x10] sm:$0xff] %vm416_vm9, %v410_v35  ;;  %v408_v42 = vadd.f32 %v509_v37, %v368_v36  ;;  %v512_v44 = vadd.f32 -1.0, %v600_v38 }
 0x11a   : > { %423 = vst.msk [vmem:[%s691_s8 + $0x30] sm:$0xff] %vm416_vm9, %v414_v39  ;;  %v412_v45 = vadd.f32 %v513_v41, %v372_v40  ;;  %v602_v47 = vpop.eup %601 }
 0x11b   : > { %417 = vst.msk [vmem:[%s691_s8] sm:$0xff] %vm416_vm9, %v408_v42  ;;  %v411_v46 = vadd.f32 %v512_v44, %v371_v43  ;;  %v604_v48 = vpop.eup %603  ;;  %v516_v50 = vadd.f32 -1.0, %v602_v47 }
 0x11c   : > { %421 = vst.msk [vmem:[%s691_s8 + $0x20] sm:$0xff] %vm416_vm9, %v412_v45  ;;  %v606_v51 = vpop.eup %605  ;;  %v510_v53 = vadd.f32 -1.0, %v604_v48 }
 0x11d   : > { %420 = vst.msk [vmem:[%s691_s8 + $0x18] sm:$0xff] %vm416_vm9, %v411_v46  ;;  %v415_v54 = vadd.f32 %v516_v50, %v375_v49  ;;  %v514_v56 = vadd.f32 -1.0, %v606_v51 }
 0x11e   : > { %v409_v57 = vadd.f32 %v510_v53, %v369_v52 }
 0x11f   : > { %424 = vst.msk [vmem:[%s691_s8 + $0x38] sm:$0xff] %vm416_vm9, %v415_v54  ;;  %v413_v58 = vadd.f32 %v514_v56, %v373_v55 }
 0x120   : > { %418 = vst.msk [vmem:[%s691_s8 + $0x8] sm:$0xff] %vm416_vm9, %v409_v57 }
 0x121   : > { %422 = vst.msk [vmem:[%s691_s8 + $0x28] sm:$0xff] %vm416_vm9, %v413_v58 }
 0x122 PF: > { %s13_s12 = sadd.s32 1, %s613_s12  }
 0x123   : > { %p10_p4 = scmp.ge.s32.totalorder %s13_s12, 4  }
 0x125   :  { %12 = sbr.rel (!%p10_p4) target bundleno = 1 (0x1), region = 62 }

// kernel: _lambda_.20
= control target key start
LH: loop header
LB: loop body
LE: loop exit
PB: predicated region body
PF: predicated region fallthrough
CT: control target
= control target key end

     0   :  { %s452_s12 = smov 0   ;;  %s496_s0 = inlined_call_operand.vmem [shape: f32[32,116], index: 0, kind: input, shape index: {}]   ;;  %s497_s1 = inlined_call_operand.vmem [shape: bf16[116,116], index: 1, kind: input, shape index: {}]   ;;  %s498_s2 = inlined_call_operand.vmem [shape: f32[1,116], index: 2, kind: input, shape index: {}]   ;;  %s499_s3 = inlined_call_operand.vmem [shape: f32[32,116], index: 3, kind: output, shape index: {}]  }
   0x1 LB: > { %s354_s13 = sadd.s32 4294967295, %s428_s12   ;;  %p358_p0 = scmp.ge.s32.totalorder %s428_s12, 1  ;;  %s428_s12 = sphi %s452_s12, %s13_s12  }
   0x2   : > { %p138_p1 = scmp.lt.s32.totalorder %s428_s12, 3 }
   0x4   : > { %p139_p2 = pnand %p358_p0, %p138_p1 }
   0x5   : > { %v414_v0 = vld [vmem:[%s497_s1] sm:$0xff] (!%p139_p2)   ;;  %v430_v1 = vmov (!%p139_p2), 0.0   ;;  %v415_v2 = vld [vmem:[%s497_s1 + $0x8] sm:$0xff] (!%p139_p2)   ;;  %vm431_vm0 = vmmov (!%p139_p2), 0   ;;  %v416_v3 = vld [vmem:[%s497_s1 + $0x10] sm:$0xff] (!%p139_p2)   ;;  %s359_s20 = sshll.u32 (!%p139_p2), %s354_s13, 1 }
   0x6   : > { %142 = sbr.rel (%p139_p2) target bundleno = 257 (0x101), region = 32  ;;  %384 = vmatprep.subr.bf16.mxu0 (!%p139_p2), %v430_v1  ;;  %400 = vmatprep.mubr.msk.bf16.mxu0 (!%p139_p2), %vm431_vm0, %v430_v1  ;;  %v417_v4 = vld [vmem:[%s497_s1 + $0x18] sm:$0xff] (!%p139_p2)   ;;  %p163_p3 = scmp.lt.s32.totalorder (!%p139_p2), %s359_s20, 3  ;;  %v418_v5 = vld [vmem:[%s497_s1 + $0x20] sm:$0xff] (!%p139_p2)   ;;  %v419_v6 = vld [vmem:[%s497_s1 + $0x28] sm:$0xff] (!%p139_p2)   ;;  %vm249_vm1 = vcmask (!%p139_p2), 1041408  }
   0x7   : > { %385 = vmatpush3.bf16.msra.mxu0 (!%p139_p2), %v414_v0  ;;  %v420_v7 = vld [vmem:[%s497_s1 + $0x30] sm:$0xff] (!%p139_p2)   ;;  %v421_v8 = vld [vmem:[%s497_s1 + $0x38] ss:$0 sps:$4 sm:$0x33] (!%p139_p2)   ;;  %vm245_vm2 = vcmask (!%p139_p2), 949248  }
   0x8   : > { %386 = vmatprep.subr.bf16.mxu0 (!%p139_p2), %v430_v1  ;;  %v251_v11 = vsel (!%p139_p2), %vm249_vm1, %v421_v8, 0  ;;  %v363_v13 = vld [vmem:[%s498_s2] ss:$0 sm:$0xff] (!%p139_p2) }
   0xb   : > { %387 = vmatpush3.bf16.msra.mxu0 (!%p139_p2), %v415_v2 }
   0xc   : > { %388 = vmatprep.subr.bf16.mxu0 (!%p139_p2), %v430_v1 }
   0xd   : > { %s501_s20 = smov (!%p163_p3, %s359_s20), 3 }
   0xe   : > { %s360_s27 = sshll.u32 %s501_s20, 3 }
   0xf   : > { %389 = vmatpush3.bf16.msra.mxu0 %v416_v3  ;;  %s166_s7 = scalar_lea.vmem %s496_s0, %s360_s27  ;;  %s172_s13 = scalar_lea.vmem %s499_s3, %s360_s27 }
  0x10   : > { %390 = vmatprep.subr.bf16.mxu0 %v430_v1  ;;  %v175_v9 = vld [vmem:[%s166_s7] sm:$0xff]  ;;  %v176_v10 = vld [vmem:[%s166_s7 + $0x8] sm:$0xff] }
  0x11   : > { %v177_v12 = vpack.c.bf16 %v176_v10, %v175_v9 }
  0x13   : > { %391 = vmatpush3.bf16.msra.mxu0 %v417_v4 }
  0x14   : > { %392 = vmatprep.subr.bf16.mxu0 %v430_v1 }
  0x17   : > { %393 = vmatpush3.bf16.msra.mxu0 %v418_v5 }
  0x18   : > { %394 = vmatprep.subr.bf16.mxu0 %v430_v1 }
  0x1b   : > { %395 = vmatpush3.bf16.msra.mxu0 %v419_v6 }
  0x1c   : > { %396 = vmatprep.subr.bf16.mxu0 %v430_v1 }
  0x1f   : > { %397 = vmatpush3.bf16.msra.mxu0 %v420_v7 }
  0x20   : > { %398 = vmatprep.subr.bf16.mxu0 %v430_v1 }
  0x23   : > { %399 = vmatpush3.bf16.msra.mxu0 %v251_v11 }
  0x26   : > { %401 = vmatmul.mubr.msk.bf16.vlgmr.msra.gmra.mrb[0].mxu0 %vm245_vm2, %v177_v12 }
  0xf9   : > { %v287_v14 = vpop.f32.mrb[0].mxu0 }
  0xfa   : > { %v288_v15 = vadd.f32 %v363_v13, %v287_v14  ;;  %v402_v16 = vpop.f32.mrb[1].mxu0 }
  0xfb   : > { %v290_v17 = vpop.f32.mrb[2].mxu0 }
  0xfc   : > { %v294_v18 = vmax.f32 %v288_v15, 0.0  ;;  %v291_v19 = vadd.f32 %v363_v13, %v290_v17  ;;  %v403_v20 = vpop.f32.mrb[3].mxu0 }
  0xfe   : > { %296 = vst.msk [vmem:[%s172_s13] sm:$0xff] %vm245_vm2, %v294_v18  ;;  %v295_v21 = vmax.f32 %v291_v19, 0.0 }
 0x100   : > { %297 = vst.msk [vmem:[%s172_s13 + $0x8] sm:$0xff] %vm245_vm2, %v295_v21 }
 0x101 PF: > { %s13_s12 = sadd.s32 1, %s428_s12  }
 0x102   : > { %p10_p4 = scmp.ge.s32.totalorder %s13_s12, 4  }
 0x104   :  { %12 = sbr.rel (!%p10_p4) target bundleno = 1 (0x1), region = 62 }

// kernel: _lambda_.21
= control target key start
LH: loop header
LB: loop body
LE: loop exit
PB: predicated region body
PF: predicated region fallthrough
CT: control target
= control target key end

     0   :  { %s530_s12 = smov 0   ;;  %s603_s0 = inlined_call_operand.vmem [shape: f32[128,116], index: 0, kind: input, shape index: {}]   ;;  %s604_s1 = inlined_call_operand.vmem [shape: bf16[116,116], index: 1, kind: input, shape index: {}]   ;;  %s605_s2 = inlined_call_operand.vmem [shape: f32[1,116], index: 2, kind: input, shape index: {}]   ;;  %s606_s3 = inlined_call_operand.vmem [shape: f32[128,116], index: 3, kind: output, shape index: {}]  }
   0x1 LB: > { %s408_s13 = sadd.s32 4294967295, %s508_s12   ;;  %p412_p0 = scmp.ge.s32.totalorder %s508_s12, 1  ;;  %s508_s12 = sphi %s530_s12, %s13_s12  }
   0x2   : > { %p138_p1 = scmp.lt.s32.totalorder %s508_s12, 3 }
   0x4   : > { %p139_p2 = pnand %p412_p0, %p138_p1 }
   0x5   : > { %v494_v0 = vld [vmem:[%s604_s1] sm:$0xff] (!%p139_p2)   ;;  %v495_v1 = vld [vmem:[%s604_s1 + $0x8] sm:$0xff] (!%p139_p2)   ;;  %s413_s18 = sshll.u32 (!%p139_p2), %s408_s13, 3  ;;  %v496_v2 = vld [vmem:[%s604_s1 + $0x10] sm:$0xff] (!%p139_p2)   ;;  %vm254_vm0 = vcmask (!%p139_p2), 949248   ;;  %vm267_vm1 = vcmask (!%p139_p2), 1041408  }
   0x6   : > { %142 = sbr.rel (%p139_p2) target bundleno = 259 (0x103), region = 32  ;;  %444 = vmatprep.subr.bf16.mxu0 (!%p139_p2), %v494_v0  ;;  %468 = vmatprep.subr.bf16.mxu1 (!%p139_p2), %v494_v0  ;;  %p163_p3 = scmp.lt.s32.totalorder (!%p139_p2), %s413_s18, 15  ;;  %v497_v3 = vld [vmem:[%s604_s1 + $0x18] sm:$0xff] (!%p139_p2)   ;;  %v498_v10 = vld [vmem:[%s604_s1 + $0x20] sm:$0xff] (!%p139_p2)   ;;  %v499_v11 = vld [vmem:[%s604_s1 + $0x28] sm:$0xff] (!%p139_p2)  }
   0x7   : > { %445 = vmatpush3.bf16.msra.mxu0 (!%p139_p2), %v494_v0  ;;  %476 = vmatpush3.bf16.msra.mxu1 (!%p139_p2), %v494_v0  ;;  %v500_v12 = vld [vmem:[%s604_s1 + $0x30] sm:$0xff] (!%p139_p2)   ;;  %v501_v13 = vld [vmem:[%s604_s1 + $0x38] ss:$0 sps:$4 sm:$0x33] (!%p139_p2)   ;;  %v417_v21 = vld [vmem:[%s605_s2] ss:$0 sm:$0xff] (!%p139_p2) }
   0x8   : > { %446 = vmatprep.subr.bf16.mxu0 (!%p139_p2), %v495_v1  ;;  %469 = vmatprep.subr.bf16.mxu1 (!%p139_p2), %v495_v1  ;;  %v269_v18 = vsel (!%p139_p2), %vm267_vm1, %v501_v13, 0 }
   0xb   : > { %447 = vmatpush3.bf16.msra.mxu0 (!%p139_p2), %v495_v1  ;;  %477 = vmatpush3.bf16.msra.mxu1 (!%p139_p2), %v495_v1 }
   0xc   : > { %448 = vmatprep.subr.bf16.mxu0 (!%p139_p2), %v496_v2  ;;  %470 = vmatprep.subr.bf16.mxu1 (!%p139_p2), %v496_v2 }
   0xd   : > { %s608_s18 = smov (!%p163_p3, %s413_s18), 15 }
   0xe   : > { %s414_s21 = sshll.u32 %s608_s18, 3 }
   0xf   : > { %s558_s26 = scalar_lea.vmem %s603_s0, %s414_s21  ;;  %449 = vmatpush3.bf16.msra.mxu0 %v496_v2  ;;  %478 = vmatpush3.bf16.msra.mxu1 %v496_v2  ;;  %s172_s13 = scalar_lea.vmem %s606_s3, %s414_s21 }
  0x10   : > { %v175_v4 = vld [vmem:[%s558_s26] sm:$0xff]  ;;  %v176_v5 = vld [vmem:[%s558_s26 + $0x8] sm:$0xff]  ;;  %450 = vmatprep.subr.bf16.mxu0 %v497_v3  ;;  %471 = vmatprep.subr.bf16.mxu1 %v497_v3  ;;  %v177_v14 = vld [vmem:[%s558_s26 + $0x10] sm:$0xff] }
  0x11   : > { %v179_v6 = vld [vmem:[%s558_s26 + $0x20] sm:$0xff]  ;;  %v183_v7 = vpack.c.bf16 %v176_v5, %v175_v4  ;;  %v180_v8 = vld [vmem:[%s558_s26 + $0x28] sm:$0xff]  ;;  %v178_v15 = vld [vmem:[%s558_s26 + $0x18] sm:$0xff] }
  0x12   : > { %v185_v9 = vpack.c.bf16 %v180_v8, %v179_v6  ;;  %v181_v16 = vld [vmem:[%s558_s26 + $0x30] sm:$0xff]  ;;  %v182_v17 = vld [vmem:[%s558_s26 + $0x38] sm:$0xff]  ;;  %v184_v19 = vpack.c.bf16 %v178_v15, %v177_v14 }
  0x13   : > { %460 = vmatprep.mubr.msk.bf16.mxu0 %vm254_vm0, %v183_v7  ;;  %451 = vmatpush3.bf16.msra.mxu0 %v497_v3  ;;  %v186_v20 = vpack.c.bf16 %v182_v17, %v181_v16 }
  0x14   : > { %464 = vmatprep.mubr.msk.bf16.mxu1 %vm254_vm0, %v185_v9  ;;  %479 = vmatpush3.bf16.msra.mxu1 %v497_v3 }
  0x15   : > { %452 = vmatprep.subr.bf16.mxu0 %v498_v10  ;;  %472 = vmatprep.subr.bf16.mxu1 %v498_v10 }
  0x17   : > { %453 = vmatpush3.bf16.msra.mxu0 %v498_v10 }
  0x18   : > { %480 = vmatpush3.bf16.msra.mxu1 %v498_v10  ;;  %454 = vmatprep.subr.bf16.mxu0 %v499_v11 }
  0x19   : > { %473 = vmatprep.subr.bf16.mxu1 %v499_v11 }
  0x1b   : > { %455 = vmatpush3.bf16.msra.mxu0 %v499_v11 }
  0x1c   : > { %481 = vmatpush3.bf16.msra.mxu1 %v499_v11  ;;  %456 = vmatprep.subr.bf16.mxu0 %v500_v12 }
  0x1d   : > { %474 = vmatprep.subr.bf16.mxu1 %v500_v12 }
  0x1f   : > { %457 = vmatpush3.bf16.msra.mxu0 %v500_v12 }
  0x20   : > { %482 = vmatpush3.bf16.msra.mxu1 %v500_v12  ;;  %484 = vmatprep.subr.msk.bf16.mxu0 %vm267_vm1, %v501_v13 }
  0x21   : > { %485 = vmatprep.subr.msk.bf16.mxu1 %vm267_vm1, %v501_v13 }
  0x23   : > { %459 = vmatpush3.bf16.msra.mxu0 %v269_v18 }
  0x24   : > { %483 = vmatpush3.bf16.msra.mxu1 %v269_v18 }
  0x26   : > { %461 = vmatmul.mubr.msk.bf16.vlgmr.msra.gmra.mrb[0].mxu0 %vm254_vm0, %v184_v19 }
  0x27   : > { %465 = vmatmul.mubr.msk.bf16.vlgmr.msra.gmra.mrb[0].mxu1 %vm254_vm0, %v186_v20 }
  0xf9   : > { %v462_v22 = vpop.f32.mrb[0].mxu0 }
  0xfa   : > { %v466_v23 = vpop.f32.mrb[0].mxu1  ;;  %v314_v24 = vadd.f32 %v462_v22, %v417_v21  ;;  %v305_v26 = vpop.f32.mrb[1].mxu0 }
  0xfb   : > { %v330_v25 = vadd.f32 %v466_v23, %v417_v21  ;;  %v321_v27 = vpop.f32.mrb[1].mxu1  ;;  %v306_v28 = vadd.f32 %v417_v21, %v305_v26  ;;  %v463_v30 = vpop.f32.mrb[2].mxu0 }
  0xfc   : > { %v322_v29 = vadd.f32 %v417_v21, %v321_v27  ;;  %v467_v31 = vpop.f32.mrb[2].mxu1  ;;  %v338_v32 = vmax.f32 %v314_v24, 0.0  ;;  %v317_v34 = vadd.f32 %v463_v30, %v417_v21  ;;  %v308_v36 = vpop.f32.mrb[3].mxu0 }
  0xfd   : > { %v342_v33 = vmax.f32 %v330_v25, 0.0  ;;  %v333_v35 = vadd.f32 %v467_v31, %v417_v21  ;;  %v324_v37 = vpop.f32.mrb[3].mxu1  ;;  %v336_v38 = vmax.f32 %v306_v28, 0.0  ;;  %v309_v40 = vadd.f32 %v417_v21, %v308_v36 }
  0xfe   : > { %v340_v39 = vmax.f32 %v322_v29, 0.0  ;;  %v325_v41 = vadd.f32 %v417_v21, %v324_v37  ;;  %346 = vst.msk [vmem:[%s172_s13 + $0x10] sm:$0xff] %vm254_vm0, %v338_v32  ;;  %v339_v42 = vmax.f32 %v317_v34, 0.0 }
  0xff   : > { %350 = vst.msk [vmem:[%s172_s13 + $0x30] sm:$0xff] %vm254_vm0, %v342_v33  ;;  %v343_v43 = vmax.f32 %v333_v35, 0.0  ;;  %344 = vst.msk [vmem:[%s172_s13] sm:$0xff] %vm254_vm0, %v336_v38  ;;  %v337_v44 = vmax.f32 %v309_v40, 0.0 }
 0x100   : > { %348 = vst.msk [vmem:[%s172_s13 + $0x20] sm:$0xff] %vm254_vm0, %v340_v39  ;;  %v341_v45 = vmax.f32 %v325_v41, 0.0  ;;  %347 = vst.msk [vmem:[%s172_s13 + $0x18] sm:$0xff] %vm254_vm0, %v339_v42 }
 0x101   : > { %351 = vst.msk [vmem:[%s172_s13 + $0x38] sm:$0xff] %vm254_vm0, %v343_v43  ;;  %345 = vst.msk [vmem:[%s172_s13 + $0x8] sm:$0xff] %vm254_vm0, %v337_v44 }
 0x102   : > { %349 = vst.msk [vmem:[%s172_s13 + $0x28] sm:$0xff] %vm254_vm0, %v341_v45 }
 0x103 PF: > { %s13_s12 = sadd.s32 1, %s508_s12  }
 0x104   : > { %p10_p4 = scmp.ge.s32.totalorder %s13_s12, 4  }
 0x106   :  { %12 = sbr.rel (!%p10_p4) target bundleno = 1 (0x1), region = 62 }

// kernel: _lambda_.25
= control target key start
LH: loop header
LB: loop body
LE: loop exit
PB: predicated region body
PF: predicated region fallthrough
CT: control target
= control target key end

     0   :  { %vm23_vm0 = vcmask 850944   ;;  %s351_s0 = inlined_call_operand.vmem [shape: f32[2,16,232], index: 0, kind: input, shape index: {}]   ;;  %s352_s1 = inlined_call_operand.vmem [shape: f32[2,16,232], index: 1, kind: output, shape index: {}]  }
   0x1   :  { %v246_v0 = vld [vmem:[%s351_s0] sm:$0xff]  ;;  %v251_v1 = vld [vmem:[%s351_s0 + $0x10] sm:$0xff]  ;;  %v256_v2 = vld [vmem:[%s351_s0 + $0x8] sm:$0xff] }
   0x2   :  { %v16_v3 = vadd.f32 %v251_v1, %v246_v0  ;;  %v263_v4 = vld [vmem:[%s351_s0 + $0x18] sm:$0xff]  ;;  %v24_v5 = vsel %vm23_vm0, %v256_v2, 0.0  ;;  %v270_v6 = vld [vmem:[%s351_s0 + $0x20] sm:$0xff]  ;;  %v275_v7 = vld [vmem:[%s351_s0 + $0x30] sm:$0xff] }
   0x3   :  { %v25_v8 = vsel %vm23_vm0, %v263_v4, 0.0  ;;  %v33_v9 = vadd.f32 %v275_v7, %v270_v6  ;;  %v284_v10 = vld [vmem:[%s351_s0 + $0x28] sm:$0xff]  ;;  %v289_v11 = vld [vmem:[%s351_s0 + $0x38] sm:$0xff] }
   0x4   :  { %v17_v12 = vrot.slane %v16_v3, 4  ;;  %v26_v13 = vadd.f32 %v25_v8, %v24_v5  ;;  %v40_v14 = vsel %vm23_vm0, %v284_v10, 0.0  ;;  %v41_v15 = vsel %vm23_vm0, %v289_v11, 0.0 }
   0x5   :  { %v34_v16 = vrot.slane %v33_v9, 4  ;;  %v42_v17 = vadd.f32 %v41_v15, %v40_v14 }
   0x6   :  { %v18_v18 = vadd.f32 %v17_v12, %v16_v3  ;;  %v27_v19 = vrot.slane %v26_v13, 4 }
   0x7   :  { %v35_v20 = vadd.f32 %v34_v16, %v33_v9  ;;  %v43_v21 = vrot.slane %v42_v17, 4 }
   0x8   :  { %v19_v22 = vrot.slane %v18_v18, 2  ;;  %v28_v23 = vadd.f32 %v27_v19, %v26_v13 }
   0x9   :  { %v36_v24 = vrot.slane %v35_v20, 2  ;;  %v44_v25 = vadd.f32 %v43_v21, %v42_v17 }
   0xa   :  { %v20_v26 = vadd.f32 %v19_v22, %v18_v18  ;;  %v29_v27 = vrot.slane %v28_v23, 2 }
   0xb   :  { %v37_v28 = vadd.f32 %v36_v24, %v35_v20  ;;  %v45_v29 = vrot.slane %v44_v25, 2 }
   0xc   :  { %v21_v30 = vrot.slane %v20_v26, 1  ;;  %v30_v31 = vadd.f32 %v29_v27, %v28_v23 }
   0xd   :  { %v38_v32 = vrot.slane %v37_v28, 1  ;;  %v46_v33 = vadd.f32 %v45_v29, %v44_v25 }
   0xe   :  { %v22_v34 = vadd.f32 %v21_v30, %v20_v26  ;;  %v31_v35 = vrot.slane %v30_v31, 1 }
   0xf   :  { %v39_v36 = vadd.f32 %v38_v32, %v37_v28  ;;  %v47_v37 = vrot.slane %v46_v33, 1 }
  0x10   :  { %v49_v38 = vmul.f32 0.0625, %v22_v34  ;;  %v32_v39 = vadd.f32 %v31_v35, %v30_v31 }
  0x11   :  { %v51_v40 = vmul.f32 0.0625, %v39_v36  ;;  %v48_v41 = vadd.f32 %v47_v37, %v46_v33 }
  0x12   :  { %v53_v42 = vsub.f32 %v246_v0, %v49_v38  ;;  %v55_v43 = vsub.f32 %v251_v1, %v49_v38  ;;  %v50_v44 = vmul.f32 0.0625, %v32_v39 }
  0x13   :  { %v57_v45 = vsub.f32 %v270_v6, %v51_v40  ;;  %v59_v46 = vsub.f32 %v275_v7, %v51_v40  ;;  %v52_v47 = vmul.f32 0.0625, %v48_v41 }
  0x14   :  { %v61_v48 = vmul.f32 %v53_v42, %v53_v42  ;;  %v63_v49 = vmul.f32 %v55_v43, %v55_v43  ;;  %v54_v50 = vsub.f32 %v256_v2, %v50_v44  ;;  %v56_v51 = vsub.f32 %v263_v4, %v50_v44 }
  0x15   :  { %v65_v52 = vmul.f32 %v57_v45, %v57_v45  ;;  %v67_v53 = vmul.f32 %v59_v46, %v59_v46  ;;  %v58_v54 = vsub.f32 %v284_v10, %v52_v47  ;;  %v60_v55 = vsub.f32 %v289_v11, %v52_v47 }
  0x16   :  { %v69_v56 = vadd.f32 %v63_v49, %v61_v48  ;;  %v62_v57 = vmul.f32 %v54_v50, %v54_v50  ;;  %v64_v58 = vmul.f32 %v56_v51, %v56_v51 }
  0x17   :  { %v85_v59 = vadd.f32 %v67_v53, %v65_v52  ;;  %v303_v60 = vmul.f32 %v58_v54, %v58_v54  ;;  %v305_v61 = vmul.f32 %v60_v55, %v60_v55 }
  0x18   :  { %v70_v62 = vrot.slane %v69_v56, 4  ;;  %v76_v63 = vsel %vm23_vm0, %v62_v57, 0.0  ;;  %v77_v3 = vsel %vm23_vm0, %v64_v58, 0.0 }
  0x19   :  { %v78_v5 = vadd.f32 %v77_v3, %v76_v63  ;;  %v86_v8 = vrot.slane %v85_v59, 4  ;;  %v92_v9 = vsel %vm23_vm0, %v303_v60, 0.0  ;;  %v93_v12 = vsel %vm23_vm0, %v305_v61, 0.0 }
  0x1a   :  { %v71_v13 = vadd.f32 %v70_v62, %v69_v56  ;;  %v94_v14 = vadd.f32 %v93_v12, %v92_v9 }
  0x1b   :  { %v79_v15 = vrot.slane %v78_v5, 4  ;;  %v87_v16 = vadd.f32 %v86_v8, %v85_v59 }
  0x1c   :  { %v72_v17 = vrot.slane %v71_v13, 2  ;;  %v95_v18 = vrot.slane %v94_v14, 4 }
  0x1d   :  { %v80_v19 = vadd.f32 %v79_v15, %v78_v5  ;;  %v88_v20 = vrot.slane %v87_v16, 2 }
  0x1e   :  { %v73_v21 = vadd.f32 %v72_v17, %v71_v13  ;;  %v96_v22 = vadd.f32 %v95_v18, %v94_v14 }
  0x1f   :  { %v81_v23 = vrot.slane %v80_v19, 2  ;;  %v89_v24 = vadd.f32 %v88_v20, %v87_v16 }
  0x20   :  { %v74_v25 = vrot.slane %v73_v21, 1  ;;  %v97_v26 = vrot.slane %v96_v22, 2 }
  0x21   :  { %v82_v27 = vadd.f32 %v81_v23, %v80_v19  ;;  %v90_v28 = vrot.slane %v89_v24, 1 }
  0x22   :  { %v75_v29 = vadd.f32 %v74_v25, %v73_v21  ;;  %v98_v30 = vadd.f32 %v97_v26, %v96_v22 }
  0x23   :  { %v83_v31 = vrot.slane %v82_v27, 1  ;;  %v91_v32 = vadd.f32 %v90_v28, %v89_v24 }
  0x24   :  { %v101_v33 = vmul.f32 0.06666667, %v75_v29  ;;  %v99_v34 = vrot.slane %v98_v30, 1 }
  0x25   :  { %v84_v35 = vadd.f32 %v83_v31, %v82_v27  ;;  %v103_v36 = vmul.f32 0.06666667, %v91_v32 }
  0x26   :  { %v105_v37 = vadd.f32 0.0001, %v101_v33  ;;  %v100_v38 = vadd.f32 %v99_v34, %v98_v30 }
  0x27   :  { %v102_v39 = vmul.f32 0.06666667, %v84_v35  ;;  %v107_v40 = vadd.f32 0.0001, %v103_v36 }
  0x28   :  { %v109_v41 = vmul.f32 4.0, %v105_v37  ;;  %v104_v42 = vmul.f32 0.06666667, %v100_v38 }
  0x29   :  { %v106_v43 = vadd.f32 0.0001, %v102_v39  ;;  %v111_v44 = vmul.f32 4.0, %v107_v40 }
  0x2a   :  { %193 = vrcp.f32 %v109_v41  ;;  %v108_v45 = vadd.f32 0.0001, %v104_v42 }
  0x2b   :  { %v110_v46 = vmul.f32 4.0, %v106_v43  ;;  %195 = vrcp.f32 %v111_v44 }
  0x2c   :  { %v112_v47 = vmul.f32 4.0, %v108_v45 }
  0x2d   :  { %197 = vrcp.f32 %v110_v46 }
  0x2e   :  { %199 = vrcp.f32 %v112_v47 }
  0x34   :  { %v194_v50 = vpop.eup %193 }
  0x35   :  { %v196_v51 = vpop.eup %195  ;;  %v117_v54 = vmul.f32 %v194_v50, %v61_v48  ;;  %v119_v55 = vmul.f32 %v194_v50, %v63_v49 }
  0x36   :  { %v121_v56 = vmul.f32 %v196_v51, %v65_v52  ;;  %v123_v59 = vmul.f32 %v196_v51, %v67_v53 }
  0x37   :  { %v198_v62 = vpop.eup %197  ;;  %v125_v63 = vadd.f32 0.5, %v117_v54  ;;  %v127_v3 = vadd.f32 0.5, %v119_v55 }
  0x38   :  { %v200_v5 = vpop.eup %199  ;;  %v118_v8 = vmul.f32 %v198_v62, %v62_v57  ;;  %v120_v9 = vmul.f32 %v198_v62, %v64_v58  ;;  %v129_v12 = vadd.f32 0.5, %v121_v56  ;;  %v131_v13 = vadd.f32 0.5, %v123_v59 }
  0x39   :  { %v133_v14 = vsub.f32 0.0, %v125_v63  ;;  %v135_v15 = vsub.f32 0.0, %v127_v3  ;;  %v122_v16 = vmul.f32 %v200_v5, %v303_v60  ;;  %v124_v17 = vmul.f32 %v200_v5, %v305_v61 }
  0x3a   :  { %v126_v18 = vadd.f32 0.5, %v118_v8  ;;  %v128_v19 = vadd.f32 0.5, %v120_v9  ;;  %v137_v48 = vsub.f32 0.0, %v129_v12  ;;  %v139_v49 = vsub.f32 0.0, %v131_v13 }
  0x3b   :  { %v141_v52 = vmul.f32 1.442695, %v133_v14  ;;  %v145_v53 = vmul.f32 1.442695, %v135_v15  ;;  %v130_v20 = vadd.f32 0.5, %v122_v16  ;;  %v132_v21 = vadd.f32 0.5, %v124_v17 }
  0x3c   :  { %v134_v22 = vsub.f32 0.0, %v126_v18  ;;  %v136_v23 = vsub.f32 0.0, %v128_v19  ;;  %v149_v57 = vmul.f32 1.442695, %v137_v48  ;;  %v153_v60 = vmul.f32 1.442695, %v139_v49 }
  0x3d   :  { %201 = vpow2.f32 %v141_v52  ;;  %v138_v58 = vsub.f32 0.0, %v130_v20  ;;  %v140_v24 = vsub.f32 0.0, %v132_v21 }
  0x3e   :  { %203 = vpow2.f32 %v145_v53  ;;  %v143_v25 = vmul.f32 1.442695, %v134_v22  ;;  %v147_v26 = vmul.f32 1.442695, %v136_v23 }
  0x3f   :  { %205 = vpow2.f32 %v149_v57  ;;  %v151_v61 = vmul.f32 1.442695, %v138_v58  ;;  %v155_v27 = vmul.f32 1.442695, %v140_v24 }
  0x40   :  { %207 = vpow2.f32 %v143_v25 }
  0x41   :  { %209 = vpow2.f32 %v147_v26 }
  0x42   :  { %211 = vpow2.f32 %v153_v60 }
  0x43   :  { %213 = vpow2.f32 %v151_v61 }
  0x44   :  { %215 = vpow2.f32 %v155_v27 }
  0x47   :  { %v202_v28 = vpop.eup %201 }
  0x48   :  { %v204_v29 = vpop.eup %203  ;;  %v157_v30 = vadd.f32 1.0, %v202_v28 }
  0x49   :  { %v206_v31 = vpop.eup %205  ;;  %v159_v32 = vadd.f32 1.0, %v204_v29 }
  0x4a   :  { %v208_v33 = vpop.eup %207  ;;  %217 = vrcp.f32 %v157_v30  ;;  %v161_v34 = vadd.f32 1.0, %v206_v31 }
  0x4b   :  { %v210_v35 = vpop.eup %209  ;;  %v158_v36 = vadd.f32 1.0, %v208_v33  ;;  %219 = vrcp.f32 %v159_v32 }
  0x4c   :  { %v212_v37 = vpop.eup %211  ;;  %v160_v38 = vadd.f32 1.0, %v210_v35  ;;  %221 = vrcp.f32 %v161_v34 }
  0x4d   :  { %v214_v39 = vpop.eup %213  ;;  %223 = vrcp.f32 %v158_v36  ;;  %v163_v40 = vadd.f32 1.0, %v212_v37 }
  0x4e   :  { %v216_v41 = vpop.eup %215  ;;  %225 = vrcp.f32 %v160_v38  ;;  %v162_v42 = vadd.f32 1.0, %v214_v39 }
  0x4f   :  { %227 = vrcp.f32 %v163_v40  ;;  %v164_v43 = vadd.f32 1.0, %v216_v41 }
  0x50   :  { %229 = vrcp.f32 %v162_v42 }
  0x51   :  { %231 = vrcp.f32 %v164_v43 }
  0x54   :  { %v218_v44 = vpop.eup %217 }
  0x55   :  { %v220_v45 = vpop.eup %219  ;;  %v173_v46 = vmul.f32 %v218_v44, %v246_v0 }
  0x56   :  { %v222_v47 = vpop.eup %221  ;;  %v175_v50 = vmul.f32 %v220_v45, %v251_v1 }
  0x57   :  { %v224_v51 = vpop.eup %223  ;;  %181 = vst [vmem:[%s352_s1] sm:$0xff] %v173_v46  ;;  %v177_v54 = vmul.f32 %v222_v47, %v270_v6 }
  0x58   :  { %v226_v55 = vpop.eup %225  ;;  %v174_v56 = vmul.f32 %v224_v51, %v256_v2  ;;  %183 = vst [vmem:[%s352_s1 + $0x10] sm:$0xff] %v175_v50 }
  0x59   :  { %v228_v59 = vpop.eup %227  ;;  %v176_v0 = vmul.f32 %v226_v55, %v263_v4  ;;  %185 = vst [vmem:[%s352_s1 + $0x20] sm:$0xff] %v177_v54 }
  0x5a   :  { %v230_v1 = vpop.eup %229  ;;  %182 = vst.msk [vmem:[%s352_s1 + $0x8] sm:$0xff] %vm23_vm0, %v174_v56  ;;  %v179_v6 = vmul.f32 %v228_v59, %v275_v7 }
  0x5b   :  { %v232_v2 = vpop.eup %231  ;;  %184 = vst.msk [vmem:[%s352_s1 + $0x18] sm:$0xff] %vm23_vm0, %v176_v0  ;;  %v178_v4 = vmul.f32 %v230_v1, %v284_v10 }
  0x5c   :  { %187 = vst [vmem:[%s352_s1 + $0x30] sm:$0xff] %v179_v6  ;;  %v180_v62 = vmul.f32 %v232_v2, %v289_v11 }
  0x5d   :  { %186 = vst.msk [vmem:[%s352_s1 + $0x28] sm:$0xff] %vm23_vm0, %v178_v4 }
  0x5e   :  { %188 = vst.msk [vmem:[%s352_s1 + $0x38] sm:$0xff] %vm23_vm0, %v180_v62 }

// kernel: _lambda_.26
= control target key start
LH: loop header
LB: loop body
LE: loop exit
PB: predicated region body
PF: predicated region fallthrough
CT: control target
= control target key end

     0   :  { %s946_s12 = smov 0   ;;  %s1156_s0 = inlined_call_operand.vmem [shape: f32[32,464], index: 0, kind: input, shape index: {}]   ;;  %s1157_s1 = inlined_call_operand.vmem [shape: bf16[464,232], index: 1, kind: input, shape index: {}]   ;;  %s1158_s2 = inlined_call_operand.vmem [shape: f32[1,232], index: 2, kind: input, shape index: {}]   ;;  %s1159_s3 = inlined_call_operand.vmem [shape: f32[32,232], index: 3, kind: output, shape index: {}]  }
   0x1 LB: > { %s729_s13 = sadd.s32 4294967295, %s924_s12   ;;  %p733_p0 = scmp.ge.s32.totalorder %s924_s12, 1  ;;  %s924_s12 = sphi %s946_s12, %s13_s12  }
   0x2   : > { %p139_p1 = scmp.lt.s32.totalorder %s924_s12, 3 }
   0x4   : > { %p140_p2 = pnand %p733_p0, %p139_p1 }
   0x5   : > { %v823_v0 = vld [vmem:[%s1157_s1 + $0x4] ss:$8 sps:$4 sm:$0xff] (!%p140_p2)   ;;  %v825_v1 = vld [vmem:[%s1157_s1] ss:$8 sps:$4 sm:$0xff] (!%p140_p2)   ;;  %v826_v2 = vld [vmem:[%s1157_s1 + $0x14] ss:$8 sps:$4 sm:$0xff] (!%p140_p2)  }
   0x6   : > { %143 = sbr.rel (%p140_p2) target bundleno = 308 (0x134), region = 32  ;;  %556 = vmatprep.subr.bf16.mxu1 (!%p140_p2), %v823_v0  ;;  %v828_v3 = vld [vmem:[%s1157_s1 + $0x10] ss:$8 sps:$4 sm:$0xff] (!%p140_p2)   ;;  %v829_v4 = vld [vmem:[%s1157_s1 + $0x24] ss:$8 sps:$4 sm:$0xff] (!%p140_p2)   ;;  %s734_s10 = sshll.u32 (!%p140_p2), %s729_s13, 1 }
   0x7   : > { %557 = vmatpush1.bf16.msra.mxu1 (!%p140_p2), %v825_v1  ;;  %v832_v5 = vld [vmem:[%s1157_s1 + $0x104] ss:$8 sps:$4 sm:$0xff] (!%p140_p2)   ;;  %v831_v6 = vld [vmem:[%s1157_s1 + $0x20] ss:$8 sps:$4 sm:$0xff] (!%p140_p2)   ;;  %v838_v8 = vld [vmem:[%s1157_s1 + $0x114] ss:$8 sps:$4 sm:$0xff] (!%p140_p2)  }
   0x8   : > { %558 = vmatprep.subr.bf16.mxu1 (!%p140_p2), %v826_v2  ;;  %599 = vmatprep.subr.bf16.mxu0 (!%p140_p2), %v832_v5  ;;  %v836_v7 = vld [vmem:[%s1157_s1 + $0x100] ss:$8 sps:$4 sm:$0xff] (!%p140_p2)   ;;  %v834_v9 = vld [vmem:[%s1157_s1 + $0x34] ss:$8 sps:$4 sm:$0xff] (!%p140_p2)   ;;  %v842_v10 = vld [vmem:[%s1157_s1 + $0x110] ss:$8 sps:$4 sm:$0xff] (!%p140_p2)  }
   0x9   : > { %600 = vmatpush1.bf16.msra.mxu0 (!%p140_p2), %v836_v7  ;;  %v844_v11 = vld [vmem:[%s1157_s1 + $0x124] ss:$8 sps:$4 sm:$0xff] (!%p140_p2)   ;;  %v837_v12 = vld [vmem:[%s1157_s1 + $0x30] ss:$8 sps:$4 sm:$0xff] (!%p140_p2)   ;;  %v848_v14 = vld [vmem:[%s1157_s1 + $0x120] ss:$8 sps:$4 sm:$0xff] (!%p140_p2)  }
   0xa   : > { %601 = vmatprep.subr.bf16.mxu0 (!%p140_p2), %v838_v8  ;;  %v840_v13 = vld [vmem:[%s1157_s1 + $0x44] ss:$8 sps:$4 sm:$0xff] (!%p140_p2)   ;;  %v850_v15 = vld [vmem:[%s1157_s1 + $0x134] ss:$8 sps:$4 sm:$0xff] (!%p140_p2)   ;;  %v843_v16 = vld [vmem:[%s1157_s1 + $0x40] ss:$8 sps:$4 sm:$0xff] (!%p140_p2)  }
   0xb   : > { %559 = vmatpush1.bf16.msra.mxu1 (!%p140_p2), %v828_v3  ;;  %v846_v17 = vld [vmem:[%s1157_s1 + $0x54] ss:$8 sps:$4 sm:$0xff] (!%p140_p2)   ;;  %v854_v18 = vld [vmem:[%s1157_s1 + $0x130] ss:$8 sps:$4 sm:$0xff] (!%p140_p2)   ;;  %v856_v19 = vld [vmem:[%s1157_s1 + $0x144] ss:$8 sps:$4 sm:$0xff] (!%p140_p2)  }
   0xc   : > { %560 = vmatprep.subr.bf16.mxu1 (!%p140_p2), %v829_v4  ;;  %v849_v20 = vld [vmem:[%s1157_s1 + $0x50] ss:$8 sps:$4 sm:$0xff] (!%p140_p2)   ;;  %v852_v21 = vld [vmem:[%s1157_s1 + $0x64] ss:$8 sps:$4 sm:$0xff] (!%p140_p2)   ;;  %v860_v22 = vld [vmem:[%s1157_s1 + $0x140] ss:$8 sps:$4 sm:$0xff] (!%p140_p2)  }
   0xd   : > { %602 = vmatpush1.bf16.msra.mxu0 %v842_v10  ;;  %v862_v23 = vld [vmem:[%s1157_s1 + $0x154] ss:$8 sps:$4 sm:$0xff]   ;;  %v855_v24 = vld [vmem:[%s1157_s1 + $0x60] ss:$8 sps:$4 sm:$0xff]   ;;  %v866_v26 = vld [vmem:[%s1157_s1 + $0x150] ss:$8 sps:$4 sm:$0xff]  }
   0xe   : > { %603 = vmatprep.subr.bf16.mxu0 %v844_v11  ;;  %v858_v25 = vld [vmem:[%s1157_s1 + $0x74] ss:$8 sps:$4 sm:$0xff]   ;;  %p166_p3 = scmp.lt.s32.totalorder %s734_s10, 3  ;;  %v868_v27 = vld [vmem:[%s1157_s1 + $0x164] ss:$8 sps:$4 sm:$0xff]   ;;  %vm552_vm0 = vcmask 654336  }
   0xf   : > { %561 = vmatpush1.bf16.msra.mxu1 %v831_v6  ;;  %v861_v28 = vld [vmem:[%s1157_s1 + $0x70] ss:$8 sps:$4 sm:$0xff]   ;;  %v864_v29 = vld [vmem:[%s1157_s1 + $0x84] ss:$8 sps:$4 sm:$0xff]   ;;  %v872_v30 = vld [vmem:[%s1157_s1 + $0x160] ss:$8 sps:$4 sm:$0xff]   ;;  %v252_v6 = vlaneseq }
  0x10   : > { %562 = vmatprep.subr.bf16.mxu1 %v834_v9  ;;  %s1161_s10 = smov (!%p166_p3, %s734_s10), 3  ;;  %v874_v31 = vld [vmem:[%s1157_s1 + $0x174] ss:$8 sps:$4 sm:$0xff]   ;;  %v867_v32 = vld [vmem:[%s1157_s1 + $0x80] ss:$8 sps:$4 sm:$0xff]   ;;  %vm667_vm2 = vcmask 850944  }
  0x11   : > { %604 = vmatpush1.bf16.msra.mxu0 %v848_v14  ;;  %v870_v33 = vld [vmem:[%s1157_s1 + $0x94] ss:$8 sps:$4 sm:$0xff]   ;;  %v878_v34 = vld [vmem:[%s1157_s1 + $0x170] ss:$8 sps:$4 sm:$0xff]   ;;  %s805_s7 = sshll.u32 %s1161_s10, 5  ;;  %v253_v7 = vshrl.u32 %v252_v6, 7 }
  0x12   : > { %605 = vmatprep.subr.bf16.mxu0 %v850_v15  ;;  %v880_v35 = vld [vmem:[%s1157_s1 + $0x184] ss:$8 sps:$4 sm:$0xff]   ;;  %v873_v36 = vld [vmem:[%s1157_s1 + $0x90] ss:$8 sps:$4 sm:$0xff]   ;;  %s1076_s19 = scalar_lea.vmem %s1156_s0, %s805_s7  ;;  %v884_v38 = vld [vmem:[%s1157_s1 + $0x180] ss:$8 sps:$4 sm:$0xff]  }
  0x13   : > { %563 = vmatpush1.bf16.msra.mxu1 %v837_v12  ;;  %v876_v37 = vld [vmem:[%s1157_s1 + $0xa4] ss:$8 sps:$4 sm:$0xff]   ;;  %v886_v39 = vld [vmem:[%s1157_s1 + $0x194] ss:$8 sps:$4 sm:$0xff]   ;;  %v879_v40 = vld [vmem:[%s1157_s1 + $0xa0] ss:$8 sps:$4 sm:$0xff]  }
  0x14   : > { %564 = vmatprep.subr.bf16.mxu1 %v840_v13  ;;  %v183_v41 = vld [vmem:[%s1076_s19 + $0x18] sm:$0xff]  ;;  %v181_v43 = vld [vmem:[%s1076_s19 + $0x8] sm:$0xff]  ;;  %v182_v61 = vld [vmem:[%s1076_s19 + $0x10] sm:$0xff]  ;;  %v254_v9 = vsub.s32 0, %v253_v7  ;;  %v258_v12 = vsub.s32 1, %v253_v7 }
  0x15   : > { %606 = vmatpush1.bf16.msra.mxu0 %v854_v18  ;;  %v187_v42 = vld [vmem:[%s1076_s19 + $0x38] sm:$0xff]  ;;  %v185_v44 = vld [vmem:[%s1076_s19 + $0x28] sm:$0xff]  ;;  %v186_v62 = vld [vmem:[%s1076_s19 + $0x30] sm:$0xff] }
  0x16   : > { %607 = vmatprep.subr.bf16.mxu0 %v856_v19  ;;  %v882_v45 = vld [vmem:[%s1157_s1 + $0xb4] ss:$8 sps:$4 sm:$0xff]   ;;  %v890_v46 = vld [vmem:[%s1157_s1 + $0x190] ss:$8 sps:$4 sm:$0xff]   ;;  %v191_v47 = vpack.c.bf16 %v187_v42, %v183_v41  ;;  %v189_v48 = vpack.c.bf16 %v185_v44, %v181_v43  ;;  %v892_v49 = vld [vmem:[%s1157_s1 + $0x1a4] ss:$8 sps:$4 sm:$0xff]   ;;  %v190_v0 = vpack.c.bf16 %v186_v62, %v182_v61 }
  0x17   : > { %565 = vmatpush1.bf16.msra.mxu1 %v843_v16  ;;  %v885_v50 = vld [vmem:[%s1157_s1 + $0xb0] ss:$8 sps:$4 sm:$0xff]   ;;  %v888_v51 = vld [vmem:[%s1157_s1 + $0xc4] ss:$8 sps:$4 sm:$0xff]   ;;  %v896_v52 = vld [vmem:[%s1157_s1 + $0x1a0] ss:$8 sps:$4 sm:$0xff]  }
  0x18   : > { %566 = vmatprep.subr.bf16.mxu1 %v846_v17  ;;  %798 = vmatprep.mubr.msk.bf16.mxu0 %vm552_vm0, %v191_v47  ;;  %v898_v53 = vld [vmem:[%s1157_s1 + $0x1b4] ss:$8 sps:$4 sm:$0xff]   ;;  %v891_v54 = vld [vmem:[%s1157_s1 + $0xc0] ss:$8 sps:$4 sm:$0xff]   ;;  %v902_v56 = vld [vmem:[%s1157_s1 + $0x1b0] ss:$8 sps:$4 sm:$0xff]  }
  0x19   : > { %608 = vmatpush1.bf16.msra.mxu0 %v860_v22  ;;  %588 = vmatprep.mubr.bf16.mxu1 %v189_v48  ;;  %v894_v55 = vld [vmem:[%s1157_s1 + $0xd4] ss:$8 sps:$4 sm:$0xff]   ;;  %v904_v57 = vld [vmem:[%s1157_s1 + $0x1c4] ss:$8 sps:$4 sm:$0xff]   ;;  %v897_v58 = vld [vmem:[%s1157_s1 + $0xd0] ss:$8 sps:$4 sm:$0xff]  }
  0x1a   : > { %609 = vmatprep.subr.bf16.mxu0 %v862_v23  ;;  %v900_v59 = vld [vmem:[%s1157_s1 + $0xe4] ss:$8 sps:$4 sm:$0xff]   ;;  %v908_v60 = vld [vmem:[%s1157_s1 + $0x1c0] ss:$8 sps:$4 sm:$0xff]   ;;  %v906_v1 = vld [vmem:[%s1157_s1 + $0xf4] ss:$8 sps:$4 sm:$0xff]  }
  0x1b   : > { %567 = vmatpush1.bf16.msra.mxu1 %v849_v20  ;;  %v903_v63 = vld [vmem:[%s1157_s1 + $0xe0] ss:$8 sps:$4 sm:$0xff]   ;;  %v909_v2 = vld [vmem:[%s1157_s1 + $0xf0] ss:$8 sps:$4 sm:$0xff]  }
  0x1c   : > { %568 = vmatprep.subr.bf16.mxu1 %v852_v21  ;;  %v180_v3 = vld [vmem:[%s1076_s19] sm:$0xff] }
  0x1d   : > { %610 = vmatpush1.bf16.msra.mxu0 %v866_v26  ;;  %v184_v4 = vld [vmem:[%s1076_s19 + $0x20] sm:$0xff]  ;;  %s806_s19 = sshll.u32 %s1161_s10, 4 }
  0x1e   : > { %611 = vmatprep.subr.bf16.mxu0 %v868_v27  ;;  %v188_v5 = vpack.c.bf16 %v184_v4, %v180_v3  ;;  %v250_v10 = vld [vmem:[%s1158_s2] sm:$0x3]  ;;  %s177_s15 = scalar_lea.vmem %s1159_s3, %s806_s19 }
  0x1f   : > { %569 = vmatpush1.bf16.msra.mxu1 %v855_v24  ;;  %v255_v15 = vrot.slane %v250_v10, %v254_v9  ;;  %v259_v16 = vrot.slane %v250_v10, %v258_v12 }
  0x20   : > { %570 = vmatprep.subr.bf16.mxu1 %v858_v25 }
  0x21   : > { %612 = vmatpush1.bf16.msra.mxu0 %v872_v30 }
  0x22   : > { %613 = vmatprep.subr.bf16.mxu0 %v874_v31 }
  0x23   : > { %571 = vmatpush1.bf16.msra.mxu1 %v861_v28 }
  0x24   : > { %572 = vmatprep.subr.bf16.mxu1 %v864_v29 }
  0x25   : > { %614 = vmatpush1.bf16.msra.mxu0 %v878_v34 }
  0x26   : > { %615 = vmatprep.subr.bf16.mxu0 %v880_v35 }
  0x27   : > { %573 = vmatpush1.bf16.msra.mxu1 %v867_v32 }
  0x28   : > { %574 = vmatprep.subr.bf16.mxu1 %v870_v33 }
  0x29   : > { %616 = vmatpush1.bf16.msra.mxu0 %v884_v38 }
  0x2a   : > { %617 = vmatprep.subr.bf16.mxu0 %v886_v39 }
  0x2b   : > { %575 = vmatpush1.bf16.msra.mxu1 %v873_v36 }
  0x2c   : > { %576 = vmatprep.subr.bf16.mxu1 %v876_v37 }
  0x2d   : > { %618 = vmatpush1.bf16.msra.mxu0 %v890_v46 }
  0x2e   : > { %619 = vmatprep.subr.bf16.mxu0 %v892_v49 }
  0x2f   : > { %577 = vmatpush1.bf16.msra.mxu1 %v879_v40 }
  0x30   : > { %578 = vmatprep.subr.bf16.mxu1 %v882_v45 }
  0x31   : > { %620 = vmatpush1.bf16.msra.mxu0 %v896_v52 }
  0x32   : > { %621 = vmatprep.subr.bf16.mxu0 %v898_v53 }
  0x33   : > { %579 = vmatpush1.bf16.msra.mxu1 %v885_v50 }
  0x34   : > { %580 = vmatprep.subr.bf16.mxu1 %v888_v51 }
  0x35   : > { %622 = vmatpush1.bf16.msra.mxu0 %v902_v56 }
  0x36   : > { %623 = vmatprep.subr.bf16.mxu0 %v904_v57 }
  0x37   : > { %581 = vmatpush1.bf16.msra.mxu1 %v891_v54 }
  0x38   : > { %582 = vmatprep.subr.bf16.mxu1 %v894_v55 }
  0x39   : > { %624 = vmatpush1.bf16.msra.mxu0 %v908_v60 }
  0x3b   : > { %583 = vmatpush1.bf16.msra.mxu1 %v897_v58 }
  0x3c   : > { %584 = vmatprep.subr.bf16.mxu1 %v900_v59  ;;  %632 = vmatmul.mubr.bf16.vlgmr.msra.gmra.mrb[0].mxu0 %v190_v0 }
  0x3f   : > { %585 = vmatpush1.bf16.msra.mxu1 %v903_v63 }
  0x40   : > { %586 = vmatprep.subr.bf16.mxu1 %v906_v1 }
  0x43   : > { %587 = vmatpush1.bf16.msra.mxu1 %v909_v2 }
  0x46   : > { %589 = vmatmul.mubr.bf16.vlgmr.msra.gmra.mrb[0].mxu1 %v188_v5 }
 0x10f   : > { %v633_v8 = vpop.f32.mrb[0].mxu0 }
 0x110   : > { %v635_v11 = vpop.f32.mrb[1].mxu0 }
 0x111   : > { %v637_v13 = vpop.f32.mrb[2].mxu0 }
 0x112   : > { %v639_v14 = vpop.f32.mrb[3].mxu0 }
 0x119   : > { %v590_v17 = vpop.f32.mrb[0].mxu1 }
 0x11a   : > { %v591_v18 = vadd.f32 %v590_v17, %v255_v15  ;;  %v592_v19 = vpop.f32.mrb[1].mxu1 }
 0x11b   : > { %v593_v20 = vadd.f32 %v592_v19, %v259_v16  ;;  %v594_v21 = vpop.f32.mrb[2].mxu1 }
 0x11c   : > { %v634_v22 = vadd.f32 %v633_v8, %v591_v18  ;;  %v595_v23 = vadd.f32 %v594_v21, %v255_v15  ;;  %v596_v24 = vpop.f32.mrb[3].mxu1 }
 0x11d   : > { %v636_v25 = vadd.f32 %v635_v11, %v593_v20  ;;  %v597_v26 = vadd.f32 %v596_v24, %v259_v16 }
 0x11e   : > { %v646_v27 = vmin.f32 %v634_v22, 0.0  ;;  %v638_v28 = vadd.f32 %v637_v13, %v595_v23  ;;  %vm642_vm1 = vcmp.gt.f32.partialorder %v634_v22, 0.0 }
 0x11f   : > { %v647_v29 = vmin.f32 %v636_v25, 0.0  ;;  %v640_v30 = vadd.f32 %v639_v14, %v597_v26  ;;  %vm643_vm3 = vcmp.gt.f32.partialorder %v636_v25, 0.0 }
 0x120   : > { %v650_v31 = vmul.f32 1.442695, %v646_v27  ;;  %v648_v32 = vmin.f32 %v638_v28, 0.0  ;;  %vm644_vm4 = vcmp.gt.f32.partialorder %v638_v28, 0.0 }
 0x121   : > { %v652_v33 = vmul.f32 1.442695, %v647_v29  ;;  %v649_v34 = vmin.f32 %v640_v30, 0.0  ;;  %vm645_vm5 = vcmp.gt.f32.partialorder %v640_v30, 0.0 }
 0x122   : > { %910 = vpow2.f32 %v650_v31  ;;  %v654_v35 = vmul.f32 1.442695, %v648_v32 }
 0x123   : > { %912 = vpow2.f32 %v652_v33  ;;  %v656_v36 = vmul.f32 1.442695, %v649_v34 }
 0x124   : > { %914 = vpow2.f32 %v654_v35 }
 0x125   : > { %916 = vpow2.f32 %v656_v36 }
 0x12c   : > { %v911_v37 = vpop.eup %910 }
 0x12d   : > { %v913_v38 = vpop.eup %912  ;;  %v799_v39 = vadd.f32 -1.0, %v911_v37 }
 0x12e   : > { %v915_v40 = vpop.eup %914  ;;  %v800_v41 = vadd.f32 -1.0, %v913_v38 }
 0x12f   : > { %v917_v42 = vpop.eup %916  ;;  %v662_v43 = vsel %vm642_vm1, %v634_v22, %v799_v39  ;;  %v801_v44 = vadd.f32 -1.0, %v915_v40 }
 0x130   : > { %666 = vst [vmem:[%s177_s15] sm:$0xff] %v662_v43  ;;  %v663_v45 = vsel %vm643_vm3, %v636_v25, %v800_v41  ;;  %v802_v46 = vadd.f32 -1.0, %v917_v42 }
 0x131   : > { %668 = vst.msk [vmem:[%s177_s15 + $0x8] sm:$0xff] %vm667_vm2, %v663_v45  ;;  %v664_v47 = vsel %vm644_vm4, %v638_v28, %v801_v44 }
 0x132   : > { %669 = vst [vmem:[%s177_s15 + $0x10] sm:$0xff] %v664_v47  ;;  %v665_v48 = vsel %vm645_vm5, %v640_v30, %v802_v46 }
 0x133   : > { %670 = vst.msk [vmem:[%s177_s15 + $0x18] sm:$0xff] %vm667_vm2, %v665_v48 }
 0x134 PF: > { %s13_s12 = sadd.s32 1, %s924_s12  }
 0x135   : > { %p10_p4 = scmp.ge.s32.totalorder %s13_s12, 4  }
 0x137   :  { %12 = sbr.rel (!%p10_p4) target bundleno = 1 (0x1), region = 62 }

// kernel: _lambda_.27
= control target key start
LH: loop header
LB: loop body
LE: loop exit
PB: predicated region body
PF: predicated region fallthrough
CT: control target
= control target key end

     0   :  { %vm205_vm0 = vcmask 850944   ;;  %vm209_vm1 = vcmask 1043456   ;;  %v50_v36 = vlaneseq  ;;  %s465_s1 = inlined_call_operand.vmem [shape: bf16[232,232], index: 1, kind: input, shape index: {}]   ;;  %s466_s0 = inlined_call_operand.vmem [shape: f32[8,232], index: 0, kind: input, shape index: {}]   ;;  %s467_s2 = inlined_call_operand.vmem [shape: f32[1,232], index: 2, kind: input, shape index: {}]   ;;  %s468_s3 = inlined_call_operand.vmem [shape: f32[8,232], index: 3, kind: output, shape index: {}]  }
   0x1   :  { %v297_v0 = vld [vmem:[%s465_s1 + $0x4] ss:$8 sps:$4 sm:$0xff]   ;;  %v299_v1 = vld [vmem:[%s465_s1] ss:$8 sps:$4 sm:$0xff]   ;;  %v300_v2 = vld [vmem:[%s465_s1 + $0x14] ss:$8 sps:$4 sm:$0xff]  }
   0x2   :  { %216 = vmatprep.subr.bf16.mxu0 %v297_v0  ;;  %v302_v3 = vld [vmem:[%s465_s1 + $0x10] ss:$8 sps:$4 sm:$0xff]   ;;  %v303_v4 = vld [vmem:[%s465_s1 + $0x24] ss:$8 sps:$4 sm:$0xff]   ;;  %v305_v5 = vld [vmem:[%s465_s1 + $0x20] ss:$8 sps:$4 sm:$0xff]  }
   0x3   :  { %217 = vmatpush1.bf16.msra.mxu0 %v299_v1  ;;  %v306_v6 = vld [vmem:[%s465_s1 + $0x34] ss:$8 sps:$4 sm:$0xff]   ;;  %v308_v7 = vld [vmem:[%s465_s1 + $0x30] ss:$8 sps:$4 sm:$0xff]   ;;  %v309_v8 = vld [vmem:[%s465_s1 + $0x44] ss:$8 sps:$4 sm:$0xff]  }
   0x4   :  { %218 = vmatprep.subr.bf16.mxu0 %v300_v2  ;;  %v311_v9 = vld [vmem:[%s465_s1 + $0x40] ss:$8 sps:$4 sm:$0xff]   ;;  %v312_v10 = vld [vmem:[%s465_s1 + $0x54] ss:$8 sps:$4 sm:$0xff]   ;;  %v314_v11 = vld [vmem:[%s465_s1 + $0x50] ss:$8 sps:$4 sm:$0xff]  }
   0x5   :  { %v16_v12 = vld [vmem:[%s466_s0 + $0x8] sm:$0xff]  ;;  %v318_v16 = vld [vmem:[%s465_s1 + $0x74] ss:$8 sps:$4 sm:$0xff]   ;;  %v320_v17 = vld [vmem:[%s465_s1 + $0x70] ss:$8 sps:$4 sm:$0xff]   ;;  %v51_v37 = vshrl.u32 %v50_v36, 7 }
   0x6   :  { %v315_v13 = vld [vmem:[%s465_s1 + $0x64] ss:$8 sps:$4 sm:$0xff]   ;;  %v18_v14 = vpack.c.bf16 %v16_v12, %v16_v12  ;;  %v317_v15 = vld [vmem:[%s465_s1 + $0x60] ss:$8 sps:$4 sm:$0xff]   ;;  %v324_v20 = vld [vmem:[%s465_s1 + $0x94] ss:$8 sps:$4 sm:$0xff]  }
   0x7   :  { %219 = vmatpush1.bf16.msra.mxu0 %v302_v3  ;;  %v321_v18 = vld [vmem:[%s465_s1 + $0x84] ss:$8 sps:$4 sm:$0xff]   ;;  %v323_v19 = vld [vmem:[%s465_s1 + $0x80] ss:$8 sps:$4 sm:$0xff]   ;;  %v326_v21 = vld [vmem:[%s465_s1 + $0x90] ss:$8 sps:$4 sm:$0xff]  }
   0x8   :  { %220 = vmatprep.subr.bf16.mxu0 %v303_v4  ;;  %296 = vmatprep.mubr.msk.bf16.mxu0 %vm205_vm0, %v18_v14  ;;  %v327_v22 = vld [vmem:[%s465_s1 + $0xa4] ss:$8 sps:$4 sm:$0xff]   ;;  %v329_v23 = vld [vmem:[%s465_s1 + $0xa0] ss:$8 sps:$4 sm:$0xff]   ;;  %v330_v24 = vld [vmem:[%s465_s1 + $0xb4] ss:$8 sps:$4 sm:$0xff]  }
   0x9   :  { %v332_v25 = vld [vmem:[%s465_s1 + $0xb0] ss:$8 sps:$4 sm:$0xff]   ;;  %v333_v26 = vld [vmem:[%s465_s1 + $0xc4] ss:$8 sps:$4 sm:$0xff]   ;;  %v335_v27 = vld [vmem:[%s465_s1 + $0xc0] ss:$8 sps:$4 sm:$0xff]  }
   0xa   :  { %v336_v28 = vld [vmem:[%s465_s1 + $0xd4] ss:$8 sps:$4 sm:$0xff]   ;;  %v47_v29 = vld [vmem:[%s465_s1 + $0xe0] sm:$0xff]  ;;  %v338_v30 = vld [vmem:[%s465_s1 + $0xd0] ss:$8 sps:$4 sm:$0xff]   ;;  %v52_v38 = vsub.s32 0, %v51_v37 }
   0xb   :  { %221 = vmatpush1.bf16.msra.mxu0 %v305_v5  ;;  %v294_v31 = vcombine.high %v47_v29, %v47_v29  ;;  %v293_v32 = vcombine.low %v47_v29, %v47_v29  ;;  %v15_v33 = vld [vmem:[%s466_s0] sm:$0xff]  ;;  %v56_v40 = vsub.s32 1, %v51_v37 }
   0xc   :  { %222 = vmatprep.subr.bf16.mxu0 %v306_v6  ;;  %v17_v35 = vpack.c.bf16 %v15_v33, %v15_v33  ;;  %v48_v39 = vld [vmem:[%s467_s2] sm:$0x3] }
   0xd   :  { %v211_v34 = vsel %vm209_vm1, %v293_v32, 0  ;;  %v53_v41 = vrot.slane %v48_v39, %v52_v38  ;;  %v57_v42 = vrot.slane %v48_v39, %v56_v40 }
   0xf   :  { %223 = vmatpush1.bf16.msra.mxu0 %v308_v7 }
  0x10   :  { %224 = vmatprep.subr.bf16.mxu0 %v309_v8 }
  0x13   :  { %225 = vmatpush1.bf16.msra.mxu0 %v311_v9 }
  0x14   :  { %226 = vmatprep.subr.bf16.mxu0 %v312_v10 }
  0x17   :  { %227 = vmatpush1.bf16.msra.mxu0 %v314_v11 }
  0x18   :  { %228 = vmatprep.subr.bf16.mxu0 %v315_v13 }
  0x1b   :  { %229 = vmatpush1.bf16.msra.mxu0 %v317_v15 }
  0x1c   :  { %230 = vmatprep.subr.bf16.mxu0 %v318_v16 }
  0x1f   :  { %231 = vmatpush1.bf16.msra.mxu0 %v320_v17 }
  0x20   :  { %232 = vmatprep.subr.bf16.mxu0 %v321_v18 }
  0x23   :  { %233 = vmatpush1.bf16.msra.mxu0 %v323_v19 }
  0x24   :  { %234 = vmatprep.subr.bf16.mxu0 %v324_v20 }
  0x27   :  { %235 = vmatpush1.bf16.msra.mxu0 %v326_v21 }
  0x28   :  { %236 = vmatprep.subr.bf16.mxu0 %v327_v22 }
  0x2b   :  { %237 = vmatpush1.bf16.msra.mxu0 %v329_v23 }
  0x2c   :  { %238 = vmatprep.subr.bf16.mxu0 %v330_v24 }
  0x2f   :  { %239 = vmatpush1.bf16.msra.mxu0 %v332_v25 }
  0x30   :  { %240 = vmatprep.subr.bf16.mxu0 %v333_v26 }
  0x33   :  { %241 = vmatpush1.bf16.msra.mxu0 %v335_v27 }
  0x34   :  { %242 = vmatprep.subr.bf16.mxu0 %v336_v28 }
  0x37   :  { %243 = vmatpush1.bf16.msra.mxu0 %v338_v30 }
  0x38   :  { %295 = vmatprep.subr.msk.bf16.mxu0 %vm209_vm1, %v294_v31 }
  0x3b   :  { %245 = vmatpush1.bf16.msra.mxu0 %v211_v34 }
  0x3e   :  { %249 = vmatmul.mubr.bf16.vlgmr.msra.gmra.mrb[0].mxu0 %v17_v35 }
 0x111   :  { %v250_v43 = vpop.f32.mrb[0].mxu0 }
 0x112   :  { %v251_v44 = vadd.f32 %v250_v43, %v53_v41  ;;  %v252_v45 = vpop.f32.mrb[1].mxu0 }
 0x113   :  { %v253_v46 = vadd.f32 %v252_v45, %v57_v42  ;;  %v254_v47 = vpop.f32.mrb[2].mxu0 }
 0x114   :  { %v257_v48 = vmax.f32 %v251_v44, 0.0  ;;  %v255_v49 = vpop.f32.mrb[3].mxu0 }
 0x115   :  { %v258_v50 = vmax.f32 %v253_v46, 0.0 }
 0x116   :  { %259 = vst [vmem:[%s468_s3] sm:$0xff] %v257_v48 }
 0x117   :  { %260 = vst.msk [vmem:[%s468_s3 + $0x8] sm:$0xff] %vm205_vm0, %v258_v50 }

// kernel: _lambda_.28
= control target key start
LH: loop header
LB: loop body
LE: loop exit
PB: predicated region body
PF: predicated region fallthrough
CT: control target
= control target key end

     0   :  { %s619_s12 = smov 0   ;;  %s742_s0 = inlined_call_operand.vmem [shape: f32[32,232], index: 0, kind: input, shape index: {}]   ;;  %s743_s1 = inlined_call_operand.vmem [shape: bf16[232,232], index: 1, kind: input, shape index: {}]   ;;  %s744_s2 = inlined_call_operand.vmem [shape: f32[1,232], index: 2, kind: input, shape index: {}]   ;;  %s745_s3 = inlined_call_operand.vmem [shape: f32[32,232], index: 3, kind: output, shape index: {}]  }
   0x1 LB: > { %s492_s13 = sadd.s32 4294967295, %s597_s12   ;;  %p496_p0 = scmp.ge.s32.totalorder %s597_s12, 1  ;;  %s597_s12 = sphi %s619_s12, %s13_s12  }
   0x2   : > { %p139_p1 = scmp.lt.s32.totalorder %s597_s12, 3 }
   0x4   : > { %p140_p2 = pnand %p496_p0, %p139_p1 }
   0x5   : > { %v547_v0 = vld [vmem:[%s743_s1 + $0x4] ss:$8 sps:$4 sm:$0xff] (!%p140_p2)   ;;  %v549_v1 = vld [vmem:[%s743_s1] ss:$8 sps:$4 sm:$0xff] (!%p140_p2)   ;;  %v550_v2 = vld [vmem:[%s743_s1 + $0x14] ss:$8 sps:$4 sm:$0xff] (!%p140_p2)   ;;  %v217_v38 = vlaneseq (!%p140_p2) }
   0x6   : > { %143 = sbr.rel (%p140_p2) target bundleno = 286 (0x11e), region = 32  ;;  %383 = vmatprep.subr.bf16.mxu0 (!%p140_p2), %v547_v0  ;;  %s497_s20 = sshll.u32 (!%p140_p2), %s492_s13, 1  ;;  %v552_v3 = vld [vmem:[%s743_s1 + $0x10] ss:$8 sps:$4 sm:$0xff] (!%p140_p2)   ;;  %v553_v4 = vld [vmem:[%s743_s1 + $0x24] ss:$8 sps:$4 sm:$0xff] (!%p140_p2)  }
   0x7   : > { %384 = vmatpush1.bf16.msra.mxu0 (!%p140_p2), %v549_v1  ;;  %p166_p3 = scmp.lt.s32.totalorder (!%p140_p2), %s497_s20, 3  ;;  %v555_v5 = vld [vmem:[%s743_s1 + $0x20] ss:$8 sps:$4 sm:$0xff] (!%p140_p2)   ;;  %v556_v6 = vld [vmem:[%s743_s1 + $0x34] ss:$8 sps:$4 sm:$0xff] (!%p140_p2)   ;;  %vm372_vm0 = vcmask (!%p140_p2), 850944  }
   0x8   : > { %385 = vmatprep.subr.bf16.mxu0 (!%p140_p2), %v550_v2  ;;  %v558_v7 = vld [vmem:[%s743_s1 + $0x30] ss:$8 sps:$4 sm:$0xff] (!%p140_p2)   ;;  %v559_v8 = vld [vmem:[%s743_s1 + $0x44] ss:$8 sps:$4 sm:$0xff] (!%p140_p2)   ;;  %v561_v9 = vld [vmem:[%s743_s1 + $0x40] ss:$8 sps:$4 sm:$0xff] (!%p140_p2)  }
   0x9   : > { %v562_v10 = vld [vmem:[%s743_s1 + $0x54] ss:$8 sps:$4 sm:$0xff] (!%p140_p2)   ;;  %v564_v11 = vld [vmem:[%s743_s1 + $0x50] ss:$8 sps:$4 sm:$0xff] (!%p140_p2)   ;;  %v565_v14 = vld [vmem:[%s743_s1 + $0x64] ss:$8 sps:$4 sm:$0xff] (!%p140_p2)  }
   0xa   : > { %v567_v16 = vld [vmem:[%s743_s1 + $0x60] ss:$8 sps:$4 sm:$0xff] (!%p140_p2)   ;;  %v568_v17 = vld [vmem:[%s743_s1 + $0x74] ss:$8 sps:$4 sm:$0xff] (!%p140_p2)   ;;  %v570_v18 = vld [vmem:[%s743_s1 + $0x70] ss:$8 sps:$4 sm:$0xff] (!%p140_p2)  }
   0xb   : > { %386 = vmatpush1.bf16.msra.mxu0 (!%p140_p2), %v552_v3  ;;  %v571_v19 = vld [vmem:[%s743_s1 + $0x84] ss:$8 sps:$4 sm:$0xff] (!%p140_p2)   ;;  %v573_v20 = vld [vmem:[%s743_s1 + $0x80] ss:$8 sps:$4 sm:$0xff] (!%p140_p2)   ;;  %v574_v21 = vld [vmem:[%s743_s1 + $0x94] ss:$8 sps:$4 sm:$0xff] (!%p140_p2)  }
   0xc   : > { %387 = vmatprep.subr.bf16.mxu0 (!%p140_p2), %v553_v4  ;;  %v576_v22 = vld [vmem:[%s743_s1 + $0x90] ss:$8 sps:$4 sm:$0xff] (!%p140_p2)   ;;  %v577_v23 = vld [vmem:[%s743_s1 + $0xa4] ss:$8 sps:$4 sm:$0xff] (!%p140_p2)   ;;  %v579_v24 = vld [vmem:[%s743_s1 + $0xa0] ss:$8 sps:$4 sm:$0xff] (!%p140_p2)  }
   0xd   : > { %s747_s20 = smov (!%p166_p3, %s497_s20), 3  ;;  %v580_v25 = vld [vmem:[%s743_s1 + $0xb4] ss:$8 sps:$4 sm:$0xff]   ;;  %v582_v26 = vld [vmem:[%s743_s1 + $0xb0] ss:$8 sps:$4 sm:$0xff]   ;;  %v214_v30 = vld [vmem:[%s743_s1 + $0xe0] sm:$0xff] }
   0xe   : > { %s537_s6 = sshll.u32 %s747_s20, 4  ;;  %v583_v27 = vld [vmem:[%s743_s1 + $0xc4] ss:$8 sps:$4 sm:$0xff]   ;;  %v585_v28 = vld [vmem:[%s743_s1 + $0xc0] ss:$8 sps:$4 sm:$0xff]   ;;  %v532_v32 = vcombine.high %v214_v30, %v214_v30  ;;  %v531_v33 = vcombine.low %v214_v30, %v214_v30  ;;  %vm376_vm1 = vcmask 1043456  }
   0xf   : > { %388 = vmatpush1.bf16.msra.mxu0 %v555_v5  ;;  %s668_s14 = scalar_lea.vmem %s742_s0, %s537_s6  ;;  %v586_v29 = vld [vmem:[%s743_s1 + $0xd4] ss:$8 sps:$4 sm:$0xff]   ;;  %v588_v31 = vld [vmem:[%s743_s1 + $0xd0] ss:$8 sps:$4 sm:$0xff]   ;;  %v218_v39 = vshrl.u32 %v217_v38, 7  ;;  %s177_s5 = scalar_lea.vmem %s745_s3, %s537_s6 }
  0x10   : > { %389 = vmatprep.subr.bf16.mxu0 %v556_v6  ;;  %v181_v12 = vld [vmem:[%s668_s14 + $0x8] sm:$0xff]  ;;  %v183_v13 = vld [vmem:[%s668_s14 + $0x18] sm:$0xff]  ;;  %v180_v34 = vld [vmem:[%s668_s14] sm:$0xff]  ;;  %v378_v36 = vsel %vm376_vm1, %v531_v33, 0 }
  0x11   : > { %v185_v15 = vpack.c.bf16 %v183_v13, %v181_v12  ;;  %v182_v35 = vld [vmem:[%s668_s14 + $0x10] sm:$0xff]  ;;  %v219_v40 = vsub.s32 0, %v218_v39  ;;  %v215_v41 = vld [vmem:[%s744_s2] sm:$0x3]  ;;  %v223_v42 = vsub.s32 1, %v218_v39 }
  0x12   : > { %v184_v37 = vpack.c.bf16 %v182_v35, %v180_v34 }
  0x13   : > { %390 = vmatpush1.bf16.msra.mxu0 %v558_v7  ;;  %534 = vmatprep.mubr.msk.bf16.mxu0 %vm372_vm0, %v185_v15  ;;  %v220_v43 = vrot.slane %v215_v41, %v219_v40  ;;  %v224_v44 = vrot.slane %v215_v41, %v223_v42 }
  0x14   : > { %391 = vmatprep.subr.bf16.mxu0 %v559_v8 }
  0x17   : > { %392 = vmatpush1.bf16.msra.mxu0 %v561_v9 }
  0x18   : > { %393 = vmatprep.subr.bf16.mxu0 %v562_v10 }
  0x1b   : > { %394 = vmatpush1.bf16.msra.mxu0 %v564_v11 }
  0x1c   : > { %395 = vmatprep.subr.bf16.mxu0 %v565_v14 }
  0x1f   : > { %396 = vmatpush1.bf16.msra.mxu0 %v567_v16 }
  0x20   : > { %397 = vmatprep.subr.bf16.mxu0 %v568_v17 }
  0x23   : > { %398 = vmatpush1.bf16.msra.mxu0 %v570_v18 }
  0x24   : > { %399 = vmatprep.subr.bf16.mxu0 %v571_v19 }
  0x27   : > { %400 = vmatpush1.bf16.msra.mxu0 %v573_v20 }
  0x28   : > { %401 = vmatprep.subr.bf16.mxu0 %v574_v21 }
  0x2b   : > { %402 = vmatpush1.bf16.msra.mxu0 %v576_v22 }
  0x2c   : > { %403 = vmatprep.subr.bf16.mxu0 %v577_v23 }
  0x2f   : > { %404 = vmatpush1.bf16.msra.mxu0 %v579_v24 }
  0x30   : > { %405 = vmatprep.subr.bf16.mxu0 %v580_v25 }
  0x33   : > { %406 = vmatpush1.bf16.msra.mxu0 %v582_v26 }
  0x34   : > { %407 = vmatprep.subr.bf16.mxu0 %v583_v27 }
  0x37   : > { %408 = vmatpush1.bf16.msra.mxu0 %v585_v28 }
  0x38   : > { %409 = vmatprep.subr.bf16.mxu0 %v586_v29 }
  0x3b   : > { %410 = vmatpush1.bf16.msra.mxu0 %v588_v31 }
  0x3c   : > { %533 = vmatprep.subr.msk.bf16.mxu0 %vm376_vm1, %v532_v32 }
  0x3f   : > { %412 = vmatpush1.bf16.msra.mxu0 %v378_v36 }
  0x42   : > { %416 = vmatmul.mubr.bf16.vlgmr.msra.gmra.mrb[0].mxu0 %v184_v37 }
 0x115   : > { %v417_v45 = vpop.f32.mrb[0].mxu0 }
 0x116   : > { %v418_v46 = vadd.f32 %v417_v45, %v220_v43  ;;  %v419_v47 = vpop.f32.mrb[1].mxu0 }
 0x117   : > { %v420_v48 = vadd.f32 %v419_v47, %v224_v44  ;;  %v421_v49 = vpop.f32.mrb[2].mxu0 }
 0x118   : > { %v426_v50 = vmax.f32 %v418_v46, 0.0  ;;  %v422_v51 = vadd.f32 %v421_v49, %v220_v43  ;;  %v423_v52 = vpop.f32.mrb[3].mxu0 }
 0x119   : > { %v427_v53 = vmax.f32 %v420_v48, 0.0  ;;  %v424_v54 = vadd.f32 %v423_v52, %v224_v44 }
 0x11a   : > { %430 = vst [vmem:[%s177_s5] sm:$0xff] %v426_v50  ;;  %v428_v55 = vmax.f32 %v422_v51, 0.0 }
 0x11b   : > { %431 = vst.msk [vmem:[%s177_s5 + $0x8] sm:$0xff] %vm372_vm0, %v427_v53  ;;  %v429_v56 = vmax.f32 %v424_v54, 0.0 }
 0x11c   : > { %432 = vst [vmem:[%s177_s5 + $0x10] sm:$0xff] %v428_v55 }
 0x11d   : > { %433 = vst.msk [vmem:[%s177_s5 + $0x18] sm:$0xff] %vm372_vm0, %v429_v56 }
 0x11e PF: > { %s13_s12 = sadd.s32 1, %s597_s12  }
 0x11f   : > { %p10_p4 = scmp.ge.s32.totalorder %s13_s12, 4  }
 0x121   :  { %12 = sbr.rel (!%p10_p4) target bundleno = 1 (0x1), region = 62 }

// kernel: _lambda_.30
= control target key start
LH: loop header
LB: loop body
LE: loop exit
PB: predicated region body
PF: predicated region fallthrough
CT: control target
= control target key end

     0   :  { %vm1445_vm0 = vcmask 261120   ;;  %vm1804_vm4 = vcmask 654336   ;;  %s3187_s1 = inlined_call_operand.vmem [shape: bf16[928,464], index: 1, kind: input, shape index: {}]   ;;  %s3188_s0 = inlined_call_operand.vmem [shape: f32[8,928], index: 0, kind: input, shape index: {}]   ;;  %s3189_s2 = inlined_call_operand.vmem [shape: f32[1,464], index: 2, kind: input, shape index: {}]   ;;  %s3190_s3 = inlined_call_operand.vmem [shape: f32[8,464], index: 3, kind: output, shape index: {}]  }
   0x1   :  { %v2076_v0 = vld [vmem:[%s3187_s1 + $0x4] ss:$16 sps:$4 sm:$0xff]   ;;  %v2078_v1 = vld [vmem:[%s3187_s1 + $0xc] ss:$16 sps:$4 sm:$0xff]   ;;  %v2080_v2 = vld [vmem:[%s3187_s1] ss:$16 sps:$4 sm:$0xff]  }
   0x2   :  { %1449 = vmatprep.subr.bf16.mxu0 %v2076_v0  ;;  %v2081_v3 = vld [vmem:[%s3187_s1 + $0x8] ss:$16 sps:$4 sm:$0xff]   ;;  %1613 = vmatprep.subr.bf16.mxu1 %v2078_v1  ;;  %v2082_v4 = vld [vmem:[%s3187_s1 + $0x24] ss:$16 sps:$4 sm:$0xff]   ;;  %v2084_v5 = vld [vmem:[%s3187_s1 + $0x2c] ss:$16 sps:$4 sm:$0xff]  }
   0x3   :  { %1450 = vmatpush1.bf16.msra.mxu0 %v2080_v2  ;;  %1614 = vmatpush1.bf16.msra.mxu1 %v2081_v3  ;;  %v2086_v6 = vld [vmem:[%s3187_s1 + $0x20] ss:$16 sps:$4 sm:$0xff]   ;;  %v2087_v7 = vld [vmem:[%s3187_s1 + $0x28] ss:$16 sps:$4 sm:$0xff]   ;;  %v2088_v8 = vld [vmem:[%s3187_s1 + $0x44] ss:$16 sps:$4 sm:$0xff]  }
   0x4   :  { %1451 = vmatprep.subr.bf16.mxu0 %v2082_v4  ;;  %1615 = vmatprep.subr.bf16.mxu1 %v2084_v5  ;;  %v2090_v9 = vld [vmem:[%s3187_s1 + $0x4c] ss:$16 sps:$4 sm:$0xff]   ;;  %v2092_v10 = vld [vmem:[%s3187_s1 + $0x40] ss:$16 sps:$4 sm:$0xff]   ;;  %v2093_v11 = vld [vmem:[%s3187_s1 + $0x48] ss:$16 sps:$4 sm:$0xff]  }
   0x5   :  { %v2094_v12 = vld [vmem:[%s3187_s1 + $0x64] ss:$16 sps:$4 sm:$0xff]   ;;  %v2096_v13 = vld [vmem:[%s3187_s1 + $0x6c] ss:$16 sps:$4 sm:$0xff]   ;;  %v2098_v14 = vld [vmem:[%s3187_s1 + $0x60] ss:$16 sps:$4 sm:$0xff]  }
   0x6   :  { %v2099_v15 = vld [vmem:[%s3187_s1 + $0x68] ss:$16 sps:$4 sm:$0xff]   ;;  %v2100_v16 = vld [vmem:[%s3187_s1 + $0x84] ss:$16 sps:$4 sm:$0xff]   ;;  %v2102_v17 = vld [vmem:[%s3187_s1 + $0x8c] ss:$16 sps:$4 sm:$0xff]  }
   0x7   :  { %1452 = vmatpush1.bf16.msra.mxu0 %v2086_v6  ;;  %1616 = vmatpush1.bf16.msra.mxu1 %v2087_v7  ;;  %v2104_v18 = vld [vmem:[%s3187_s1 + $0x80] ss:$16 sps:$4 sm:$0xff]   ;;  %v2105_v19 = vld [vmem:[%s3187_s1 + $0x88] ss:$16 sps:$4 sm:$0xff]   ;;  %v2106_v20 = vld [vmem:[%s3187_s1 + $0xa4] ss:$16 sps:$4 sm:$0xff]  }
   0x8   :  { %1453 = vmatprep.subr.bf16.mxu0 %v2088_v8  ;;  %1617 = vmatprep.subr.bf16.mxu1 %v2090_v9  ;;  %v2108_v21 = vld [vmem:[%s3187_s1 + $0xac] ss:$16 sps:$4 sm:$0xff]   ;;  %v2110_v22 = vld [vmem:[%s3187_s1 + $0xa0] ss:$16 sps:$4 sm:$0xff]   ;;  %v2111_v23 = vld [vmem:[%s3187_s1 + $0xa8] ss:$16 sps:$4 sm:$0xff]  }
   0x9   :  { %v2112_v24 = vld [vmem:[%s3187_s1 + $0xc4] ss:$16 sps:$4 sm:$0xff]   ;;  %v2114_v25 = vld [vmem:[%s3187_s1 + $0xcc] ss:$16 sps:$4 sm:$0xff]   ;;  %v2116_v26 = vld [vmem:[%s3187_s1 + $0xc0] ss:$16 sps:$4 sm:$0xff]  }
   0xa   :  { %v2117_v27 = vld [vmem:[%s3187_s1 + $0xc8] ss:$16 sps:$4 sm:$0xff]   ;;  %v2118_v28 = vld [vmem:[%s3187_s1 + $0xe4] ss:$16 sps:$4 sm:$0xff]   ;;  %v2120_v29 = vld [vmem:[%s3187_s1 + $0xec] ss:$16 sps:$4 sm:$0xff]  }
   0xb   :  { %1454 = vmatpush1.bf16.msra.mxu0 %v2092_v10  ;;  %1618 = vmatpush1.bf16.msra.mxu1 %v2093_v11  ;;  %v2122_v30 = vld [vmem:[%s3187_s1 + $0xe0] ss:$16 sps:$4 sm:$0xff]   ;;  %v2123_v31 = vld [vmem:[%s3187_s1 + $0xe8] ss:$16 sps:$4 sm:$0xff]   ;;  %v2124_v32 = vld [vmem:[%s3187_s1 + $0x104] ss:$16 sps:$4 sm:$0xff]  }
   0xc   :  { %1455 = vmatprep.subr.bf16.mxu0 %v2094_v12  ;;  %1619 = vmatprep.subr.bf16.mxu1 %v2096_v13  ;;  %v2126_v33 = vld [vmem:[%s3187_s1 + $0x10c] ss:$16 sps:$4 sm:$0xff]   ;;  %v2128_v34 = vld [vmem:[%s3187_s1 + $0x100] ss:$16 sps:$4 sm:$0xff]   ;;  %v2129_v35 = vld [vmem:[%s3187_s1 + $0x108] ss:$16 sps:$4 sm:$0xff]  }
   0xd   :  { %v2130_v36 = vld [vmem:[%s3187_s1 + $0x124] ss:$16 sps:$4 sm:$0xff]   ;;  %v2132_v37 = vld [vmem:[%s3187_s1 + $0x12c] ss:$16 sps:$4 sm:$0xff]   ;;  %v2134_v38 = vld [vmem:[%s3187_s1 + $0x120] ss:$16 sps:$4 sm:$0xff]  }
   0xe   :  { %v2135_v39 = vld [vmem:[%s3187_s1 + $0x128] ss:$16 sps:$4 sm:$0xff]   ;;  %v2136_v40 = vld [vmem:[%s3187_s1 + $0x144] ss:$16 sps:$4 sm:$0xff]   ;;  %v2138_v41 = vld [vmem:[%s3187_s1 + $0x14c] ss:$16 sps:$4 sm:$0xff]  }
   0xf   :  { %1456 = vmatpush1.bf16.msra.mxu0 %v2098_v14  ;;  %1620 = vmatpush1.bf16.msra.mxu1 %v2099_v15  ;;  %v2140_v42 = vld [vmem:[%s3187_s1 + $0x140] ss:$16 sps:$4 sm:$0xff]   ;;  %v2141_v43 = vld [vmem:[%s3187_s1 + $0x148] ss:$16 sps:$4 sm:$0xff]   ;;  %v2142_v44 = vld [vmem:[%s3187_s1 + $0x164] ss:$16 sps:$4 sm:$0xff]  }
  0x10   :  { %1457 = vmatprep.subr.bf16.mxu0 %v2100_v16  ;;  %1621 = vmatprep.subr.bf16.mxu1 %v2102_v17  ;;  %v2144_v45 = vld [vmem:[%s3187_s1 + $0x16c] ss:$16 sps:$4 sm:$0xff]   ;;  %v2146_v47 = vld [vmem:[%s3187_s1 + $0x160] ss:$16 sps:$4 sm:$0xff]   ;;  %v2147_v49 = vld [vmem:[%s3187_s1 + $0x168] ss:$16 sps:$4 sm:$0xff]  }
  0x11   :  { %v16_v46 = vld [vmem:[%s3188_s0 + $0x8] sm:$0xff]  ;;  %v2148_v50 = vld [vmem:[%s3187_s1 + $0x184] ss:$16 sps:$4 sm:$0xff]   ;;  %v2152_v52 = vld [vmem:[%s3187_s1 + $0x180] ss:$16 sps:$4 sm:$0xff]  }
  0x12   :  { %v24_v48 = vpack.c.bf16 %v16_v46, %v16_v46  ;;  %v2150_v51 = vld [vmem:[%s3187_s1 + $0x18c] ss:$16 sps:$4 sm:$0xff]   ;;  %v2153_v53 = vld [vmem:[%s3187_s1 + $0x188] ss:$16 sps:$4 sm:$0xff]   ;;  %v2154_v54 = vld [vmem:[%s3187_s1 + $0x1a4] ss:$16 sps:$4 sm:$0xff]  }
  0x13   :  { %1458 = vmatpush1.bf16.msra.mxu0 %v2104_v18  ;;  %1622 = vmatpush1.bf16.msra.mxu1 %v2105_v19  ;;  %v2156_v55 = vld [vmem:[%s3187_s1 + $0x1ac] ss:$16 sps:$4 sm:$0xff]   ;;  %v2158_v56 = vld [vmem:[%s3187_s1 + $0x1a0] ss:$16 sps:$4 sm:$0xff]   ;;  %v2159_v57 = vld [vmem:[%s3187_s1 + $0x1a8] ss:$16 sps:$4 sm:$0xff]  }
  0x14   :  { %1459 = vmatprep.subr.bf16.mxu0 %v2106_v20  ;;  %1623 = vmatprep.subr.bf16.mxu1 %v2108_v21  ;;  %v2160_v58 = vld [vmem:[%s3187_s1 + $0x1c4] ss:$16 sps:$4 sm:$0xff]   ;;  %v2162_v59 = vld [vmem:[%s3187_s1 + $0x1cc] ss:$16 sps:$4 sm:$0xff]   ;;  %v2164_v60 = vld [vmem:[%s3187_s1 + $0x1c0] ss:$16 sps:$4 sm:$0xff]  }
  0x15   :  { %1481 = vmatprep.mubr.bf16.mxu0 %v24_v48  ;;  %1645 = vmatprep.mubr.bf16.mxu1 %v24_v48  ;;  %v2165_v61 = vld [vmem:[%s3187_s1 + $0x1c8] ss:$16 sps:$4 sm:$0xff]   ;;  %v2166_v62 = vld [vmem:[%s3187_s1 + $0x1e4] ss:$16 sps:$4 sm:$0xff]   ;;  %v2168_v63 = vld [vmem:[%s3187_s1 + $0x1ec] ss:$16 sps:$4 sm:$0xff]  }
  0x16   :  { %v2170_v0 = vld [vmem:[%s3187_s1 + $0x1e0] ss:$16 sps:$4 sm:$0xff]   ;;  %v2171_v1 = vld [vmem:[%s3187_s1 + $0x1e8] ss:$16 sps:$4 sm:$0xff]   ;;  %v2174_v3 = vld [vmem:[%s3187_s1 + $0x204] ss:$16 sps:$4 sm:$0xff]  }
  0x17   :  { %1460 = vmatpush1.bf16.msra.mxu0 %v2110_v22  ;;  %1624 = vmatpush1.bf16.msra.mxu1 %v2111_v23  ;;  %v15_v2 = vld [vmem:[%s3188_s0] sm:$0xff]  ;;  %v2177_v4 = vld [vmem:[%s3187_s1 + $0x20c] ss:$16 sps:$4 sm:$0xff]   ;;  %v2175_v7 = vld [vmem:[%s3187_s1 + $0x208] ss:$16 sps:$4 sm:$0xff]  }
  0x18   :  { %1461 = vmatprep.subr.bf16.mxu0 %v2112_v24  ;;  %1625 = vmatprep.subr.bf16.mxu1 %v2114_v25  ;;  %v23_v5 = vpack.c.bf16 %v15_v2, %v15_v2  ;;  %v2172_v6 = vld [vmem:[%s3187_s1 + $0x200] ss:$16 sps:$4 sm:$0xff]   ;;  %v2180_v8 = vld [vmem:[%s3187_s1 + $0x224] ss:$16 sps:$4 sm:$0xff]   ;;  %v2183_v9 = vld [vmem:[%s3187_s1 + $0x22c] ss:$16 sps:$4 sm:$0xff]  }
  0x19   :  { %v2178_v10 = vld [vmem:[%s3187_s1 + $0x220] ss:$16 sps:$4 sm:$0xff]   ;;  %v2181_v11 = vld [vmem:[%s3187_s1 + $0x228] ss:$16 sps:$4 sm:$0xff]   ;;  %v2186_v12 = vld [vmem:[%s3187_s1 + $0x244] ss:$16 sps:$4 sm:$0xff]  }
  0x1a   :  { %v2189_v13 = vld [vmem:[%s3187_s1 + $0x24c] ss:$16 sps:$4 sm:$0xff]   ;;  %v2184_v14 = vld [vmem:[%s3187_s1 + $0x240] ss:$16 sps:$4 sm:$0xff]   ;;  %v2187_v15 = vld [vmem:[%s3187_s1 + $0x248] ss:$16 sps:$4 sm:$0xff]  }
  0x1b   :  { %1462 = vmatpush1.bf16.msra.mxu0 %v2116_v26  ;;  %1626 = vmatpush1.bf16.msra.mxu1 %v2117_v27  ;;  %v2192_v16 = vld [vmem:[%s3187_s1 + $0x264] ss:$16 sps:$4 sm:$0xff]   ;;  %v2195_v17 = vld [vmem:[%s3187_s1 + $0x26c] ss:$16 sps:$4 sm:$0xff]   ;;  %v2190_v18 = vld [vmem:[%s3187_s1 + $0x260] ss:$16 sps:$4 sm:$0xff]  }
  0x1c   :  { %1463 = vmatprep.subr.bf16.mxu0 %v2118_v28  ;;  %1627 = vmatprep.subr.bf16.mxu1 %v2120_v29  ;;  %v2193_v19 = vld [vmem:[%s3187_s1 + $0x268] ss:$16 sps:$4 sm:$0xff]   ;;  %v2198_v20 = vld [vmem:[%s3187_s1 + $0x284] ss:$16 sps:$4 sm:$0xff]   ;;  %v2201_v21 = vld [vmem:[%s3187_s1 + $0x28c] ss:$16 sps:$4 sm:$0xff]  }
  0x1d   :  { %v2196_v22 = vld [vmem:[%s3187_s1 + $0x280] ss:$16 sps:$4 sm:$0xff]   ;;  %v2199_v23 = vld [vmem:[%s3187_s1 + $0x288] ss:$16 sps:$4 sm:$0xff]   ;;  %v2204_v24 = vld [vmem:[%s3187_s1 + $0x2a4] ss:$16 sps:$4 sm:$0xff]  }
  0x1e   :  { %v2207_v25 = vld [vmem:[%s3187_s1 + $0x2ac] ss:$16 sps:$4 sm:$0xff]   ;;  %v2202_v26 = vld [vmem:[%s3187_s1 + $0x2a0] ss:$16 sps:$4 sm:$0xff]   ;;  %v2205_v27 = vld [vmem:[%s3187_s1 + $0x2a8] ss:$16 sps:$4 sm:$0xff]  }
  0x1f   :  { %1464 = vmatpush1.bf16.msra.mxu0 %v2122_v30  ;;  %1628 = vmatpush1.bf16.msra.mxu1 %v2123_v31  ;;  %v2210_v28 = vld [vmem:[%s3187_s1 + $0x2c4] ss:$16 sps:$4 sm:$0xff]   ;;  %v2213_v29 = vld [vmem:[%s3187_s1 + $0x2cc] ss:$16 sps:$4 sm:$0xff]   ;;  %v2208_v31 = vld [vmem:[%s3187_s1 + $0x2c0] ss:$16 sps:$4 sm:$0xff]  }
  0x20   :  { %1465 = vmatprep.subr.bf16.mxu0 %v2124_v32  ;;  %1629 = vmatprep.subr.bf16.mxu1 %v2126_v33  ;;  %v18_v30 = vld [vmem:[%s3188_s0 + $0x18] sm:$0xff]  ;;  %v2234_v46 = vld [vmem:[%s3187_s1 + $0x344] ss:$16 sps:$4 sm:$0xff]   ;;  %v2232_v48 = vld [vmem:[%s3187_s1 + $0x340] ss:$16 sps:$4 sm:$0xff]  }
  0x21   :  { %v26_v32 = vpack.c.bf16 %v18_v30, %v18_v30  ;;  %v2211_v33 = vld [vmem:[%s3187_s1 + $0x2c8] ss:$16 sps:$4 sm:$0xff]   ;;  %v2264_v2 = vld [vmem:[%s3187_s1 + $0x3e4] ss:$16 sps:$4 sm:$0xff]  }
  0x22   :  { %v2300_v30 = vld [vmem:[%s3187_s1 + $0x4a4] ss:$16 sps:$4 sm:$0xff]  }
  0x23   :  { %1466 = vmatpush1.bf16.msra.mxu0 %v2128_v34  ;;  %1630 = vmatpush1.bf16.msra.mxu1 %v2129_v35  ;;  %v2216_v34 = vld [vmem:[%s3187_s1 + $0x2e4] ss:$16 sps:$4 sm:$0xff]   ;;  %v2219_v35 = vld [vmem:[%s3187_s1 + $0x2ec] ss:$16 sps:$4 sm:$0xff]  }
  0x24   :  { %1467 = vmatprep.subr.bf16.mxu0 %v2130_v36  ;;  %1631 = vmatprep.subr.bf16.mxu1 %v2132_v37  ;;  %v2214_v36 = vld [vmem:[%s3187_s1 + $0x2e0] ss:$16 sps:$4 sm:$0xff]   ;;  %v2217_v37 = vld [vmem:[%s3187_s1 + $0x2e8] ss:$16 sps:$4 sm:$0xff]  }
  0x27   :  { %1468 = vmatpush1.bf16.msra.mxu0 %v2134_v38  ;;  %1632 = vmatpush1.bf16.msra.mxu1 %v2135_v39  ;;  %v2222_v38 = vld [vmem:[%s3187_s1 + $0x304] ss:$16 sps:$4 sm:$0xff]   ;;  %v2225_v39 = vld [vmem:[%s3187_s1 + $0x30c] ss:$16 sps:$4 sm:$0xff]  }
  0x28   :  { %1469 = vmatprep.subr.bf16.mxu0 %v2136_v40  ;;  %1633 = vmatprep.subr.bf16.mxu1 %v2138_v41  ;;  %v2220_v40 = vld [vmem:[%s3187_s1 + $0x300] ss:$16 sps:$4 sm:$0xff]   ;;  %v2223_v41 = vld [vmem:[%s3187_s1 + $0x308] ss:$16 sps:$4 sm:$0xff]  }
  0x2b   :  { %1470 = vmatpush1.bf16.msra.mxu0 %v2140_v42  ;;  %1634 = vmatpush1.bf16.msra.mxu1 %v2141_v43  ;;  %v2228_v42 = vld [vmem:[%s3187_s1 + $0x324] ss:$16 sps:$4 sm:$0xff]   ;;  %v2231_v43 = vld [vmem:[%s3187_s1 + $0x32c] ss:$16 sps:$4 sm:$0xff]  }
  0x2c   :  { %1471 = vmatprep.subr.bf16.mxu0 %v2142_v44  ;;  %1635 = vmatprep.subr.bf16.mxu1 %v2144_v45  ;;  %v2226_v44 = vld [vmem:[%s3187_s1 + $0x320] ss:$16 sps:$4 sm:$0xff]   ;;  %v2229_v45 = vld [vmem:[%s3187_s1 + $0x328] ss:$16 sps:$4 sm:$0xff]  }
  0x2f   :  { %1472 = vmatpush1.bf16.msra.mxu0 %v2146_v47  ;;  %1636 = vmatpush1.bf16.msra.mxu1 %v2147_v49  ;;  %v2237_v47 = vld [vmem:[%s3187_s1 + $0x34c] ss:$16 sps:$4 sm:$0xff]   ;;  %v2235_v49 = vld [vmem:[%s3187_s1 + $0x348] ss:$16 sps:$4 sm:$0xff]  }
  0x30   :  { %1473 = vmatprep.subr.bf16.mxu0 %v2148_v50  ;;  %1637 = vmatprep.subr.bf16.mxu1 %v2150_v51  ;;  %v2240_v50 = vld [vmem:[%s3187_s1 + $0x364] ss:$16 sps:$4 sm:$0xff]   ;;  %v2243_v51 = vld [vmem:[%s3187_s1 + $0x36c] ss:$16 sps:$4 sm:$0xff]  }
  0x33   :  { %1474 = vmatpush1.bf16.msra.mxu0 %v2152_v52  ;;  %1638 = vmatpush1.bf16.msra.mxu1 %v2153_v53  ;;  %v2238_v52 = vld [vmem:[%s3187_s1 + $0x360] ss:$16 sps:$4 sm:$0xff]   ;;  %v2241_v53 = vld [vmem:[%s3187_s1 + $0x368] ss:$16 sps:$4 sm:$0xff]  }
  0x34   :  { %1475 = vmatprep.subr.bf16.mxu0 %v2154_v54  ;;  %1639 = vmatprep.subr.bf16.mxu1 %v2156_v55  ;;  %v2246_v54 = vld [vmem:[%s3187_s1 + $0x384] ss:$16 sps:$4 sm:$0xff]   ;;  %v2249_v55 = vld [vmem:[%s3187_s1 + $0x38c] ss:$16 sps:$4 sm:$0xff]  }
  0x37   :  { %1476 = vmatpush1.bf16.msra.mxu0 %v2158_v56  ;;  %1640 = vmatpush1.bf16.msra.mxu1 %v2159_v57  ;;  %v2244_v56 = vld [vmem:[%s3187_s1 + $0x380] ss:$16 sps:$4 sm:$0xff]   ;;  %v2247_v57 = vld [vmem:[%s3187_s1 + $0x388] ss:$16 sps:$4 sm:$0xff]  }
  0x38   :  { %1477 = vmatprep.subr.bf16.mxu0 %v2160_v58  ;;  %1641 = vmatprep.subr.bf16.mxu1 %v2162_v59  ;;  %v2252_v58 = vld [vmem:[%s3187_s1 + $0x3a4] ss:$16 sps:$4 sm:$0xff]   ;;  %v2255_v59 = vld [vmem:[%s3187_s1 + $0x3ac] ss:$16 sps:$4 sm:$0xff]  }
  0x3b   :  { %1478 = vmatpush1.bf16.msra.mxu0 %v2164_v60  ;;  %1642 = vmatpush1.bf16.msra.mxu1 %v2165_v61  ;;  %v2250_v60 = vld [vmem:[%s3187_s1 + $0x3a0] ss:$16 sps:$4 sm:$0xff]   ;;  %v2253_v61 = vld [vmem:[%s3187_s1 + $0x3a8] ss:$16 sps:$4 sm:$0xff]  }
  0x3c   :  { %1479 = vmatprep.subr.bf16.mxu0 %v2166_v62  ;;  %1643 = vmatprep.subr.bf16.mxu1 %v2168_v63  ;;  %v2258_v62 = vld [vmem:[%s3187_s1 + $0x3c4] ss:$16 sps:$4 sm:$0xff]   ;;  %v2261_v63 = vld [vmem:[%s3187_s1 + $0x3cc] ss:$16 sps:$4 sm:$0xff]  }
  0x3f   :  { %1480 = vmatpush1.bf16.msra.mxu0 %v2170_v0  ;;  %1644 = vmatpush1.bf16.msra.mxu1 %v2171_v1  ;;  %v2256_v0 = vld [vmem:[%s3187_s1 + $0x3c0] ss:$16 sps:$4 sm:$0xff]   ;;  %v2259_v1 = vld [vmem:[%s3187_s1 + $0x3c8] ss:$16 sps:$4 sm:$0xff]  }
  0x40   :  { %1490 = vmatprep.subr.bf16.mxu0 %v2174_v3  ;;  %1654 = vmatprep.subr.bf16.mxu1 %v2177_v4  ;;  %v2267_v3 = vld [vmem:[%s3187_s1 + $0x3ec] ss:$16 sps:$4 sm:$0xff]   ;;  %v2262_v4 = vld [vmem:[%s3187_s1 + $0x3e0] ss:$16 sps:$4 sm:$0xff]  }
  0x42   :  { %1482 = vmatmul.mubr.bf16.vlgmr.msra.gmra.mrb[0].mxu0 %v23_v5  ;;  %1646 = vmatmul.mubr.bf16.vlgmr.msra.gmra.mrb[0].mxu1 %v23_v5  ;;  %v2265_v5 = vld [vmem:[%s3187_s1 + $0x3e8] ss:$16 sps:$4 sm:$0xff]  }
  0x43   :  { %1491 = vmatpush1.bf16.msra.mxu0 %v2172_v6  ;;  %1655 = vmatpush1.bf16.msra.mxu1 %v2175_v7  ;;  %v2270_v6 = vld [vmem:[%s3187_s1 + $0x404] ss:$16 sps:$4 sm:$0xff]  }
  0x44   :  { %1492 = vmatprep.subr.bf16.mxu0 %v2180_v8  ;;  %1656 = vmatprep.subr.bf16.mxu1 %v2183_v9  ;;  %v17_v7 = vld [vmem:[%s3188_s0 + $0x10] sm:$0xff]  ;;  %v2273_v8 = vld [vmem:[%s3187_s1 + $0x40c] ss:$16 sps:$4 sm:$0xff]  }
  0x45   :  { %1522 = vmatprep.mubr.bf16.mxu0 %v26_v32  ;;  %1686 = vmatprep.mubr.bf16.mxu1 %v26_v32  ;;  %v2268_v9 = vld [vmem:[%s3187_s1 + $0x400] ss:$16 sps:$4 sm:$0xff]  }
  0x46   :  { %v2298_v32 = vld [vmem:[%s3187_s1 + $0x4a0] ss:$16 sps:$4 sm:$0xff]  }
  0x47   :  { %1493 = vmatpush1.bf16.msra.mxu0 %v2178_v10  ;;  %1657 = vmatpush1.bf16.msra.mxu1 %v2181_v11  ;;  %v2271_v10 = vld [vmem:[%s3187_s1 + $0x408] ss:$16 sps:$4 sm:$0xff]   ;;  %v25_v11 = vpack.c.bf16 %v17_v7, %v17_v7  ;;  %v2363_v7 = vld [vmem:[%s3187_s1 + $0x5ec] ss:$16 sps:$4 sm:$0xff]  }
  0x48   :  { %1494 = vmatprep.subr.bf16.mxu0 %v2186_v12  ;;  %1658 = vmatprep.subr.bf16.mxu1 %v2189_v13  ;;  %v2276_v12 = vld [vmem:[%s3187_s1 + $0x424] ss:$16 sps:$4 sm:$0xff]   ;;  %v2279_v13 = vld [vmem:[%s3187_s1 + $0x42c] ss:$16 sps:$4 sm:$0xff]  }
  0x4b   :  { %1495 = vmatpush1.bf16.msra.mxu0 %v2184_v14  ;;  %1659 = vmatpush1.bf16.msra.mxu1 %v2187_v15  ;;  %v20_v14 = vld [vmem:[%s3188_s0 + $0x28] sm:$0xff] }
  0x4c   :  { %1496 = vmatprep.subr.bf16.mxu0 %v2192_v16  ;;  %1660 = vmatprep.subr.bf16.mxu1 %v2195_v17  ;;  %v28_v15 = vpack.c.bf16 %v20_v14, %v20_v14  ;;  %v2274_v16 = vld [vmem:[%s3187_s1 + $0x420] ss:$16 sps:$4 sm:$0xff]   ;;  %v2277_v17 = vld [vmem:[%s3187_s1 + $0x428] ss:$16 sps:$4 sm:$0xff]  }
  0x4d   :  { %v22_v14 = vld [vmem:[%s3188_s0 + $0x38] sm:$0xff] }
  0x4f   :  { %1497 = vmatpush1.bf16.msra.mxu0 %v2190_v18  ;;  %1661 = vmatpush1.bf16.msra.mxu1 %v2193_v19  ;;  %v2282_v18 = vld [vmem:[%s3187_s1 + $0x444] ss:$16 sps:$4 sm:$0xff]   ;;  %v2285_v19 = vld [vmem:[%s3187_s1 + $0x44c] ss:$16 sps:$4 sm:$0xff]  }
  0x50   :  { %1498 = vmatprep.subr.bf16.mxu0 %v2198_v20  ;;  %1662 = vmatprep.subr.bf16.mxu1 %v2201_v21  ;;  %v2280_v20 = vld [vmem:[%s3187_s1 + $0x440] ss:$16 sps:$4 sm:$0xff]   ;;  %v2283_v21 = vld [vmem:[%s3187_s1 + $0x448] ss:$16 sps:$4 sm:$0xff]  }
  0x53   :  { %1499 = vmatpush1.bf16.msra.mxu0 %v2196_v22  ;;  %1663 = vmatpush1.bf16.msra.mxu1 %v2199_v23  ;;  %v2288_v22 = vld [vmem:[%s3187_s1 + $0x464] ss:$16 sps:$4 sm:$0xff]   ;;  %v2291_v23 = vld [vmem:[%s3187_s1 + $0x46c] ss:$16 sps:$4 sm:$0xff]  }
  0x54   :  { %1500 = vmatprep.subr.bf16.mxu0 %v2204_v24  ;;  %1664 = vmatprep.subr.bf16.mxu1 %v2207_v25  ;;  %v2286_v24 = vld [vmem:[%s3187_s1 + $0x460] ss:$16 sps:$4 sm:$0xff]   ;;  %v2289_v25 = vld [vmem:[%s3187_s1 + $0x468] ss:$16 sps:$4 sm:$0xff]  }
  0x57   :  { %1501 = vmatpush1.bf16.msra.mxu0 %v2202_v26  ;;  %1665 = vmatpush1.bf16.msra.mxu1 %v2205_v27  ;;  %v2294_v26 = vld [vmem:[%s3187_s1 + $0x484] ss:$16 sps:$4 sm:$0xff]   ;;  %v2297_v27 = vld [vmem:[%s3187_s1 + $0x48c] ss:$16 sps:$4 sm:$0xff]  }
  0x58   :  { %1502 = vmatprep.subr.bf16.mxu0 %v2210_v28  ;;  %1666 = vmatprep.subr.bf16.mxu1 %v2213_v29  ;;  %v2292_v28 = vld [vmem:[%s3187_s1 + $0x480] ss:$16 sps:$4 sm:$0xff]   ;;  %v2295_v29 = vld [vmem:[%s3187_s1 + $0x488] ss:$16 sps:$4 sm:$0xff]  }
  0x5b   :  { %1503 = vmatpush1.bf16.msra.mxu0 %v2208_v31  ;;  %1667 = vmatpush1.bf16.msra.mxu1 %v2211_v33  ;;  %v2303_v31 = vld [vmem:[%s3187_s1 + $0x4ac] ss:$16 sps:$4 sm:$0xff]   ;;  %v2301_v33 = vld [vmem:[%s3187_s1 + $0x4a8] ss:$16 sps:$4 sm:$0xff]  }
  0x5c   :  { %1504 = vmatprep.subr.bf16.mxu0 %v2216_v34  ;;  %1668 = vmatprep.subr.bf16.mxu1 %v2219_v35  ;;  %v2306_v34 = vld [vmem:[%s3187_s1 + $0x4c4] ss:$16 sps:$4 sm:$0xff]   ;;  %v2309_v35 = vld [vmem:[%s3187_s1 + $0x4cc] ss:$16 sps:$4 sm:$0xff]  }
  0x5f   :  { %1505 = vmatpush1.bf16.msra.mxu0 %v2214_v36  ;;  %1669 = vmatpush1.bf16.msra.mxu1 %v2217_v37  ;;  %v2304_v36 = vld [vmem:[%s3187_s1 + $0x4c0] ss:$16 sps:$4 sm:$0xff]   ;;  %v2307_v37 = vld [vmem:[%s3187_s1 + $0x4c8] ss:$16 sps:$4 sm:$0xff]  }
  0x60   :  { %1506 = vmatprep.subr.bf16.mxu0 %v2222_v38  ;;  %1670 = vmatprep.subr.bf16.mxu1 %v2225_v39  ;;  %v2312_v38 = vld [vmem:[%s3187_s1 + $0x4e4] ss:$16 sps:$4 sm:$0xff]   ;;  %v2315_v39 = vld [vmem:[%s3187_s1 + $0x4ec] ss:$16 sps:$4 sm:$0xff]  }
  0x63   :  { %1507 = vmatpush1.bf16.msra.mxu0 %v2220_v40  ;;  %1671 = vmatpush1.bf16.msra.mxu1 %v2223_v41  ;;  %v2310_v40 = vld [vmem:[%s3187_s1 + $0x4e0] ss:$16 sps:$4 sm:$0xff]   ;;  %v2313_v41 = vld [vmem:[%s3187_s1 + $0x4e8] ss:$16 sps:$4 sm:$0xff]  }
  0x64   :  { %1508 = vmatprep.subr.bf16.mxu0 %v2228_v42  ;;  %1672 = vmatprep.subr.bf16.mxu1 %v2231_v43  ;;  %v2318_v42 = vld [vmem:[%s3187_s1 + $0x504] ss:$16 sps:$4 sm:$0xff]   ;;  %v2321_v43 = vld [vmem:[%s3187_s1 + $0x50c] ss:$16 sps:$4 sm:$0xff]  }
  0x67   :  { %1509 = vmatpush1.bf16.msra.mxu0 %v2226_v44  ;;  %1673 = vmatpush1.bf16.msra.mxu1 %v2229_v45  ;;  %v2316_v44 = vld [vmem:[%s3187_s1 + $0x500] ss:$16 sps:$4 sm:$0xff]   ;;  %v2319_v45 = vld [vmem:[%s3187_s1 + $0x508] ss:$16 sps:$4 sm:$0xff]  }
  0x68   :  { %1510 = vmatprep.subr.bf16.mxu0 %v2234_v46  ;;  %1674 = vmatprep.subr.bf16.mxu1 %v2237_v47  ;;  %v2324_v46 = vld [vmem:[%s3187_s1 + $0x524] ss:$16 sps:$4 sm:$0xff]   ;;  %v2327_v47 = vld [vmem:[%s3187_s1 + $0x52c] ss:$16 sps:$4 sm:$0xff]  }
  0x6b   :  { %1511 = vmatpush1.bf16.msra.mxu0 %v2232_v48  ;;  %1675 = vmatpush1.bf16.msra.mxu1 %v2235_v49  ;;  %v2322_v48 = vld [vmem:[%s3187_s1 + $0x520] ss:$16 sps:$4 sm:$0xff]   ;;  %v2325_v49 = vld [vmem:[%s3187_s1 + $0x528] ss:$16 sps:$4 sm:$0xff]  }
  0x6c   :  { %1512 = vmatprep.subr.bf16.mxu0 %v2240_v50  ;;  %1676 = vmatprep.subr.bf16.mxu1 %v2243_v51  ;;  %v2330_v50 = vld [vmem:[%s3187_s1 + $0x544] ss:$16 sps:$4 sm:$0xff]   ;;  %v2333_v51 = vld [vmem:[%s3187_s1 + $0x54c] ss:$16 sps:$4 sm:$0xff]  }
  0x6f   :  { %1513 = vmatpush1.bf16.msra.mxu0 %v2238_v52  ;;  %1677 = vmatpush1.bf16.msra.mxu1 %v2241_v53  ;;  %v2328_v52 = vld [vmem:[%s3187_s1 + $0x540] ss:$16 sps:$4 sm:$0xff]   ;;  %v2331_v53 = vld [vmem:[%s3187_s1 + $0x548] ss:$16 sps:$4 sm:$0xff]  }
  0x70   :  { %1514 = vmatprep.subr.bf16.mxu0 %v2246_v54  ;;  %1678 = vmatprep.subr.bf16.mxu1 %v2249_v55  ;;  %v2336_v54 = vld [vmem:[%s3187_s1 + $0x564] ss:$16 sps:$4 sm:$0xff]   ;;  %v2339_v55 = vld [vmem:[%s3187_s1 + $0x56c] ss:$16 sps:$4 sm:$0xff]  }
  0x73   :  { %1515 = vmatpush1.bf16.msra.mxu0 %v2244_v56  ;;  %1679 = vmatpush1.bf16.msra.mxu1 %v2247_v57  ;;  %v2334_v56 = vld [vmem:[%s3187_s1 + $0x560] ss:$16 sps:$4 sm:$0xff]   ;;  %v2337_v57 = vld [vmem:[%s3187_s1 + $0x568] ss:$16 sps:$4 sm:$0xff]  }
  0x74   :  { %1516 = vmatprep.subr.bf16.mxu0 %v2252_v58  ;;  %1680 = vmatprep.subr.bf16.mxu1 %v2255_v59  ;;  %v2342_v58 = vld [vmem:[%s3187_s1 + $0x584] ss:$16 sps:$4 sm:$0xff]   ;;  %v2345_v59 = vld [vmem:[%s3187_s1 + $0x58c] ss:$16 sps:$4 sm:$0xff]  }
  0x77   :  { %1517 = vmatpush1.bf16.msra.mxu0 %v2250_v60  ;;  %1681 = vmatpush1.bf16.msra.mxu1 %v2253_v61  ;;  %v2340_v60 = vld [vmem:[%s3187_s1 + $0x580] ss:$16 sps:$4 sm:$0xff]   ;;  %v2343_v61 = vld [vmem:[%s3187_s1 + $0x588] ss:$16 sps:$4 sm:$0xff]  }
  0x78   :  { %1518 = vmatprep.subr.bf16.mxu0 %v2258_v62  ;;  %1682 = vmatprep.subr.bf16.mxu1 %v2261_v63  ;;  %v2348_v62 = vld [vmem:[%s3187_s1 + $0x5a4] ss:$16 sps:$4 sm:$0xff]   ;;  %v2351_v63 = vld [vmem:[%s3187_s1 + $0x5ac] ss:$16 sps:$4 sm:$0xff]  }
  0x7b   :  { %1519 = vmatpush1.bf16.msra.mxu0 %v2256_v0  ;;  %1683 = vmatpush1.bf16.msra.mxu1 %v2259_v1  ;;  %v2346_v0 = vld [vmem:[%s3187_s1 + $0x5a0] ss:$16 sps:$4 sm:$0xff]   ;;  %v2349_v1 = vld [vmem:[%s3187_s1 + $0x5a8] ss:$16 sps:$4 sm:$0xff]  }
  0x7c   :  { %1520 = vmatprep.subr.bf16.mxu0 %v2264_v2  ;;  %1684 = vmatprep.subr.bf16.mxu1 %v2267_v3  ;;  %v2354_v2 = vld [vmem:[%s3187_s1 + $0x5c4] ss:$16 sps:$4 sm:$0xff]   ;;  %v2357_v3 = vld [vmem:[%s3187_s1 + $0x5cc] ss:$16 sps:$4 sm:$0xff]  }
  0x7f   :  { %1521 = vmatpush1.bf16.msra.mxu0 %v2262_v4  ;;  %1685 = vmatpush1.bf16.msra.mxu1 %v2265_v5  ;;  %v2352_v4 = vld [vmem:[%s3187_s1 + $0x5c0] ss:$16 sps:$4 sm:$0xff]   ;;  %v2355_v5 = vld [vmem:[%s3187_s1 + $0x5c8] ss:$16 sps:$4 sm:$0xff]  }
  0x80   :  { %1531 = vmatprep.subr.bf16.mxu0 %v2270_v6  ;;  %1695 = vmatprep.subr.bf16.mxu1 %v2273_v8  ;;  %v2360_v6 = vld [vmem:[%s3187_s1 + $0x5e4] ss:$16 sps:$4 sm:$0xff]   ;;  %v2358_v8 = vld [vmem:[%s3187_s1 + $0x5e0] ss:$16 sps:$4 sm:$0xff]  }
  0x82   :  { %1523 = vmatmul.mubr.bf16.vlgmr.msra.gmra.mrb[0].mxu0 %v25_v11  ;;  %1687 = vmatmul.mubr.bf16.vlgmr.msra.gmra.mrb[0].mxu1 %v25_v11  ;;  %v2366_v11 = vld [vmem:[%s3187_s1 + $0x604] ss:$16 sps:$4 sm:$0xff]  }
  0x83   :  { %1532 = vmatpush1.bf16.msra.mxu0 %v2268_v9  ;;  %1696 = vmatpush1.bf16.msra.mxu1 %v2271_v10  ;;  %v2361_v9 = vld [vmem:[%s3187_s1 + $0x5e8] ss:$16 sps:$4 sm:$0xff]   ;;  %v19_v10 = vld [vmem:[%s3188_s0 + $0x20] sm:$0xff] }
  0x84   :  { %1533 = vmatprep.subr.bf16.mxu0 %v2276_v12  ;;  %1697 = vmatprep.subr.bf16.mxu1 %v2279_v13  ;;  %v2369_v12 = vld [vmem:[%s3187_s1 + $0x60c] ss:$16 sps:$4 sm:$0xff]   ;;  %v27_v13 = vpack.c.bf16 %v19_v10, %v19_v10 }
  0x85   :  { %1563 = vmatprep.mubr.bf16.mxu0 %v28_v15  ;;  %1727 = vmatprep.mubr.bf16.mxu1 %v28_v15  ;;  %v2364_v15 = vld [vmem:[%s3187_s1 + $0x600] ss:$16 sps:$4 sm:$0xff]  }
  0x87   :  { %1534 = vmatpush1.bf16.msra.mxu0 %v2274_v16  ;;  %1698 = vmatpush1.bf16.msra.mxu1 %v2277_v17  ;;  %v2367_v16 = vld [vmem:[%s3187_s1 + $0x608] ss:$16 sps:$4 sm:$0xff]   ;;  %v2372_v17 = vld [vmem:[%s3187_s1 + $0x624] ss:$16 sps:$4 sm:$0xff]  }
  0x88   :  { %1535 = vmatprep.subr.bf16.mxu0 %v2282_v18  ;;  %1699 = vmatprep.subr.bf16.mxu1 %v2285_v19  ;;  %v2375_v18 = vld [vmem:[%s3187_s1 + $0x62c] ss:$16 sps:$4 sm:$0xff]   ;;  %v30_v19 = vpack.c.bf16 %v22_v14, %v22_v14 }
  0x8b   :  { %1536 = vmatpush1.bf16.msra.mxu0 %v2280_v20  ;;  %1700 = vmatpush1.bf16.msra.mxu1 %v2283_v21  ;;  %v2370_v20 = vld [vmem:[%s3187_s1 + $0x620] ss:$16 sps:$4 sm:$0xff]   ;;  %v2373_v21 = vld [vmem:[%s3187_s1 + $0x628] ss:$16 sps:$4 sm:$0xff]  }
  0x8c   :  { %1537 = vmatprep.subr.bf16.mxu0 %v2288_v22  ;;  %1701 = vmatprep.subr.bf16.mxu1 %v2291_v23  ;;  %v2378_v22 = vld [vmem:[%s3187_s1 + $0x644] ss:$16 sps:$4 sm:$0xff]   ;;  %v2381_v23 = vld [vmem:[%s3187_s1 + $0x64c] ss:$16 sps:$4 sm:$0xff]  }
  0x8f   :  { %1538 = vmatpush1.bf16.msra.mxu0 %v2286_v24  ;;  %1702 = vmatpush1.bf16.msra.mxu1 %v2289_v25  ;;  %v2376_v24 = vld [vmem:[%s3187_s1 + $0x640] ss:$16 sps:$4 sm:$0xff]   ;;  %v2379_v25 = vld [vmem:[%s3187_s1 + $0x648] ss:$16 sps:$4 sm:$0xff]  }
  0x90   :  { %1539 = vmatprep.subr.bf16.mxu0 %v2294_v26  ;;  %1703 = vmatprep.subr.bf16.mxu1 %v2297_v27  ;;  %v2384_v26 = vld [vmem:[%s3187_s1 + $0x664] ss:$16 sps:$4 sm:$0xff]   ;;  %v2387_v27 = vld [vmem:[%s3187_s1 + $0x66c] ss:$16 sps:$4 sm:$0xff]  }
  0x93   :  { %1540 = vmatpush1.bf16.msra.mxu0 %v2292_v28  ;;  %1704 = vmatpush1.bf16.msra.mxu1 %v2295_v29  ;;  %v2382_v28 = vld [vmem:[%s3187_s1 + $0x660] ss:$16 sps:$4 sm:$0xff]   ;;  %v2385_v29 = vld [vmem:[%s3187_s1 + $0x668] ss:$16 sps:$4 sm:$0xff]  }
  0x94   :  { %1541 = vmatprep.subr.bf16.mxu0 %v2300_v30  ;;  %1705 = vmatprep.subr.bf16.mxu1 %v2303_v31  ;;  %v2390_v30 = vld [vmem:[%s3187_s1 + $0x684] ss:$16 sps:$4 sm:$0xff]   ;;  %v2393_v31 = vld [vmem:[%s3187_s1 + $0x68c] ss:$16 sps:$4 sm:$0xff]  }
  0x97   :  { %1542 = vmatpush1.bf16.msra.mxu0 %v2298_v32  ;;  %1706 = vmatpush1.bf16.msra.mxu1 %v2301_v33  ;;  %v2388_v32 = vld [vmem:[%s3187_s1 + $0x680] ss:$16 sps:$4 sm:$0xff]   ;;  %v2391_v33 = vld [vmem:[%s3187_s1 + $0x688] ss:$16 sps:$4 sm:$0xff]  }
  0x98   :  { %1543 = vmatprep.subr.bf16.mxu0 %v2306_v34  ;;  %1707 = vmatprep.subr.bf16.mxu1 %v2309_v35  ;;  %v2396_v34 = vld [vmem:[%s3187_s1 + $0x6a4] ss:$16 sps:$4 sm:$0xff]   ;;  %v2399_v35 = vld [vmem:[%s3187_s1 + $0x6ac] ss:$16 sps:$4 sm:$0xff]  }
  0x9b   :  { %1544 = vmatpush1.bf16.msra.mxu0 %v2304_v36  ;;  %1708 = vmatpush1.bf16.msra.mxu1 %v2307_v37  ;;  %v2394_v36 = vld [vmem:[%s3187_s1 + $0x6a0] ss:$16 sps:$4 sm:$0xff]   ;;  %v2397_v37 = vld [vmem:[%s3187_s1 + $0x6a8] ss:$16 sps:$4 sm:$0xff]  }
  0x9c   :  { %1545 = vmatprep.subr.bf16.mxu0 %v2312_v38  ;;  %1709 = vmatprep.subr.bf16.mxu1 %v2315_v39  ;;  %v2402_v38 = vld [vmem:[%s3187_s1 + $0x6c4] ss:$16 sps:$4 sm:$0xff]   ;;  %v2405_v39 = vld [vmem:[%s3187_s1 + $0x6cc] ss:$16 sps:$4 sm:$0xff]  }
  0x9f   :  { %1546 = vmatpush1.bf16.msra.mxu0 %v2310_v40  ;;  %1710 = vmatpush1.bf16.msra.mxu1 %v2313_v41  ;;  %v2400_v40 = vld [vmem:[%s3187_s1 + $0x6c0] ss:$16 sps:$4 sm:$0xff]   ;;  %v2403_v41 = vld [vmem:[%s3187_s1 + $0x6c8] ss:$16 sps:$4 sm:$0xff]  }
  0xa0   :  { %1547 = vmatprep.subr.bf16.mxu0 %v2318_v42  ;;  %1711 = vmatprep.subr.bf16.mxu1 %v2321_v43  ;;  %v2408_v42 = vld [vmem:[%s3187_s1 + $0x6e4] ss:$16 sps:$4 sm:$0xff]   ;;  %v2411_v43 = vld [vmem:[%s3187_s1 + $0x6ec] ss:$16 sps:$4 sm:$0xff]  }
  0xa3   :  { %1548 = vmatpush1.bf16.msra.mxu0 %v2316_v44  ;;  %1712 = vmatpush1.bf16.msra.mxu1 %v2319_v45  ;;  %v2406_v44 = vld [vmem:[%s3187_s1 + $0x6e0] ss:$16 sps:$4 sm:$0xff]   ;;  %v2409_v45 = vld [vmem:[%s3187_s1 + $0x6e8] ss:$16 sps:$4 sm:$0xff]  }
  0xa4   :  { %1549 = vmatprep.subr.bf16.mxu0 %v2324_v46  ;;  %1713 = vmatprep.subr.bf16.mxu1 %v2327_v47  ;;  %v2414_v46 = vld [vmem:[%s3187_s1 + $0x704] ss:$16 sps:$4 sm:$0xff]   ;;  %v2417_v47 = vld [vmem:[%s3187_s1 + $0x70c] ss:$16 sps:$4 sm:$0xff]  }
  0xa7   :  { %1550 = vmatpush1.bf16.msra.mxu0 %v2322_v48  ;;  %1714 = vmatpush1.bf16.msra.mxu1 %v2325_v49  ;;  %v2412_v48 = vld [vmem:[%s3187_s1 + $0x700] ss:$16 sps:$4 sm:$0xff]   ;;  %v2415_v49 = vld [vmem:[%s3187_s1 + $0x708] ss:$16 sps:$4 sm:$0xff]  }
  0xa8   :  { %1551 = vmatprep.subr.bf16.mxu0 %v2330_v50  ;;  %1715 = vmatprep.subr.bf16.mxu1 %v2333_v51  ;;  %v2420_v50 = vld [vmem:[%s3187_s1 + $0x724] ss:$16 sps:$4 sm:$0xff]   ;;  %v2423_v51 = vld [vmem:[%s3187_s1 + $0x72c] ss:$16 sps:$4 sm:$0xff]  }
  0xab   :  { %1552 = vmatpush1.bf16.msra.mxu0 %v2328_v52  ;;  %1716 = vmatpush1.bf16.msra.mxu1 %v2331_v53  ;;  %v2418_v52 = vld [vmem:[%s3187_s1 + $0x720] ss:$16 sps:$4 sm:$0xff]   ;;  %v2421_v53 = vld [vmem:[%s3187_s1 + $0x728] ss:$16 sps:$4 sm:$0xff]  }
  0xac   :  { %1553 = vmatprep.subr.bf16.mxu0 %v2336_v54  ;;  %1717 = vmatprep.subr.bf16.mxu1 %v2339_v55  ;;  %v21_v54 = vld [vmem:[%s3188_s0 + $0x30] sm:$0xff] }
  0xad   :  { %v29_v55 = vpack.c.bf16 %v21_v54, %v21_v54 }
  0xaf   :  { %1554 = vmatpush1.bf16.msra.mxu0 %v2334_v56  ;;  %1718 = vmatpush1.bf16.msra.mxu1 %v2337_v57  ;;  %v265_v56 = vlaneseq }
  0xb0   :  { %1555 = vmatprep.subr.bf16.mxu0 %v2342_v58  ;;  %1719 = vmatprep.subr.bf16.mxu1 %v2345_v59 }
  0xb1   :  { %v266_v57 = vshrl.u32 %v265_v56, 7 }
  0xb3   :  { %1556 = vmatpush1.bf16.msra.mxu0 %v2340_v60  ;;  %1720 = vmatpush1.bf16.msra.mxu1 %v2343_v61  ;;  %v267_v58 = vsub.s32 0, %v266_v57  ;;  %v275_v59 = vsub.s32 2, %v266_v57  ;;  %v263_v60 = vld [vmem:[%s3189_s2] sm:$0xf]  ;;  %v271_v61 = vsub.s32 1, %v266_v57 }
  0xb4   :  { %1557 = vmatprep.subr.bf16.mxu0 %v2348_v62  ;;  %1721 = vmatprep.subr.bf16.mxu1 %v2351_v63  ;;  %v279_v62 = vsub.s32 3, %v266_v57 }
  0xb5   :  { %v268_v63 = vrot.slane %v263_v60, %v267_v58 }
  0xb7   :  { %1558 = vmatpush1.bf16.msra.mxu0 %v2346_v0  ;;  %1722 = vmatpush1.bf16.msra.mxu1 %v2349_v1  ;;  %v276_v0 = vrot.slane %v263_v60, %v275_v59  ;;  %v272_v1 = vrot.slane %v263_v60, %v271_v61 }
  0xb8   :  { %1559 = vmatprep.subr.bf16.mxu0 %v2354_v2  ;;  %1723 = vmatprep.subr.bf16.mxu1 %v2357_v3  ;;  %v280_v2 = vrot.slane %v263_v60, %v279_v62 }
  0xbb   :  { %1560 = vmatpush1.bf16.msra.mxu0 %v2352_v4  ;;  %1724 = vmatpush1.bf16.msra.mxu1 %v2355_v5 }
  0xbc   :  { %1561 = vmatprep.subr.bf16.mxu0 %v2360_v6  ;;  %1725 = vmatprep.subr.bf16.mxu1 %v2363_v7 }
  0xbf   :  { %1562 = vmatpush1.bf16.msra.mxu0 %v2358_v8  ;;  %1726 = vmatpush1.bf16.msra.mxu1 %v2361_v9 }
  0xc0   :  { %1572 = vmatprep.subr.bf16.mxu0 %v2366_v11  ;;  %1736 = vmatprep.subr.bf16.mxu1 %v2369_v12 }
  0xc2   :  { %1564 = vmatmul.mubr.bf16.vlgmr.msra.gmra.mrb[0].mxu0 %v27_v13  ;;  %1728 = vmatmul.mubr.bf16.vlgmr.msra.gmra.mrb[0].mxu1 %v27_v13 }
  0xc3   :  { %1573 = vmatpush1.bf16.msra.mxu0 %v2364_v15  ;;  %1737 = vmatpush1.bf16.msra.mxu1 %v2367_v16 }
  0xc4   :  { %1574 = vmatprep.subr.bf16.mxu0 %v2372_v17  ;;  %1738 = vmatprep.subr.bf16.mxu1 %v2375_v18 }
  0xc5   :  { %2042 = vmatprep.mubr.msk.bf16.mxu0 %vm1445_vm0, %v30_v19  ;;  %2043 = vmatprep.mubr.msk.bf16.mxu1 %vm1445_vm0, %v30_v19 }
  0xc7   :  { %1575 = vmatpush1.bf16.msra.mxu0 %v2370_v20  ;;  %1739 = vmatpush1.bf16.msra.mxu1 %v2373_v21 }
  0xc8   :  { %1576 = vmatprep.subr.bf16.mxu0 %v2378_v22  ;;  %1740 = vmatprep.subr.bf16.mxu1 %v2381_v23 }
  0xcb   :  { %1577 = vmatpush1.bf16.msra.mxu0 %v2376_v24  ;;  %1741 = vmatpush1.bf16.msra.mxu1 %v2379_v25 }
  0xcc   :  { %1578 = vmatprep.subr.bf16.mxu0 %v2384_v26  ;;  %1742 = vmatprep.subr.bf16.mxu1 %v2387_v27 }
  0xcf   :  { %1579 = vmatpush1.bf16.msra.mxu0 %v2382_v28  ;;  %1743 = vmatpush1.bf16.msra.mxu1 %v2385_v29 }
  0xd0   :  { %1580 = vmatprep.subr.bf16.mxu0 %v2390_v30  ;;  %1744 = vmatprep.subr.bf16.mxu1 %v2393_v31 }
  0xd3   :  { %1581 = vmatpush1.bf16.msra.mxu0 %v2388_v32  ;;  %1745 = vmatpush1.bf16.msra.mxu1 %v2391_v33 }
  0xd4   :  { %1582 = vmatprep.subr.bf16.mxu0 %v2396_v34  ;;  %1746 = vmatprep.subr.bf16.mxu1 %v2399_v35 }
  0xd7   :  { %1583 = vmatpush1.bf16.msra.mxu0 %v2394_v36  ;;  %1747 = vmatpush1.bf16.msra.mxu1 %v2397_v37 }
  0xd8   :  { %1584 = vmatprep.subr.bf16.mxu0 %v2402_v38  ;;  %1748 = vmatprep.subr.bf16.mxu1 %v2405_v39 }
  0xdb   :  { %1585 = vmatpush1.bf16.msra.mxu0 %v2400_v40  ;;  %1749 = vmatpush1.bf16.msra.mxu1 %v2403_v41 }
  0xdc   :  { %1586 = vmatprep.subr.bf16.mxu0 %v2408_v42  ;;  %1750 = vmatprep.subr.bf16.mxu1 %v2411_v43 }
  0xdf   :  { %1587 = vmatpush1.bf16.msra.mxu0 %v2406_v44  ;;  %1751 = vmatpush1.bf16.msra.mxu1 %v2409_v45 }
  0xe0   :  { %1588 = vmatprep.subr.bf16.mxu0 %v2414_v46  ;;  %1752 = vmatprep.subr.bf16.mxu1 %v2417_v47 }
  0xe3   :  { %1589 = vmatpush1.bf16.msra.mxu0 %v2412_v48  ;;  %1753 = vmatpush1.bf16.msra.mxu1 %v2415_v49 }
  0xe4   :  { %1590 = vmatprep.subr.bf16.mxu0 %v2420_v50  ;;  %1754 = vmatprep.subr.bf16.mxu1 %v2423_v51 }
  0xe7   :  { %1591 = vmatpush1.bf16.msra.mxu0 %v2418_v52  ;;  %1755 = vmatpush1.bf16.msra.mxu1 %v2421_v53 }
  0xea   :  { %1605 = vmatmul.mubr.bf16.vlgmr.msra.gmra.mrb[0].mxu0 %v29_v55  ;;  %1769 = vmatmul.mubr.bf16.vlgmr.msra.gmra.mrb[0].mxu1 %v29_v55 }
 0x1bd   :  { %v1606_v3 = vpop.f32.mrb[0].mxu0  ;;  %v1770_v4 = vpop.f32.mrb[0].mxu1 }
 0x1be   :  { %v2048_v5 = vadd.f32 %v1606_v3, %v268_v63  ;;  %v2050_v6 = vadd.f32 %v1770_v4, %v276_v0  ;;  %v1608_v7 = vpop.f32.mrb[1].mxu0  ;;  %v1772_v8 = vpop.f32.mrb[1].mxu1 }
 0x1bf   :  { %v2049_v9 = vadd.f32 %v1608_v7, %v272_v1  ;;  %v2051_v10 = vadd.f32 %v1772_v8, %v280_v2  ;;  %v1610_v11 = vpop.f32.mrb[2].mxu0  ;;  %v1774_v12 = vpop.f32.mrb[2].mxu1 }
 0x1c0   :  { %v1781_v13 = vmin.f32 %v2048_v5, 0.0  ;;  %v1783_v14 = vmin.f32 %v2050_v6, 0.0  ;;  %v1611_v15 = vpop.f32.mrb[3].mxu0  ;;  %v1775_v16 = vpop.f32.mrb[3].mxu1  ;;  %vm1777_vm1 = vcmp.gt.f32.partialorder %v2048_v5, 0.0  ;;  %vm1779_vm2 = vcmp.gt.f32.partialorder %v2050_v6, 0.0 }
 0x1c1   :  { %v1782_v17 = vmin.f32 %v2049_v9, 0.0  ;;  %v1784_v18 = vmin.f32 %v2051_v10, 0.0  ;;  %vm1778_vm3 = vcmp.gt.f32.partialorder %v2049_v9, 0.0  ;;  %vm1780_vm5 = vcmp.gt.f32.partialorder %v2051_v10, 0.0 }
 0x1c2   :  { %v1785_v19 = vmul.f32 1.442695, %v1781_v13  ;;  %v1789_v20 = vmul.f32 1.442695, %v1783_v14 }
 0x1c3   :  { %v1787_v21 = vmul.f32 1.442695, %v1782_v17  ;;  %v1791_v22 = vmul.f32 1.442695, %v1784_v18 }
 0x1c4   :  { %2424 = vpow2.f32 %v1785_v19 }
 0x1c5   :  { %2426 = vpow2.f32 %v1789_v20 }
 0x1c6   :  { %2428 = vpow2.f32 %v1787_v21 }
 0x1c7   :  { %2430 = vpow2.f32 %v1791_v22 }
 0x1ce   :  { %v2425_v23 = vpop.eup %2424 }
 0x1cf   :  { %v2427_v24 = vpop.eup %2426  ;;  %v2044_v25 = vadd.f32 -1.0, %v2425_v23 }
 0x1d0   :  { %v2429_v26 = vpop.eup %2428  ;;  %v2046_v27 = vadd.f32 -1.0, %v2427_v24 }
 0x1d1   :  { %v2431_v28 = vpop.eup %2430  ;;  %v1797_v29 = vsel %vm1777_vm1, %v2048_v5, %v2044_v25  ;;  %v2045_v30 = vadd.f32 -1.0, %v2429_v26 }
 0x1d2   :  { %1801 = vst [vmem:[%s3190_s3] sm:$0xff] %v1797_v29  ;;  %v1799_v31 = vsel %vm1779_vm2, %v2050_v6, %v2046_v27  ;;  %v2047_v32 = vadd.f32 -1.0, %v2431_v28 }
 0x1d3   :  { %1803 = vst [vmem:[%s3190_s3 + $0x10] sm:$0xff] %v1799_v31  ;;  %v1798_v33 = vsel %vm1778_vm3, %v2049_v9, %v2045_v30 }
 0x1d4   :  { %1802 = vst [vmem:[%s3190_s3 + $0x8] sm:$0xff] %v1798_v33  ;;  %v1800_v34 = vsel %vm1780_vm5, %v2051_v10, %v2047_v32 }
 0x1d5   :  { %1805 = vst.msk [vmem:[%s3190_s3 + $0x18] sm:$0xff] %vm1804_vm4, %v1800_v34 }

// kernel: _lambda_.31
= control target key start
LH: loop header
LB: loop body
LE: loop exit
PB: predicated region body
PF: predicated region fallthrough
CT: control target
= control target key end

     0   :  { %vm1464_vm0 = vcmask 654336   ;;  %s4184_s0 = inlined_call_operand.vmem [shape: f32[8,464], index: 0, kind: input, shape index: {}]   ;;  %s4185_s1 = inlined_call_operand.vmem [shape: bf16[464,1024], index: 1, kind: input, shape index: {}]   ;;  %s4186_s2 = inlined_call_operand.vmem [shape: f32[1,1024], index: 2, kind: input, shape index: {}]   ;;  %s4187_s3 = inlined_call_operand.vmem [shape: bf16[1024,16], index: 3, kind: input, shape index: {}]   ;;  %s4188_s4 = inlined_call_operand.vmem [shape: f32[1,16], index: 4, kind: input, shape index: {}]   ;;  %s4189_s5 = inlined_call_operand.hbm [shape: f32[2,16], index: 5, kind: output, shape index: {}]  }
   0x1   :  { %v30_v0 = vld [vmem:[%s4185_s1] sm:$0xff]  ;;  %v31_v2 = vld [vmem:[%s4185_s1 + $0x8] sm:$0xff] }
   0x2   :  { %v34_v1 = vld [vmem:[%s4185_s1 + $0x20] sm:$0xff]  ;;  %v35_v4 = vld [vmem:[%s4185_s1 + $0x28] sm:$0xff] }
   0x3   :  { %v2662_v3 = vcombine.high %v30_v0, %v34_v1  ;;  %v2661_v5 = vcombine.low %v30_v0, %v34_v1  ;;  %v38_v6 = vld [vmem:[%s4185_s1 + $0x40] sm:$0xff]  ;;  %v2664_v8 = vcombine.high %v31_v2, %v35_v4  ;;  %v2663_v9 = vcombine.low %v31_v2, %v35_v4  ;;  %v39_v11 = vld [vmem:[%s4185_s1 + $0x48] sm:$0xff] }
   0x4   :  { %v42_v7 = vld [vmem:[%s4185_s1 + $0x60] sm:$0xff]  ;;  %v43_v12 = vld [vmem:[%s4185_s1 + $0x68] sm:$0xff] }
   0x5   :  { %v2670_v10 = vcombine.high %v38_v6, %v42_v7  ;;  %v46_v13 = vld [vmem:[%s4185_s1 + $0x80] sm:$0xff]  ;;  %1468 = vmatprep.subr.bf16.mxu0 %v2662_v3  ;;  %v2672_v14 = vcombine.high %v39_v11, %v43_v12  ;;  %v47_v16 = vld [vmem:[%s4185_s1 + $0x88] sm:$0xff]  ;;  %1550 = vmatprep.subr.bf16.mxu1 %v2664_v8  ;;  %v2669_v18 = vcombine.low %v38_v6, %v42_v7 }
   0x6   :  { %v50_v15 = vld [vmem:[%s4185_s1 + $0xa0] sm:$0xff]  ;;  %v51_v17 = vld [vmem:[%s4185_s1 + $0xa8] sm:$0xff]  ;;  %1469 = vmatpush1.bf16.msra.mxu0 %v2661_v5  ;;  %1551 = vmatpush1.bf16.msra.mxu1 %v2663_v9  ;;  %v2671_v19 = vcombine.low %v39_v11, %v43_v12 }
   0x7   :  { %1470 = vmatprep.subr.bf16.mxu0 %v2670_v10  ;;  %v2678_v20 = vcombine.high %v46_v13, %v50_v15  ;;  %1552 = vmatprep.subr.bf16.mxu1 %v2672_v14  ;;  %v2680_v21 = vcombine.high %v47_v16, %v51_v17  ;;  %v54_v22 = vld [vmem:[%s4185_s1 + $0xc0] sm:$0xff]  ;;  %v55_v24 = vld [vmem:[%s4185_s1 + $0xc8] sm:$0xff]  ;;  %v2677_v26 = vcombine.low %v46_v13, %v50_v15 }
   0x8   :  { %v58_v23 = vld [vmem:[%s4185_s1 + $0xe0] sm:$0xff]  ;;  %v59_v25 = vld [vmem:[%s4185_s1 + $0xe8] sm:$0xff]  ;;  %v2679_v27 = vcombine.low %v47_v16, %v51_v17 }
   0x9   :  { %v2686_v28 = vcombine.high %v54_v22, %v58_v23  ;;  %v2688_v29 = vcombine.high %v55_v24, %v59_v25  ;;  %v62_v30 = vld [vmem:[%s4185_s1 + $0x100] sm:$0xff]  ;;  %v63_v32 = vld [vmem:[%s4185_s1 + $0x108] sm:$0xff]  ;;  %v2685_v34 = vcombine.low %v54_v22, %v58_v23  ;;  %v2687_v35 = vcombine.low %v55_v24, %v59_v25 }
   0xa   :  { %1471 = vmatpush1.bf16.msra.mxu0 %v2669_v18  ;;  %1553 = vmatpush1.bf16.msra.mxu1 %v2671_v19  ;;  %v66_v31 = vld [vmem:[%s4185_s1 + $0x120] sm:$0xff]  ;;  %v67_v33 = vld [vmem:[%s4185_s1 + $0x128] sm:$0xff] }
   0xb   :  { %1472 = vmatprep.subr.bf16.mxu0 %v2678_v20  ;;  %1554 = vmatprep.subr.bf16.mxu1 %v2680_v21  ;;  %v2694_v36 = vcombine.high %v62_v30, %v66_v31  ;;  %v2696_v37 = vcombine.high %v63_v32, %v67_v33  ;;  %v70_v38 = vld [vmem:[%s4185_s1 + $0x140] sm:$0xff]  ;;  %v71_v40 = vld [vmem:[%s4185_s1 + $0x148] sm:$0xff]  ;;  %v2693_v42 = vcombine.low %v62_v30, %v66_v31 }
   0xc   :  { %v74_v39 = vld [vmem:[%s4185_s1 + $0x160] sm:$0xff]  ;;  %v75_v41 = vld [vmem:[%s4185_s1 + $0x168] sm:$0xff]  ;;  %v2695_v43 = vcombine.low %v63_v32, %v67_v33 }
   0xd   :  { %v2702_v44 = vcombine.high %v70_v38, %v74_v39  ;;  %v2704_v45 = vcombine.high %v71_v40, %v75_v41  ;;  %v78_v46 = vld [vmem:[%s4185_s1 + $0x180] sm:$0xff]  ;;  %v79_v48 = vld [vmem:[%s4185_s1 + $0x188] sm:$0xff]  ;;  %v2701_v50 = vcombine.low %v70_v38, %v74_v39  ;;  %v2703_v51 = vcombine.low %v71_v40, %v75_v41 }
   0xe   :  { %1473 = vmatpush1.bf16.msra.mxu0 %v2677_v26  ;;  %1555 = vmatpush1.bf16.msra.mxu1 %v2679_v27  ;;  %v82_v47 = vld [vmem:[%s4185_s1 + $0x1a0] sm:$0xff]  ;;  %v83_v49 = vld [vmem:[%s4185_s1 + $0x1a8] sm:$0xff] }
   0xf   :  { %1474 = vmatprep.subr.bf16.mxu0 %v2686_v28  ;;  %1556 = vmatprep.subr.bf16.mxu1 %v2688_v29  ;;  %v2710_v52 = vcombine.high %v78_v46, %v82_v47  ;;  %v23_v53 = vld [vmem:[%s4184_s0 + $0x8] sm:$0xff]  ;;  %v2712_v54 = vcombine.high %v79_v48, %v83_v49  ;;  %v86_v55 = vld [vmem:[%s4185_s1 + $0x1c0] sm:$0xff]  ;;  %v2709_v60 = vcombine.low %v78_v46, %v82_v47 }
  0x10   :  { %v90_v56 = vld [vmem:[%s4185_s1 + $0x1e0] sm:$0xff]  ;;  %v3287_v57 = vpack.c.bf16 %v23_v53, %v23_v53  ;;  %v87_v58 = vld [vmem:[%s4185_s1 + $0x1c8] sm:$0xff]  ;;  %v2711_v61 = vcombine.low %v79_v48, %v83_v49 }
  0x11   :  { %v91_v59 = vld [vmem:[%s4185_s1 + $0x1e8] sm:$0xff]  ;;  %v2718_v62 = vcombine.high %v86_v55, %v90_v56  ;;  %v94_v0 = vld [vmem:[%s4185_s1 + $0x200] sm:$0xff]  ;;  %v2717_v4 = vcombine.low %v86_v55, %v90_v56 }
  0x12   :  { %1475 = vmatpush1.bf16.msra.mxu0 %v2685_v34  ;;  %1557 = vmatpush1.bf16.msra.mxu1 %v2687_v35  ;;  %v2720_v63 = vcombine.high %v87_v58, %v91_v59  ;;  %v98_v1 = vld [vmem:[%s4185_s1 + $0x220] sm:$0xff]  ;;  %v95_v2 = vld [vmem:[%s4185_s1 + $0x208] sm:$0xff]  ;;  %v2719_v5 = vcombine.low %v87_v58, %v91_v59 }
  0x13   :  { %1476 = vmatprep.subr.bf16.mxu0 %v2694_v36  ;;  %1558 = vmatprep.subr.bf16.mxu1 %v2696_v37  ;;  %v99_v3 = vld [vmem:[%s4185_s1 + $0x228] sm:$0xff]  ;;  %v2726_v6 = vcombine.high %v94_v0, %v98_v1  ;;  %v102_v8 = vld [vmem:[%s4185_s1 + $0x240] sm:$0xff]  ;;  %v2725_v12 = vcombine.low %v94_v0, %v98_v1 }
  0x14   :  { %1500 = vmatprep.mubr.bf16.mxu0 %v3287_v57  ;;  %1582 = vmatprep.mubr.bf16.mxu1 %v3287_v57  ;;  %v2728_v7 = vcombine.high %v95_v2, %v99_v3  ;;  %v106_v9 = vld [vmem:[%s4185_s1 + $0x260] sm:$0xff]  ;;  %v103_v10 = vld [vmem:[%s4185_s1 + $0x248] sm:$0xff]  ;;  %v2727_v13 = vcombine.low %v95_v2, %v99_v3 }
  0x15   :  { %v107_v11 = vld [vmem:[%s4185_s1 + $0x268] sm:$0xff]  ;;  %v2734_v14 = vcombine.high %v102_v8, %v106_v9  ;;  %v110_v16 = vld [vmem:[%s4185_s1 + $0x280] sm:$0xff]  ;;  %v2733_v20 = vcombine.low %v102_v8, %v106_v9 }
  0x16   :  { %1477 = vmatpush1.bf16.msra.mxu0 %v2693_v42  ;;  %1559 = vmatpush1.bf16.msra.mxu1 %v2695_v43  ;;  %v2736_v15 = vcombine.high %v103_v10, %v107_v11  ;;  %v114_v17 = vld [vmem:[%s4185_s1 + $0x2a0] sm:$0xff]  ;;  %v111_v18 = vld [vmem:[%s4185_s1 + $0x288] sm:$0xff]  ;;  %v2735_v21 = vcombine.low %v103_v10, %v107_v11 }
  0x17   :  { %1478 = vmatprep.subr.bf16.mxu0 %v2702_v44  ;;  %1560 = vmatprep.subr.bf16.mxu1 %v2704_v45  ;;  %v115_v19 = vld [vmem:[%s4185_s1 + $0x2a8] sm:$0xff]  ;;  %v2742_v22 = vcombine.high %v110_v16, %v114_v17  ;;  %v118_v24 = vld [vmem:[%s4185_s1 + $0x2c0] sm:$0xff]  ;;  %v2741_v28 = vcombine.low %v110_v16, %v114_v17 }
  0x18   :  { %v2744_v23 = vcombine.high %v111_v18, %v115_v19  ;;  %v122_v25 = vld [vmem:[%s4185_s1 + $0x2e0] sm:$0xff]  ;;  %v119_v26 = vld [vmem:[%s4185_s1 + $0x2c8] sm:$0xff]  ;;  %v2743_v29 = vcombine.low %v111_v18, %v115_v19 }
  0x19   :  { %v123_v27 = vld [vmem:[%s4185_s1 + $0x2e8] sm:$0xff]  ;;  %v2750_v30 = vcombine.high %v118_v24, %v122_v25  ;;  %v126_v32 = vld [vmem:[%s4185_s1 + $0x300] sm:$0xff]  ;;  %v2749_v36 = vcombine.low %v118_v24, %v122_v25 }
  0x1a   :  { %1479 = vmatpush1.bf16.msra.mxu0 %v2701_v50  ;;  %1561 = vmatpush1.bf16.msra.mxu1 %v2703_v51  ;;  %v2752_v31 = vcombine.high %v119_v26, %v123_v27  ;;  %v130_v33 = vld [vmem:[%s4185_s1 + $0x320] sm:$0xff]  ;;  %v127_v34 = vld [vmem:[%s4185_s1 + $0x308] sm:$0xff]  ;;  %v2751_v37 = vcombine.low %v119_v26, %v123_v27 }
  0x1b   :  { %1480 = vmatprep.subr.bf16.mxu0 %v2710_v52  ;;  %1562 = vmatprep.subr.bf16.mxu1 %v2712_v54  ;;  %v131_v35 = vld [vmem:[%s4185_s1 + $0x328] sm:$0xff]  ;;  %v2758_v38 = vcombine.high %v126_v32, %v130_v33  ;;  %v134_v40 = vld [vmem:[%s4185_s1 + $0x340] sm:$0xff]  ;;  %v2757_v44 = vcombine.low %v126_v32, %v130_v33 }
  0x1c   :  { %v2760_v39 = vcombine.high %v127_v34, %v131_v35  ;;  %v138_v41 = vld [vmem:[%s4185_s1 + $0x360] sm:$0xff]  ;;  %v135_v42 = vld [vmem:[%s4185_s1 + $0x348] sm:$0xff]  ;;  %v2759_v45 = vcombine.low %v127_v34, %v131_v35 }
  0x1d   :  { %v139_v43 = vld [vmem:[%s4185_s1 + $0x368] sm:$0xff]  ;;  %v2766_v46 = vcombine.high %v134_v40, %v138_v41  ;;  %v142_v48 = vld [vmem:[%s4185_s1 + $0x380] sm:$0xff]  ;;  %v2765_v52 = vcombine.low %v134_v40, %v138_v41 }
  0x1e   :  { %1481 = vmatpush1.bf16.msra.mxu0 %v2709_v60  ;;  %1563 = vmatpush1.bf16.msra.mxu1 %v2711_v61  ;;  %v2768_v47 = vcombine.high %v135_v42, %v139_v43  ;;  %v146_v49 = vld [vmem:[%s4185_s1 + $0x3a0] sm:$0xff]  ;;  %v143_v50 = vld [vmem:[%s4185_s1 + $0x388] sm:$0xff]  ;;  %v2767_v53 = vcombine.low %v135_v42, %v139_v43 }
  0x1f   :  { %1482 = vmatprep.subr.bf16.mxu0 %v2718_v62  ;;  %1564 = vmatprep.subr.bf16.mxu1 %v2720_v63  ;;  %v147_v51 = vld [vmem:[%s4185_s1 + $0x3a8] sm:$0xff]  ;;  %v2774_v54 = vcombine.high %v142_v48, %v146_v49  ;;  %v150_v56 = vld [vmem:[%s4185_s1 + $0x3c0] sm:$0xff]  ;;  %v2773_v61 = vcombine.low %v142_v48, %v146_v49 }
  0x20   :  { %v2776_v55 = vcombine.high %v143_v50, %v147_v51  ;;  %v154_v58 = vld [vmem:[%s4185_s1 + $0x3e0] sm:$0xff]  ;;  %v151_v59 = vld [vmem:[%s4185_s1 + $0x3c8] sm:$0xff]  ;;  %v2775_v62 = vcombine.low %v143_v50, %v147_v51 }
  0x21   :  { %v155_v60 = vld [vmem:[%s4185_s1 + $0x3e8] sm:$0xff]  ;;  %v2782_v63 = vcombine.high %v150_v56, %v154_v58  ;;  %v158_v1 = vld [vmem:[%s4185_s1 + $0x400] sm:$0xff] }
  0x22   :  { %1483 = vmatpush1.bf16.msra.mxu0 %v2717_v4  ;;  %1565 = vmatpush1.bf16.msra.mxu1 %v2719_v5  ;;  %v2784_v0 = vcombine.high %v151_v59, %v155_v60  ;;  %v162_v2 = vld [vmem:[%s4185_s1 + $0x420] sm:$0xff]  ;;  %v159_v3 = vld [vmem:[%s4185_s1 + $0x408] sm:$0xff]  ;;  %v2781_v5 = vcombine.low %v150_v56, %v154_v58 }
  0x23   :  { %1484 = vmatprep.subr.bf16.mxu0 %v2726_v6  ;;  %1566 = vmatprep.subr.bf16.mxu1 %v2728_v7  ;;  %v163_v4 = vld [vmem:[%s4185_s1 + $0x428] sm:$0xff]  ;;  %v22_v6 = vld [vmem:[%s4184_s0] sm:$0xff]  ;;  %v2783_v7 = vcombine.low %v151_v59, %v155_v60  ;;  %v2790_v8 = vcombine.high %v158_v1, %v162_v2  ;;  %v2789_v16 = vcombine.low %v158_v1, %v162_v2 }
  0x24   :  { %v2792_v9 = vcombine.high %v159_v3, %v163_v4  ;;  %v166_v10 = vld [vmem:[%s4185_s1 + $0x440] sm:$0xff]  ;;  %v2791_v17 = vcombine.low %v159_v3, %v163_v4  ;;  %v187_v32 = vld [vmem:[%s4185_s1 + $0x4e8] sm:$0xff] }
  0x25   :  { %v170_v11 = vld [vmem:[%s4185_s1 + $0x460] sm:$0xff]  ;;  %v195_v40 = vld [vmem:[%s4185_s1 + $0x528] sm:$0xff] }
  0x26   :  { %1485 = vmatpush1.bf16.msra.mxu0 %v2725_v12  ;;  %1567 = vmatpush1.bf16.msra.mxu1 %v2727_v13  ;;  %v3414_v12 = vpack.c.bf16 %v22_v6, %v22_v6  ;;  %v167_v13 = vld [vmem:[%s4185_s1 + $0x448] sm:$0xff]  ;;  %v2798_v18 = vcombine.high %v166_v10, %v170_v11  ;;  %v174_v19 = vld [vmem:[%s4185_s1 + $0x480] sm:$0xff]  ;;  %v2797_v25 = vcombine.low %v166_v10, %v170_v11 }
  0x27   :  { %1486 = vmatprep.subr.bf16.mxu0 %v2734_v14  ;;  %1568 = vmatprep.subr.bf16.mxu1 %v2736_v15  ;;  %v171_v14 = vld [vmem:[%s4185_s1 + $0x468] sm:$0xff]  ;;  %v25_v15 = vld [vmem:[%s4184_s0 + $0x18] sm:$0xff]  ;;  %v226_v6 = vld [vmem:[%s4185_s1 + $0x620] sm:$0xff] }
  0x28   :  { %v3437_v24 = vpack.c.bf16 %v25_v15, %v25_v15  ;;  %v2799_v26 = vcombine.low %v167_v13, %v171_v14  ;;  %v203_v48 = vld [vmem:[%s4185_s1 + $0x568] sm:$0xff]  ;;  %v234_v15 = vld [vmem:[%s4185_s1 + $0x660] sm:$0xff] }
  0x29   :  { %v211_v56 = vld [vmem:[%s4185_s1 + $0x5a8] sm:$0xff] }
  0x2a   :  { %1487 = vmatpush1.bf16.msra.mxu0 %v2733_v20  ;;  %1569 = vmatpush1.bf16.msra.mxu1 %v2735_v21  ;;  %v178_v20 = vld [vmem:[%s4185_s1 + $0x4a0] sm:$0xff]  ;;  %v2800_v21 = vcombine.high %v167_v13, %v171_v14  ;;  %v219_v1 = vld [vmem:[%s4185_s1 + $0x5e8] sm:$0xff] }
  0x2b   :  { %1488 = vmatprep.subr.bf16.mxu0 %v2742_v22  ;;  %1570 = vmatprep.subr.bf16.mxu1 %v2744_v23  ;;  %v175_v22 = vld [vmem:[%s4185_s1 + $0x488] sm:$0xff]  ;;  %v2806_v27 = vcombine.high %v174_v19, %v178_v20  ;;  %v2805_v33 = vcombine.low %v174_v19, %v178_v20  ;;  %v230_v14 = vld [vmem:[%s4185_s1 + $0x640] sm:$0xff] }
  0x2c   :  { %v179_v23 = vld [vmem:[%s4185_s1 + $0x4a8] sm:$0xff] }
  0x2d   :  { %v2807_v34 = vcombine.low %v175_v22, %v179_v23 }
  0x2e   :  { %1489 = vmatpush1.bf16.msra.mxu0 %v2741_v28  ;;  %1571 = vmatpush1.bf16.msra.mxu1 %v2743_v29  ;;  %v182_v28 = vld [vmem:[%s4185_s1 + $0x4c0] sm:$0xff] }
  0x2f   :  { %1490 = vmatprep.subr.bf16.mxu0 %v2750_v30  ;;  %1572 = vmatprep.subr.bf16.mxu1 %v2752_v31  ;;  %v186_v29 = vld [vmem:[%s4185_s1 + $0x4e0] sm:$0xff]  ;;  %v183_v30 = vld [vmem:[%s4185_s1 + $0x4c8] sm:$0xff]  ;;  %v2808_v31 = vcombine.high %v175_v22, %v179_v23 }
  0x30   :  { %v2814_v35 = vcombine.high %v182_v28, %v186_v29  ;;  %v2813_v41 = vcombine.low %v182_v28, %v186_v29  ;;  %v2815_v42 = vcombine.low %v183_v30, %v187_v32  ;;  %v238_v22 = vld [vmem:[%s4185_s1 + $0x680] sm:$0xff]  ;;  %v2861_v28 = vcombine.low %v230_v14, %v234_v15 }
  0x31   :  { %v242_v23 = vld [vmem:[%s4185_s1 + $0x6a0] sm:$0xff] }
  0x32   :  { %1491 = vmatpush1.bf16.msra.mxu0 %v2749_v36  ;;  %1573 = vmatpush1.bf16.msra.mxu1 %v2751_v37  ;;  %v190_v36 = vld [vmem:[%s4185_s1 + $0x500] sm:$0xff] }
  0x33   :  { %1492 = vmatprep.subr.bf16.mxu0 %v2758_v38  ;;  %1574 = vmatprep.subr.bf16.mxu1 %v2760_v39  ;;  %v194_v37 = vld [vmem:[%s4185_s1 + $0x520] sm:$0xff]  ;;  %v191_v38 = vld [vmem:[%s4185_s1 + $0x508] sm:$0xff]  ;;  %v2816_v39 = vcombine.high %v183_v30, %v187_v32  ;;  %v2870_v30 = vcombine.high %v238_v22, %v242_v23 }
  0x34   :  { %v2822_v43 = vcombine.high %v190_v36, %v194_v37  ;;  %v2821_v49 = vcombine.low %v190_v36, %v194_v37  ;;  %v2823_v50 = vcombine.low %v191_v38, %v195_v40  ;;  %v250_v32 = vld [vmem:[%s4185_s1 + $0x6e0] sm:$0xff]  ;;  %v2869_v36 = vcombine.low %v238_v22, %v242_v23 }
  0x35   :  { %v254_v37 = vld [vmem:[%s4185_s1 + $0x700] sm:$0xff] }
  0x36   :  { %1493 = vmatpush1.bf16.msra.mxu0 %v2757_v44  ;;  %1575 = vmatpush1.bf16.msra.mxu1 %v2759_v45  ;;  %v198_v44 = vld [vmem:[%s4185_s1 + $0x540] sm:$0xff] }
  0x37   :  { %1494 = vmatprep.subr.bf16.mxu0 %v2766_v46  ;;  %1576 = vmatprep.subr.bf16.mxu1 %v2768_v47  ;;  %v202_v45 = vld [vmem:[%s4185_s1 + $0x560] sm:$0xff]  ;;  %v199_v46 = vld [vmem:[%s4185_s1 + $0x548] sm:$0xff]  ;;  %v2824_v47 = vcombine.high %v191_v38, %v195_v40 }
  0x38   :  { %v2830_v51 = vcombine.high %v198_v44, %v202_v45  ;;  %v2829_v58 = vcombine.low %v198_v44, %v202_v45  ;;  %v2831_v59 = vcombine.low %v199_v46, %v203_v48  ;;  %v258_v38 = vld [vmem:[%s4185_s1 + $0x720] sm:$0xff] }
  0x3a   :  { %1495 = vmatpush1.bf16.msra.mxu0 %v2765_v52  ;;  %1577 = vmatpush1.bf16.msra.mxu1 %v2767_v53  ;;  %v206_v52 = vld [vmem:[%s4185_s1 + $0x580] sm:$0xff] }
  0x3b   :  { %1496 = vmatprep.subr.bf16.mxu0 %v2774_v54  ;;  %1578 = vmatprep.subr.bf16.mxu1 %v2776_v55  ;;  %v210_v53 = vld [vmem:[%s4185_s1 + $0x5a0] sm:$0xff]  ;;  %v207_v54 = vld [vmem:[%s4185_s1 + $0x588] sm:$0xff]  ;;  %v2832_v55 = vcombine.high %v199_v46, %v203_v48  ;;  %v2886_v46 = vcombine.high %v254_v37, %v258_v38  ;;  %v36_v48 = vld [vmem:[%s4185_s1 + $0x30] sm:$0xff] }
  0x3c   :  { %v2838_v60 = vcombine.high %v206_v52, %v210_v53  ;;  %v2837_v2 = vcombine.low %v206_v52, %v210_v53  ;;  %v2839_v3 = vcombine.low %v207_v54, %v211_v56  ;;  %v37_v52 = vld [vmem:[%s4185_s1 + $0x38] sm:$0xff]  ;;  %v2885_v53 = vcombine.low %v254_v37, %v258_v38 }
  0x3e   :  { %1497 = vmatpush1.bf16.msra.mxu0 %v2773_v61  ;;  %1579 = vmatpush1.bf16.msra.mxu1 %v2775_v62  ;;  %v214_v61 = vld [vmem:[%s4185_s1 + $0x5c0] sm:$0xff] }
  0x3f   :  { %1498 = vmatprep.subr.bf16.mxu0 %v2782_v63  ;;  %1580 = vmatprep.subr.bf16.mxu1 %v2784_v0  ;;  %v218_v62 = vld [vmem:[%s4185_s1 + $0x5e0] sm:$0xff]  ;;  %v215_v63 = vld [vmem:[%s4185_s1 + $0x5c8] sm:$0xff]  ;;  %v2840_v0 = vcombine.high %v207_v54, %v211_v56  ;;  %v40_v54 = vld [vmem:[%s4185_s1 + $0x50] sm:$0xff] }
  0x40   :  { %v2846_v4 = vcombine.high %v214_v61, %v218_v62  ;;  %v2845_v10 = vcombine.low %v214_v61, %v218_v62  ;;  %v2847_v11 = vcombine.low %v215_v63, %v219_v1  ;;  %v45_v61 = vld [vmem:[%s4185_s1 + $0x78] sm:$0xff] }
  0x42   :  { %1499 = vmatpush1.bf16.msra.mxu0 %v2781_v5  ;;  %1581 = vmatpush1.bf16.msra.mxu1 %v2783_v7  ;;  %v222_v5 = vld [vmem:[%s4185_s1 + $0x600] sm:$0xff]  ;;  %v223_v7 = vld [vmem:[%s4185_s1 + $0x608] sm:$0xff] }
  0x43   :  { %1509 = vmatprep.subr.bf16.mxu0 %v2790_v8  ;;  %1591 = vmatprep.subr.bf16.mxu1 %v2792_v9  ;;  %v2848_v8 = vcombine.high %v215_v63, %v219_v1  ;;  %v227_v9 = vld [vmem:[%s4185_s1 + $0x628] sm:$0xff]  ;;  %v2854_v13 = vcombine.high %v222_v5, %v226_v6  ;;  %v2853_v19 = vcombine.low %v222_v5, %v226_v6  ;;  %v52_v1 = vld [vmem:[%s4185_s1 + $0xb0] sm:$0xff]  ;;  %v53_v5 = vld [vmem:[%s4185_s1 + $0xb8] sm:$0xff] }
  0x44   :  { %v2855_v20 = vcombine.low %v223_v7, %v227_v9 }
  0x45   :  { %1501 = vmatmul.mubr.bf16.vlgmr.msra.gmra.mrb[0].mxu0 %v3414_v12  ;;  %1583 = vmatmul.mubr.bf16.vlgmr.msra.gmra.mrb[0].mxu1 %v3414_v12 }
  0x46   :  { %1510 = vmatpush1.bf16.msra.mxu0 %v2789_v16  ;;  %1592 = vmatpush1.bf16.msra.mxu1 %v2791_v17  ;;  %v231_v16 = vld [vmem:[%s4185_s1 + $0x648] sm:$0xff]  ;;  %v2856_v17 = vcombine.high %v223_v7, %v227_v9  ;;  %v60_v9 = vld [vmem:[%s4185_s1 + $0xf0] sm:$0xff] }
  0x47   :  { %1511 = vmatprep.subr.bf16.mxu0 %v2798_v18  ;;  %1593 = vmatprep.subr.bf16.mxu1 %v2800_v21  ;;  %v235_v18 = vld [vmem:[%s4185_s1 + $0x668] sm:$0xff]  ;;  %v2862_v21 = vcombine.high %v230_v14, %v234_v15  ;;  %v61_v14 = vld [vmem:[%s4185_s1 + $0xf8] sm:$0xff] }
  0x48   :  { %2893 = vmatprep.mubr.msk.bf16.mxu0 %vm1464_vm0, %v3437_v24  ;;  %2894 = vmatprep.mubr.msk.bf16.mxu1 %vm1464_vm0, %v3437_v24  ;;  %v2863_v29 = vcombine.low %v231_v16, %v235_v18 }
  0x4a   :  { %1512 = vmatpush1.bf16.msra.mxu0 %v2797_v25  ;;  %1594 = vmatpush1.bf16.msra.mxu1 %v2799_v26  ;;  %v239_v25 = vld [vmem:[%s4185_s1 + $0x688] sm:$0xff]  ;;  %v2864_v26 = vcombine.high %v231_v16, %v235_v18 }
  0x4b   :  { %1513 = vmatprep.subr.bf16.mxu0 %v2806_v27  ;;  %1595 = vmatprep.subr.bf16.mxu1 %v2808_v31  ;;  %v243_v27 = vld [vmem:[%s4185_s1 + $0x6a8] sm:$0xff]  ;;  %v246_v31 = vld [vmem:[%s4185_s1 + $0x6c0] sm:$0xff] }
  0x4c   :  { %v2878_v40 = vcombine.high %v246_v31, %v250_v32  ;;  %v2877_v44 = vcombine.low %v246_v31, %v250_v32 }
  0x4e   :  { %1514 = vmatpush1.bf16.msra.mxu0 %v2805_v33  ;;  %1596 = vmatpush1.bf16.msra.mxu1 %v2807_v34  ;;  %v247_v33 = vld [vmem:[%s4185_s1 + $0x6c8] sm:$0xff]  ;;  %v2872_v34 = vcombine.high %v239_v25, %v243_v27 }
  0x4f   :  { %1515 = vmatprep.subr.bf16.mxu0 %v2814_v35  ;;  %1597 = vmatprep.subr.bf16.mxu1 %v2816_v39  ;;  %v251_v35 = vld [vmem:[%s4185_s1 + $0x6e8] sm:$0xff]  ;;  %v2871_v39 = vcombine.low %v239_v25, %v243_v27 }
  0x50   :  { %v2879_v45 = vcombine.low %v247_v33, %v251_v35 }
  0x52   :  { %1516 = vmatpush1.bf16.msra.mxu0 %v2813_v41  ;;  %1598 = vmatpush1.bf16.msra.mxu1 %v2815_v42  ;;  %v255_v41 = vld [vmem:[%s4185_s1 + $0x708] sm:$0xff] }
  0x53   :  { %1517 = vmatprep.subr.bf16.mxu0 %v2822_v43  ;;  %1599 = vmatprep.subr.bf16.mxu1 %v2824_v47  ;;  %v259_v42 = vld [vmem:[%s4185_s1 + $0x728] sm:$0xff]  ;;  %v2880_v43 = vcombine.high %v247_v33, %v251_v35  ;;  %v32_v47 = vld [vmem:[%s4185_s1 + $0x10] sm:$0xff] }
  0x54   :  { %v2887_v56 = vcombine.low %v255_v41, %v259_v42  ;;  %v2665_v63 = vcombine.low %v32_v47, %v36_v48 }
  0x56   :  { %1518 = vmatpush1.bf16.msra.mxu0 %v2821_v49  ;;  %1600 = vmatpush1.bf16.msra.mxu1 %v2823_v50  ;;  %v33_v49 = vld [vmem:[%s4185_s1 + $0x18] sm:$0xff]  ;;  %v2888_v50 = vcombine.high %v255_v41, %v259_v42 }
  0x57   :  { %1519 = vmatprep.subr.bf16.mxu0 %v2830_v51  ;;  %1601 = vmatprep.subr.bf16.mxu1 %v2832_v55  ;;  %v24_v51 = vld [vmem:[%s4184_s0 + $0x10] sm:$0xff] }
  0x58   :  { %v44_v55 = vld [vmem:[%s4185_s1 + $0x70] sm:$0xff]  ;;  %v3592_v62 = vpack.c.bf16 %v24_v51, %v24_v51 }
  0x59   :  { %v2673_v7 = vcombine.low %v40_v54, %v44_v55 }
  0x5a   :  { %1520 = vmatpush1.bf16.msra.mxu0 %v2829_v58  ;;  %1602 = vmatpush1.bf16.msra.mxu1 %v2831_v59  ;;  %v2666_v58 = vcombine.high %v32_v47, %v36_v48  ;;  %v41_v59 = vld [vmem:[%s4185_s1 + $0x58] sm:$0xff] }
  0x5b   :  { %1521 = vmatprep.subr.bf16.mxu0 %v2838_v60  ;;  %1603 = vmatprep.subr.bf16.mxu1 %v2840_v0  ;;  %v2668_v60 = vcombine.high %v33_v49, %v37_v52  ;;  %v48_v0 = vld [vmem:[%s4185_s1 + $0x90] sm:$0xff]  ;;  %v2676_v6 = vcombine.high %v41_v59, %v45_v61 }
  0x5c   :  { %v2681_v16 = vcombine.low %v48_v0, %v52_v1 }
  0x5e   :  { %1522 = vmatpush1.bf16.msra.mxu0 %v2837_v2  ;;  %1604 = vmatpush1.bf16.msra.mxu1 %v2839_v3  ;;  %v2667_v2 = vcombine.low %v33_v49, %v37_v52  ;;  %v2674_v3 = vcombine.high %v40_v54, %v44_v55 }
  0x5f   :  { %1523 = vmatprep.subr.bf16.mxu0 %v2846_v4  ;;  %1605 = vmatprep.subr.bf16.mxu1 %v2848_v8  ;;  %v49_v4 = vld [vmem:[%s4185_s1 + $0x98] sm:$0xff]  ;;  %v56_v8 = vld [vmem:[%s4185_s1 + $0xd0] sm:$0xff] }
  0x60   :  { %v2684_v15 = vcombine.high %v49_v4, %v53_v5 }
  0x62   :  { %1524 = vmatpush1.bf16.msra.mxu0 %v2845_v10  ;;  %1606 = vmatpush1.bf16.msra.mxu1 %v2847_v11  ;;  %v2675_v10 = vcombine.low %v41_v59, %v45_v61  ;;  %v2682_v11 = vcombine.high %v48_v0, %v52_v1 }
  0x63   :  { %1525 = vmatprep.subr.bf16.mxu0 %v2854_v13  ;;  %1607 = vmatprep.subr.bf16.mxu1 %v2856_v17  ;;  %v57_v13 = vld [vmem:[%s4185_s1 + $0xd8] sm:$0xff] }
  0x66   :  { %1526 = vmatpush1.bf16.msra.mxu0 %v2853_v19  ;;  %1608 = vmatpush1.bf16.msra.mxu1 %v2855_v20 }
  0x67   :  { %1527 = vmatprep.subr.bf16.mxu0 %v2862_v21  ;;  %1609 = vmatprep.subr.bf16.mxu1 %v2864_v26 }
  0x6a   :  { %1528 = vmatpush1.bf16.msra.mxu0 %v2861_v28  ;;  %1610 = vmatpush1.bf16.msra.mxu1 %v2863_v29 }
  0x6b   :  { %1529 = vmatprep.subr.bf16.mxu0 %v2870_v30  ;;  %1611 = vmatprep.subr.bf16.mxu1 %v2872_v34 }
  0x6e   :  { %1530 = vmatpush1.bf16.msra.mxu0 %v2869_v36  ;;  %1612 = vmatpush1.bf16.msra.mxu1 %v2871_v39 }
  0x6f   :  { %1531 = vmatprep.subr.bf16.mxu0 %v2878_v40  ;;  %1613 = vmatprep.subr.bf16.mxu1 %v2880_v43 }
  0x72   :  { %1532 = vmatpush1.bf16.msra.mxu0 %v2877_v44  ;;  %1614 = vmatpush1.bf16.msra.mxu1 %v2879_v45 }
  0x73   :  { %1533 = vmatprep.subr.bf16.mxu0 %v2886_v46  ;;  %1615 = vmatprep.subr.bf16.mxu1 %v2888_v50 }
  0x76   :  { %1534 = vmatpush1.bf16.msra.mxu0 %v2885_v53  ;;  %1616 = vmatpush1.bf16.msra.mxu1 %v2887_v56 }
  0x77   :  { %1632 = vmatprep.subr.bf16.mxu0 %v2666_v58  ;;  %1714 = vmatprep.subr.bf16.mxu1 %v2668_v60 }
  0x79   :  { %1542 = vmatmul.mubr.bf16.vlgmr.msra.gmra.mrb[0].mxu0 %v3592_v62  ;;  %1624 = vmatmul.mubr.bf16.vlgmr.msra.gmra.mrb[0].mxu1 %v3592_v62 }
  0x7a   :  { %1633 = vmatpush1.bf16.msra.mxu0 %v2665_v63  ;;  %1715 = vmatpush1.bf16.msra.mxu1 %v2667_v2 }
  0x7b   :  { %1634 = vmatprep.subr.bf16.mxu0 %v2674_v3  ;;  %1716 = vmatprep.subr.bf16.mxu1 %v2676_v6 }
  0x7c   :  { %1664 = vmatprep.mubr.bf16.mxu0 %v3287_v57  ;;  %1746 = vmatprep.mubr.bf16.mxu1 %v3287_v57 }
  0x7e   :  { %1635 = vmatpush1.bf16.msra.mxu0 %v2673_v7 }
  0x7f   :  { %10 = vsyncpa [#allocation3], 0  ;;  %1717 = vmatpush1.bf16.msra.mxu1 %v2675_v10  ;;  %1636 = vmatprep.subr.bf16.mxu0 %v2682_v11  ;;  %v2683_v17 = vcombine.low %v49_v4, %v53_v5  ;;  %v2690_v18 = vcombine.high %v56_v8, %v60_v9  ;;  %v2692_v19 = vcombine.high %v57_v13, %v61_v14  ;;  %v64_v20 = vld [vmem:[%s4185_s1 + $0x110] sm:$0xff]  ;;  %v65_v57 = vld [vmem:[%s4185_s1 + $0x118] sm:$0xff]  ;;  %vm1804_vm1 = vcmask 1043456   ;;  %s3163_s24 = smov [#allocation2]  }
  0x80   :  { %1718 = vmatprep.subr.bf16.mxu1 %v2684_v15  ;;  %v68_v21 = vld [vmem:[%s4185_s1 + $0x130] sm:$0xff]  ;;  %v69_v22 = vld [vmem:[%s4185_s1 + $0x138] sm:$0xff]  ;;  %v2689_v23 = vcombine.low %v56_v8, %v60_v9  ;;  %v2691_v25 = vcombine.low %v57_v13, %v61_v14  ;;  %vm1941_vm2 = vcmask 1040384   ;;  %vm2645_vm3 = vcmask 123904  }
  0x81   :  { %v2698_v26 = vcombine.high %v64_v20, %v68_v21  ;;  %v2700_v27 = vcombine.high %v65_v57, %v69_v22  ;;  %v72_v28 = vld [vmem:[%s4185_s1 + $0x150] sm:$0xff]  ;;  %v73_v30 = vld [vmem:[%s4185_s1 + $0x158] sm:$0xff]  ;;  %v2697_v32 = vcombine.low %v64_v20, %v68_v21  ;;  %v2699_v33 = vcombine.low %v65_v57, %v69_v22 }
  0x82   :  { %1637 = vmatpush1.bf16.msra.mxu0 %v2681_v16  ;;  %v76_v29 = vld [vmem:[%s4185_s1 + $0x170] sm:$0xff]  ;;  %v77_v31 = vld [vmem:[%s4185_s1 + $0x178] sm:$0xff] }
  0x83   :  { %1719 = vmatpush1.bf16.msra.mxu1 %v2683_v17  ;;  %1638 = vmatprep.subr.bf16.mxu0 %v2690_v18  ;;  %v2706_v34 = vcombine.high %v72_v28, %v76_v29  ;;  %v2708_v35 = vcombine.high %v73_v30, %v77_v31  ;;  %v80_v36 = vld [vmem:[%s4185_s1 + $0x190] sm:$0xff]  ;;  %v81_v38 = vld [vmem:[%s4185_s1 + $0x198] sm:$0xff]  ;;  %v2705_v40 = vcombine.low %v72_v28, %v76_v29 }
  0x84   :  { %1720 = vmatprep.subr.bf16.mxu1 %v2692_v19  ;;  %v84_v37 = vld [vmem:[%s4185_s1 + $0x1b0] sm:$0xff]  ;;  %v85_v39 = vld [vmem:[%s4185_s1 + $0x1b8] sm:$0xff]  ;;  %v2707_v41 = vcombine.low %v73_v30, %v77_v31 }
  0x85   :  { %v2714_v42 = vcombine.high %v80_v36, %v84_v37  ;;  %v2716_v43 = vcombine.high %v81_v38, %v85_v39  ;;  %v88_v44 = vld [vmem:[%s4185_s1 + $0x1d0] sm:$0xff]  ;;  %v89_v46 = vld [vmem:[%s4185_s1 + $0x1d8] sm:$0xff]  ;;  %v2713_v48 = vcombine.low %v80_v36, %v84_v37  ;;  %v2715_v49 = vcombine.low %v81_v38, %v85_v39 }
  0x86   :  { %1639 = vmatpush1.bf16.msra.mxu0 %v2689_v23  ;;  %v92_v45 = vld [vmem:[%s4185_s1 + $0x1f0] sm:$0xff]  ;;  %v93_v47 = vld [vmem:[%s4185_s1 + $0x1f8] sm:$0xff] }
  0x87   :  { %1721 = vmatpush1.bf16.msra.mxu1 %v2691_v25  ;;  %1640 = vmatprep.subr.bf16.mxu0 %v2698_v26  ;;  %v2722_v50 = vcombine.high %v88_v44, %v92_v45  ;;  %v2724_v51 = vcombine.high %v89_v46, %v93_v47  ;;  %v96_v52 = vld [vmem:[%s4185_s1 + $0x210] sm:$0xff]  ;;  %v97_v54 = vld [vmem:[%s4185_s1 + $0x218] sm:$0xff]  ;;  %v2721_v56 = vcombine.low %v88_v44, %v92_v45 }
  0x88   :  { %1722 = vmatprep.subr.bf16.mxu1 %v2700_v27  ;;  %v100_v53 = vld [vmem:[%s4185_s1 + $0x230] sm:$0xff]  ;;  %v101_v55 = vld [vmem:[%s4185_s1 + $0x238] sm:$0xff]  ;;  %v2723_v58 = vcombine.low %v89_v46, %v93_v47 }
  0x89   :  { %v2730_v59 = vcombine.high %v96_v52, %v100_v53  ;;  %v2732_v60 = vcombine.high %v97_v54, %v101_v55  ;;  %v104_v61 = vld [vmem:[%s4185_s1 + $0x250] sm:$0xff]  ;;  %v105_v0 = vld [vmem:[%s4185_s1 + $0x258] sm:$0xff]  ;;  %v2729_v2 = vcombine.low %v96_v52, %v100_v53  ;;  %v2731_v3 = vcombine.low %v97_v54, %v101_v55 }
  0x8a   :  { %1641 = vmatpush1.bf16.msra.mxu0 %v2697_v32  ;;  %v108_v63 = vld [vmem:[%s4185_s1 + $0x270] sm:$0xff]  ;;  %v109_v1 = vld [vmem:[%s4185_s1 + $0x278] sm:$0xff] }
  0x8b   :  { %1723 = vmatpush1.bf16.msra.mxu1 %v2699_v33  ;;  %1642 = vmatprep.subr.bf16.mxu0 %v2706_v34  ;;  %v2738_v4 = vcombine.high %v104_v61, %v108_v63  ;;  %v2740_v5 = vcombine.high %v105_v0, %v109_v1  ;;  %v112_v6 = vld [vmem:[%s4185_s1 + $0x290] sm:$0xff]  ;;  %v113_v8 = vld [vmem:[%s4185_s1 + $0x298] sm:$0xff]  ;;  %v2737_v10 = vcombine.low %v104_v61, %v108_v63 }
  0x8c   :  { %1724 = vmatprep.subr.bf16.mxu1 %v2708_v35  ;;  %v116_v7 = vld [vmem:[%s4185_s1 + $0x2b0] sm:$0xff]  ;;  %v117_v9 = vld [vmem:[%s4185_s1 + $0x2b8] sm:$0xff]  ;;  %v2739_v11 = vcombine.low %v105_v0, %v109_v1 }
  0x8d   :  { %v2746_v13 = vcombine.high %v112_v6, %v116_v7  ;;  %v2748_v14 = vcombine.high %v113_v8, %v117_v9  ;;  %v120_v15 = vld [vmem:[%s4185_s1 + $0x2d0] sm:$0xff]  ;;  %v121_v17 = vld [vmem:[%s4185_s1 + $0x2d8] sm:$0xff]  ;;  %v2745_v19 = vcombine.low %v112_v6, %v116_v7  ;;  %v2747_v20 = vcombine.low %v113_v8, %v117_v9 }
  0x8e   :  { %1643 = vmatpush1.bf16.msra.mxu0 %v2705_v40  ;;  %v124_v16 = vld [vmem:[%s4185_s1 + $0x2f0] sm:$0xff]  ;;  %v125_v18 = vld [vmem:[%s4185_s1 + $0x2f8] sm:$0xff] }
  0x8f   :  { %1725 = vmatpush1.bf16.msra.mxu1 %v2707_v41  ;;  %1644 = vmatprep.subr.bf16.mxu0 %v2714_v42  ;;  %v2754_v21 = vcombine.high %v120_v15, %v124_v16  ;;  %v2756_v57 = vcombine.high %v121_v17, %v125_v18  ;;  %v128_v22 = vld [vmem:[%s4185_s1 + $0x310] sm:$0xff]  ;;  %v129_v25 = vld [vmem:[%s4185_s1 + $0x318] sm:$0xff]  ;;  %v2753_v27 = vcombine.low %v120_v15, %v124_v16 }
  0x90   :  { %1726 = vmatprep.subr.bf16.mxu1 %v2716_v43  ;;  %v132_v23 = vld [vmem:[%s4185_s1 + $0x330] sm:$0xff]  ;;  %v133_v26 = vld [vmem:[%s4185_s1 + $0x338] sm:$0xff]  ;;  %v2755_v28 = vcombine.low %v121_v17, %v125_v18 }
  0x91   :  { %v2762_v29 = vcombine.high %v128_v22, %v132_v23  ;;  %v2764_v30 = vcombine.high %v129_v25, %v133_v26  ;;  %v136_v31 = vld [vmem:[%s4185_s1 + $0x350] sm:$0xff]  ;;  %v137_v33 = vld [vmem:[%s4185_s1 + $0x358] sm:$0xff]  ;;  %v2761_v35 = vcombine.low %v128_v22, %v132_v23  ;;  %v2763_v36 = vcombine.low %v129_v25, %v133_v26 }
  0x92   :  { %1645 = vmatpush1.bf16.msra.mxu0 %v2713_v48  ;;  %v140_v32 = vld [vmem:[%s4185_s1 + $0x370] sm:$0xff]  ;;  %v141_v34 = vld [vmem:[%s4185_s1 + $0x378] sm:$0xff] }
  0x93   :  { %1727 = vmatpush1.bf16.msra.mxu1 %v2715_v49  ;;  %1646 = vmatprep.subr.bf16.mxu0 %v2722_v50  ;;  %v2770_v37 = vcombine.high %v136_v31, %v140_v32  ;;  %v2772_v38 = vcombine.high %v137_v33, %v141_v34  ;;  %v144_v39 = vld [vmem:[%s4185_s1 + $0x390] sm:$0xff]  ;;  %v145_v41 = vld [vmem:[%s4185_s1 + $0x398] sm:$0xff]  ;;  %v2769_v43 = vcombine.low %v136_v31, %v140_v32 }
  0x94   :  { %1728 = vmatprep.subr.bf16.mxu1 %v2724_v51  ;;  %v148_v40 = vld [vmem:[%s4185_s1 + $0x3b0] sm:$0xff]  ;;  %v149_v42 = vld [vmem:[%s4185_s1 + $0x3b8] sm:$0xff]  ;;  %v2771_v44 = vcombine.low %v137_v33, %v141_v34 }
  0x95   :  { %v2778_v45 = vcombine.high %v144_v39, %v148_v40  ;;  %v2780_v46 = vcombine.high %v145_v41, %v149_v42  ;;  %v152_v47 = vld [vmem:[%s4185_s1 + $0x3d0] sm:$0xff]  ;;  %v153_v49 = vld [vmem:[%s4185_s1 + $0x3d8] sm:$0xff]  ;;  %v2777_v51 = vcombine.low %v144_v39, %v148_v40  ;;  %v2779_v52 = vcombine.low %v145_v41, %v149_v42 }
  0x96   :  { %1647 = vmatpush1.bf16.msra.mxu0 %v2721_v56  ;;  %v156_v48 = vld [vmem:[%s4185_s1 + $0x3f0] sm:$0xff]  ;;  %v157_v50 = vld [vmem:[%s4185_s1 + $0x3f8] sm:$0xff] }
  0x97   :  { %1729 = vmatpush1.bf16.msra.mxu1 %v2723_v58  ;;  %1648 = vmatprep.subr.bf16.mxu0 %v2730_v59  ;;  %v2786_v53 = vcombine.high %v152_v47, %v156_v48  ;;  %v2788_v54 = vcombine.high %v153_v49, %v157_v50  ;;  %v160_v55 = vld [vmem:[%s4185_s1 + $0x410] sm:$0xff]  ;;  %v161_v58 = vld [vmem:[%s4185_s1 + $0x418] sm:$0xff]  ;;  %v2787_v61 = vcombine.low %v153_v49, %v157_v50 }
  0x98   :  { %1730 = vmatprep.subr.bf16.mxu1 %v2732_v60  ;;  %v164_v56 = vld [vmem:[%s4185_s1 + $0x430] sm:$0xff]  ;;  %v165_v59 = vld [vmem:[%s4185_s1 + $0x438] sm:$0xff]  ;;  %v2785_v60 = vcombine.low %v152_v47, %v156_v48 }
  0x99   :  { %v2794_v63 = vcombine.high %v160_v55, %v164_v56  ;;  %v2796_v0 = vcombine.high %v161_v58, %v165_v59  ;;  %v168_v1 = vld [vmem:[%s4185_s1 + $0x450] sm:$0xff]  ;;  %v2795_v6 = vcombine.low %v161_v58, %v165_v59  ;;  %v201_v34 = vld [vmem:[%s4185_s1 + $0x558] sm:$0xff] }
  0x9a   :  { %1649 = vmatpush1.bf16.msra.mxu0 %v2729_v2  ;;  %v172_v2 = vld [vmem:[%s4185_s1 + $0x470] sm:$0xff]  ;;  %v209_v42 = vld [vmem:[%s4185_s1 + $0x598] sm:$0xff] }
  0x9b   :  { %1731 = vmatpush1.bf16.msra.mxu1 %v2731_v3  ;;  %1650 = vmatprep.subr.bf16.mxu0 %v2738_v4  ;;  %v169_v3 = vld [vmem:[%s4185_s1 + $0x458] sm:$0xff]  ;;  %v2802_v7 = vcombine.high %v168_v1, %v172_v2  ;;  %v176_v9 = vld [vmem:[%s4185_s1 + $0x490] sm:$0xff] }
  0x9c   :  { %1732 = vmatprep.subr.bf16.mxu1 %v2740_v5  ;;  %v173_v4 = vld [vmem:[%s4185_s1 + $0x478] sm:$0xff]  ;;  %v2793_v5 = vcombine.low %v160_v55, %v164_v56  ;;  %v184_v18 = vld [vmem:[%s4185_s1 + $0x4d0] sm:$0xff] }
  0x9d   :  { %v2804_v8 = vcombine.high %v169_v3, %v173_v4  ;;  %v2803_v15 = vcombine.low %v169_v3, %v173_v4  ;;  %v192_v25 = vld [vmem:[%s4185_s1 + $0x510] sm:$0xff]  ;;  %v217_v50 = vld [vmem:[%s4185_s1 + $0x5d8] sm:$0xff] }
  0x9e   :  { %1651 = vmatpush1.bf16.msra.mxu0 %v2737_v10  ;;  %v180_v10 = vld [vmem:[%s4185_s1 + $0x4b0] sm:$0xff]  ;;  %v225_v59 = vld [vmem:[%s4185_s1 + $0x618] sm:$0xff] }
  0x9f   :  { %1733 = vmatpush1.bf16.msra.mxu1 %v2739_v11  ;;  %1652 = vmatprep.subr.bf16.mxu0 %v2746_v13  ;;  %v177_v11 = vld [vmem:[%s4185_s1 + $0x498] sm:$0xff]  ;;  %v2810_v16 = vcombine.high %v176_v9, %v180_v10  ;;  %v196_v26 = vld [vmem:[%s4185_s1 + $0x530] sm:$0xff] }
  0xa0   :  { %1734 = vmatprep.subr.bf16.mxu1 %v2748_v14  ;;  %v181_v13 = vld [vmem:[%s4185_s1 + $0x4b8] sm:$0xff]  ;;  %v2801_v14 = vcombine.low %v168_v1, %v172_v2  ;;  %v200_v32 = vld [vmem:[%s4185_s1 + $0x550] sm:$0xff] }
  0xa1   :  { %v2812_v17 = vcombine.high %v177_v11, %v181_v13  ;;  %v204_v33 = vld [vmem:[%s4185_s1 + $0x570] sm:$0xff]  ;;  %v233_v4 = vld [vmem:[%s4185_s1 + $0x658] sm:$0xff] }
  0xa2   :  { %1653 = vmatpush1.bf16.msra.mxu0 %v2745_v19  ;;  %v188_v19 = vld [vmem:[%s4185_s1 + $0x4f0] sm:$0xff] }
  0xa3   :  { %1735 = vmatpush1.bf16.msra.mxu1 %v2747_v20  ;;  %1654 = vmatprep.subr.bf16.mxu0 %v2754_v21  ;;  %v189_v20 = vld [vmem:[%s4185_s1 + $0x4f8] sm:$0xff]  ;;  %v2809_v21 = vcombine.low %v176_v9, %v180_v10  ;;  %v2818_v22 = vcombine.high %v184_v18, %v188_v19  ;;  %v208_v40 = vld [vmem:[%s4185_s1 + $0x590] sm:$0xff] }
  0xa4   :  { %1736 = vmatprep.subr.bf16.mxu1 %v2756_v57  ;;  %v2811_v57 = vcombine.low %v177_v11, %v181_v13  ;;  %v212_v41 = vld [vmem:[%s4185_s1 + $0x5b0] sm:$0xff]  ;;  %v241_v13 = vld [vmem:[%s4185_s1 + $0x698] sm:$0xff] }
  0xa5   :  { %v216_v48 = vld [vmem:[%s4185_s1 + $0x5d0] sm:$0xff] }
  0xa6   :  { %1655 = vmatpush1.bf16.msra.mxu0 %v2753_v27  ;;  %v197_v27 = vld [vmem:[%s4185_s1 + $0x538] sm:$0xff]  ;;  %v220_v49 = vld [vmem:[%s4185_s1 + $0x5f0] sm:$0xff] }
  0xa7   :  { %1737 = vmatpush1.bf16.msra.mxu1 %v2755_v28  ;;  %1656 = vmatprep.subr.bf16.mxu0 %v2762_v29  ;;  %v2817_v28 = vcombine.low %v184_v18, %v188_v19  ;;  %v224_v56 = vld [vmem:[%s4185_s1 + $0x610] sm:$0xff] }
  0xa8   :  { %1738 = vmatprep.subr.bf16.mxu1 %v2764_v30  ;;  %v2826_v30 = vcombine.high %v192_v25, %v196_v26  ;;  %v228_v58 = vld [vmem:[%s4185_s1 + $0x630] sm:$0xff] }
  0xa9   :  { %v232_v2 = vld [vmem:[%s4185_s1 + $0x650] sm:$0xff] }
  0xaa   :  { %1657 = vmatpush1.bf16.msra.mxu0 %v2761_v35  ;;  %v205_v35 = vld [vmem:[%s4185_s1 + $0x578] sm:$0xff]  ;;  %v236_v3 = vld [vmem:[%s4185_s1 + $0x670] sm:$0xff] }
  0xab   :  { %1739 = vmatpush1.bf16.msra.mxu1 %v2763_v36  ;;  %1658 = vmatprep.subr.bf16.mxu0 %v2770_v37  ;;  %v2825_v36 = vcombine.low %v192_v25, %v196_v26  ;;  %v2836_v39 = vcombine.high %v201_v34, %v205_v35  ;;  %v240_v10 = vld [vmem:[%s4185_s1 + $0x690] sm:$0xff] }
  0xac   :  { %1740 = vmatprep.subr.bf16.mxu1 %v2772_v38  ;;  %v2834_v38 = vcombine.high %v200_v32, %v204_v33  ;;  %v244_v11 = vld [vmem:[%s4185_s1 + $0x6b0] sm:$0xff] }
  0xad   :  { %v248_v19 = vld [vmem:[%s4185_s1 + $0x6d0] sm:$0xff] }
  0xae   :  { %1659 = vmatpush1.bf16.msra.mxu0 %v2769_v43  ;;  %v213_v43 = vld [vmem:[%s4185_s1 + $0x5b8] sm:$0xff]  ;;  %v256_v26 = vld [vmem:[%s4185_s1 + $0x710] sm:$0xff] }
  0xaf   :  { %1741 = vmatpush1.bf16.msra.mxu1 %v2771_v44  ;;  %1660 = vmatprep.subr.bf16.mxu0 %v2778_v45  ;;  %v2833_v44 = vcombine.low %v200_v32, %v204_v33  ;;  %v2835_v45 = vcombine.low %v201_v34, %v205_v35  ;;  %v2844_v47 = vcombine.high %v209_v42, %v213_v43  ;;  %v3075_v35 = vld [vmem:[%s4187_s3 + $0x40] sm:$0xff]  }
  0xb0   :  { %1742 = vmatprep.subr.bf16.mxu1 %v2780_v46  ;;  %v2842_v46 = vcombine.high %v208_v40, %v212_v41 }
  0xb2   :  { %1661 = vmatpush1.bf16.msra.mxu0 %v2777_v51  ;;  %v221_v51 = vld [vmem:[%s4185_s1 + $0x5f8] sm:$0xff] }
  0xb3   :  { %1743 = vmatpush1.bf16.msra.mxu1 %v2779_v52  ;;  %1662 = vmatprep.subr.bf16.mxu0 %v2786_v53  ;;  %v2841_v52 = vcombine.low %v208_v40, %v212_v41  ;;  %v2843_v53 = vcombine.low %v209_v42, %v213_v43  ;;  %v2852_v55 = vcombine.high %v217_v50, %v221_v51  ;;  %v3080_v40 = vld [vmem:[%s4187_s3 + $0xc8] sm:$0xff]   ;;  %v3083_v43 = vld [vmem:[%s4187_s3 + $0x50] sm:$0xff]  }
  0xb4   :  { %1744 = vmatprep.subr.bf16.mxu1 %v2788_v54  ;;  %v2850_v54 = vcombine.high %v216_v48, %v220_v49  ;;  %v3081_v41 = vld [vmem:[%s4187_s3 + $0x8] sm:$0xff]  }
  0xb5   :  { %v3082_v42 = vld [vmem:[%s4187_s3 + $0x88] sm:$0xff]  }
  0xb6   :  { %1663 = vmatpush1.bf16.msra.mxu0 %v2785_v60  ;;  %v229_v60 = vld [vmem:[%s4185_s1 + $0x638] sm:$0xff] }
  0xb7   :  { %1745 = vmatpush1.bf16.msra.mxu1 %v2787_v61  ;;  %1673 = vmatprep.subr.bf16.mxu0 %v2794_v63  ;;  %v2849_v61 = vcombine.low %v216_v48, %v220_v49  ;;  %v2851_v63 = vcombine.low %v217_v50, %v221_v51  ;;  %v2860_v1 = vcombine.high %v225_v59, %v229_v60  ;;  %v3089_v48 = vld [vmem:[%s4187_s3 + $0x18] sm:$0xff]   ;;  %v3091_v50 = vld [vmem:[%s4187_s3 + $0x60] sm:$0xff]  }
  0xb8   :  { %1755 = vmatprep.subr.bf16.mxu1 %v2796_v0  ;;  %v2858_v0 = vcombine.high %v224_v56, %v228_v58  ;;  %v3090_v49 = vld [vmem:[%s4187_s3 + $0x98] sm:$0xff]   ;;  %v3092_v51 = vld [vmem:[%s4187_s3 + $0xe0] sm:$0xff]  }
  0xb9   :  { %1665 = vmatmul.mubr.bf16.vlgmr.msra.gmra.mrb[4].mxu0 %v3414_v12 }
  0xba   :  { %1674 = vmatpush1.bf16.msra.mxu0 %v2793_v5  ;;  %1747 = vmatmul.mubr.bf16.vlgmr.msra.gmra.mrb[4].mxu1 %v3414_v12  ;;  %v185_v12 = vld [vmem:[%s4185_s1 + $0x4d8] sm:$0xff] }
  0xbb   :  { %1756 = vmatpush1.bf16.msra.mxu1 %v2795_v6  ;;  %1675 = vmatprep.subr.bf16.mxu0 %v2802_v7  ;;  %v2820_v23 = vcombine.high %v185_v12, %v189_v20  ;;  %v2819_v29 = vcombine.low %v185_v12, %v189_v20  ;;  %v237_v5 = vld [vmem:[%s4185_s1 + $0x678] sm:$0xff]  ;;  %v2857_v6 = vcombine.low %v224_v56, %v228_v58  ;;  %v252_v12 = vld [vmem:[%s4185_s1 + $0x6f0] sm:$0xff]  ;;  %v3097_v56 = vld [vmem:[%s4187_s3 + $0x28] sm:$0xff]  }
  0xbc   :  { %1757 = vmatprep.subr.bf16.mxu1 %v2804_v8  ;;  %2895 = vmatprep.mubr.msk.bf16.mxu0 %vm1464_vm0, %v3437_v24  ;;  %v2859_v7 = vcombine.low %v225_v59, %v229_v60  ;;  %v2866_v8 = vcombine.high %v232_v2, %v236_v3  ;;  %v2868_v9 = vcombine.high %v233_v4, %v237_v5  ;;  %v249_v20 = vld [vmem:[%s4185_s1 + $0x6d8] sm:$0xff]  ;;  %v3098_v58 = vld [vmem:[%s4187_s3 + $0xa8] sm:$0xff]   ;;  %v3099_v59 = vld [vmem:[%s4187_s3 + $0x70] sm:$0xff]  }
  0xbd   :  { %2896 = vmatprep.mubr.msk.bf16.mxu1 %vm1464_vm0, %v3437_v24  ;;  %v193_v24 = vld [vmem:[%s4185_s1 + $0x518] sm:$0xff]  ;;  %v3100_v60 = vld [vmem:[%s4187_s3 + $0xf0] sm:$0xff]  }
  0xbe   :  { %1676 = vmatpush1.bf16.msra.mxu0 %v2801_v14  ;;  %v2828_v31 = vcombine.high %v193_v24, %v197_v27  ;;  %v2827_v37 = vcombine.low %v193_v24, %v197_v27  ;;  %v245_v14 = vld [vmem:[%s4185_s1 + $0x6b8] sm:$0xff]  ;;  %v260_v24 = vld [vmem:[%s4185_s1 + $0x730] sm:$0xff] }
  0xbf   :  { %1758 = vmatpush1.bf16.msra.mxu1 %v2803_v15  ;;  %1677 = vmatprep.subr.bf16.mxu0 %v2810_v16  ;;  %v2865_v15 = vcombine.low %v232_v2, %v236_v3  ;;  %v2867_v16 = vcombine.low %v233_v4, %v237_v5  ;;  %v2876_v18 = vcombine.high %v241_v13, %v245_v14  ;;  %v257_v27 = vld [vmem:[%s4185_s1 + $0x718] sm:$0xff]  ;;  %v3107_v4 = vld [vmem:[%s4187_s3 + $0x140] sm:$0xff]  }
  0xc0   :  { %1759 = vmatprep.subr.bf16.mxu1 %v2812_v17  ;;  %v2874_v17 = vcombine.high %v240_v10, %v244_v11  ;;  %v2889_v33 = vcombine.low %v256_v26, %v260_v24  ;;  %v3105_v2 = vld [vmem:[%s4187_s3 + $0x38] sm:$0xff]   ;;  %v3108_v5 = vld [vmem:[%s4187_s3 + $0x1c0] sm:$0xff]  }
  0xc1   :  { %v3106_v3 = vld [vmem:[%s4187_s3 + $0xb8] sm:$0xff]  }
  0xc2   :  { %1678 = vmatpush1.bf16.msra.mxu0 %v2809_v21  ;;  %v253_v21 = vld [vmem:[%s4185_s1 + $0x6f8] sm:$0xff] }
  0xc3   :  { %1760 = vmatpush1.bf16.msra.mxu1 %v2811_v57  ;;  %1679 = vmatprep.subr.bf16.mxu0 %v2818_v22  ;;  %v2873_v57 = vcombine.low %v240_v10, %v244_v11  ;;  %v2875_v22 = vcombine.low %v241_v13, %v245_v14  ;;  %v2884_v25 = vcombine.high %v249_v20, %v253_v21 }
  0xc4   :  { %1761 = vmatprep.subr.bf16.mxu1 %v2820_v23  ;;  %v2882_v23 = vcombine.high %v248_v19, %v252_v12 }
  0xc6   :  { %1680 = vmatpush1.bf16.msra.mxu0 %v2817_v28  ;;  %v261_v28 = vld [vmem:[%s4185_s1 + $0x738] sm:$0xff] }
  0xc7   :  { %1762 = vmatpush1.bf16.msra.mxu1 %v2819_v29  ;;  %1681 = vmatprep.subr.bf16.mxu0 %v2826_v30  ;;  %v2881_v29 = vcombine.low %v248_v19, %v252_v12  ;;  %v2883_v30 = vcombine.low %v249_v20, %v253_v21  ;;  %v2892_v32 = vcombine.high %v257_v27, %v261_v28 }
  0xc8   :  { %1763 = vmatprep.subr.bf16.mxu1 %v2828_v31  ;;  %v2890_v31 = vcombine.high %v256_v26, %v260_v24  ;;  %v2891_v34 = vcombine.low %v257_v27, %v261_v28 }
  0xca   :  { %1682 = vmatpush1.bf16.msra.mxu0 %v2825_v36  ;;  %v3076_v36 = vld [vmem:[%s4187_s3 + $0xc0] sm:$0xff]  }
  0xcb   :  { %1764 = vmatpush1.bf16.msra.mxu1 %v2827_v37  ;;  %1683 = vmatprep.subr.bf16.mxu0 %v2834_v38  ;;  %v3077_v37 = vld [vmem:[%s4187_s3] sm:$0xff]  }
  0xcc   :  { %1765 = vmatprep.subr.bf16.mxu1 %v2836_v39  ;;  %v3078_v38 = vld [vmem:[%s4187_s3 + $0x80] sm:$0xff]   ;;  %v3079_v39 = vld [vmem:[%s4187_s3 + $0x48] sm:$0xff]  }
  0xce   :  { %1684 = vmatpush1.bf16.msra.mxu0 %v2833_v44  ;;  %v3085_v44 = vld [vmem:[%s4187_s3 + $0x10] sm:$0xff]  }
  0xcf   :  { %1766 = vmatpush1.bf16.msra.mxu1 %v2835_v45  ;;  %1685 = vmatprep.subr.bf16.mxu0 %v2842_v46  ;;  %v3086_v45 = vld [vmem:[%s4187_s3 + $0x90] sm:$0xff]   ;;  %v3087_v46 = vld [vmem:[%s4187_s3 + $0x58] sm:$0xff]  }
  0xd0   :  { %1767 = vmatprep.subr.bf16.mxu1 %v2844_v47  ;;  %v3088_v47 = vld [vmem:[%s4187_s3 + $0xd8] sm:$0xff]  }
  0xd2   :  { %1686 = vmatpush1.bf16.msra.mxu0 %v2841_v52  ;;  %v3093_v52 = vld [vmem:[%s4187_s3 + $0x20] sm:$0xff]  }
  0xd3   :  { %1768 = vmatpush1.bf16.msra.mxu1 %v2843_v53  ;;  %1687 = vmatprep.subr.bf16.mxu0 %v2850_v54  ;;  %v3094_v53 = vld [vmem:[%s4187_s3 + $0xa0] sm:$0xff]   ;;  %v3095_v54 = vld [vmem:[%s4187_s3 + $0x68] sm:$0xff]  }
  0xd4   :  { %1769 = vmatprep.subr.bf16.mxu1 %v2852_v55  ;;  %v3096_v55 = vld [vmem:[%s4187_s3 + $0xe8] sm:$0xff]  }
  0xd6   :  { %1688 = vmatpush1.bf16.msra.mxu0 %v2849_v61  ;;  %v3101_v61 = vld [vmem:[%s4187_s3 + $0x30] sm:$0xff]  }
  0xd7   :  { %1770 = vmatpush1.bf16.msra.mxu1 %v2851_v63  ;;  %1689 = vmatprep.subr.bf16.mxu0 %v2858_v0  ;;  %v3102_v63 = vld [vmem:[%s4187_s3 + $0xb0] sm:$0xff]   ;;  %v3103_v0 = vld [vmem:[%s4187_s3 + $0x78] sm:$0xff]  }
  0xd8   :  { %1771 = vmatprep.subr.bf16.mxu1 %v2860_v1  ;;  %v3104_v1 = vld [vmem:[%s4187_s3 + $0xf8] sm:$0xff]  }
  0xda   :  { %1690 = vmatpush1.bf16.msra.mxu0 %v2857_v6  ;;  %v264_v6 = vlaneseq }
  0xdb   :  { %1772 = vmatpush1.bf16.msra.mxu1 %v2859_v7  ;;  %1691 = vmatprep.subr.bf16.mxu0 %v2866_v8 }
  0xdc   :  { %1773 = vmatprep.subr.bf16.mxu1 %v2868_v9  ;;  %v4032_v7 = vshrl.u32 %v264_v6, 7  ;;  %v4038_v9 = vld [vmem:[%s4186_s2] sm:$0xff] }
  0xde   :  { %1692 = vmatpush1.bf16.msra.mxu0 %v2865_v15  ;;  %v266_v8 = vsub.s32 0, %v4032_v7  ;;  %v274_v10 = vsub.s32 2, %v4032_v7  ;;  %v270_v11 = vsub.s32 1, %v4032_v7  ;;  %v278_v13 = vsub.s32 3, %v4032_v7 }
  0xdf   :  { %1774 = vmatpush1.bf16.msra.mxu1 %v2867_v16  ;;  %1693 = vmatprep.subr.bf16.mxu0 %v2874_v17 }
  0xe0   :  { %1775 = vmatprep.subr.bf16.mxu1 %v2876_v18  ;;  %v267_v14 = vrot.slane %v4038_v9, %v266_v8  ;;  %v275_v15 = vrot.slane %v4038_v9, %v274_v10  ;;  %v271_v16 = vrot.slane %v4038_v9, %v270_v11  ;;  %v279_v17 = vrot.slane %v4038_v9, %v278_v13 }
  0xe2   :  { %1694 = vmatpush1.bf16.msra.mxu0 %v2873_v57 }
  0xe3   :  { %1776 = vmatpush1.bf16.msra.mxu1 %v2875_v22  ;;  %1695 = vmatprep.subr.bf16.mxu0 %v2882_v23 }
  0xe4   :  { %1777 = vmatprep.subr.bf16.mxu1 %v2884_v25 }
  0xe6   :  { %1696 = vmatpush1.bf16.msra.mxu0 %v2881_v29 }
  0xe7   :  { %1778 = vmatpush1.bf16.msra.mxu1 %v2883_v30  ;;  %1697 = vmatprep.subr.bf16.mxu0 %v2890_v31 }
  0xe8   :  { %1779 = vmatprep.subr.bf16.mxu1 %v2892_v32 }
  0xea   :  { %1698 = vmatpush1.bf16.msra.mxu0 %v2889_v33 }
  0xeb   :  { %1780 = vmatpush1.bf16.msra.mxu1 %v2891_v34  ;;  %2962 = vmatprep.subr.bf16.mxu0 %v3075_v35 }
  0xec   :  { %2984 = vmatprep.subr.bf16.mxu1 %v3076_v36 }
  0xed   :  { %1706 = vmatmul.mubr.bf16.vlgmr.msra.gmra.mrb[4].mxu0 %v3592_v62 }
  0xee   :  { %1788 = vmatmul.mubr.bf16.vlgmr.msra.gmra.mrb[4].mxu1 %v3592_v62  ;;  %2963 = vmatpush3.bf16.msra.mxu0 %v3077_v37  ;;  %v3084_v62 = vld [vmem:[%s4187_s3 + $0xd0] sm:$0xff]  }
  0xef   :  { %2985 = vmatpush3.bf16.msra.mxu1 %v3078_v38  ;;  %2964 = vmatprep.subr.bf16.mxu0 %v3079_v39 }
  0xf0   :  { %2986 = vmatprep.subr.bf16.mxu1 %v3080_v40 }
  0xf2   :  { %2965 = vmatpush3.bf16.msra.mxu0 %v3081_v41 }
  0xf3   :  { %2987 = vmatpush3.bf16.msra.mxu1 %v3082_v42  ;;  %2966 = vmatprep.subr.bf16.mxu0 %v3083_v43 }
  0xf4   :  { %2988 = vmatprep.subr.bf16.mxu1 %v3084_v62 }
  0xf6   :  { %2967 = vmatpush3.bf16.msra.mxu0 %v3085_v44 }
  0xf7   :  { %2989 = vmatpush3.bf16.msra.mxu1 %v3086_v45  ;;  %2968 = vmatprep.subr.bf16.mxu0 %v3087_v46 }
  0xf8   :  { %2990 = vmatprep.subr.bf16.mxu1 %v3088_v47 }
  0xfa   :  { %2969 = vmatpush3.bf16.msra.mxu0 %v3089_v48 }
  0xfb   :  { %2991 = vmatpush3.bf16.msra.mxu1 %v3090_v49  ;;  %2970 = vmatprep.subr.bf16.mxu0 %v3091_v50 }
  0xfc   :  { %2992 = vmatprep.subr.bf16.mxu1 %v3092_v51 }
  0xfe   :  { %2971 = vmatpush3.bf16.msra.mxu0 %v3093_v52 }
  0xff   :  { %2993 = vmatpush3.bf16.msra.mxu1 %v3094_v53  ;;  %2972 = vmatprep.subr.bf16.mxu0 %v3095_v54 }
 0x100   :  { %2994 = vmatprep.subr.bf16.mxu1 %v3096_v55 }
 0x102   :  { %2973 = vmatpush3.bf16.msra.mxu0 %v3097_v56 }
 0x103   :  { %2995 = vmatpush3.bf16.msra.mxu1 %v3098_v58  ;;  %2974 = vmatprep.subr.bf16.mxu0 %v3099_v59 }
 0x104   :  { %2996 = vmatprep.subr.bf16.mxu1 %v3100_v60 }
 0x106   :  { %2975 = vmatpush3.bf16.msra.mxu0 %v3101_v61 }
 0x107   :  { %2997 = vmatpush3.bf16.msra.mxu1 %v3102_v63  ;;  %2976 = vmatprep.subr.bf16.mxu0 %v3103_v0 }
 0x108   :  { %2998 = vmatprep.subr.bf16.mxu1 %v3104_v1 }
 0x10a   :  { %2977 = vmatpush3.bf16.msra.mxu0 %v3105_v2 }
 0x10b   :  { %2999 = vmatpush3.bf16.msra.mxu1 %v3106_v3  ;;  %3006 = vmatprep.subr.bf16.mxu0 %v3107_v4 }
 0x10c   :  { %3028 = vmatprep.subr.bf16.mxu1 %v3108_v5 }
 0x14c   :  { %v1543_v18 = vpop.f32.mrb[0].mxu0  ;;  %v1625_v12 = vpop.f32.mrb[0].mxu1 }
 0x14d   :  { %v3050_v19 = vadd.f32 %v1543_v18, %v267_v14  ;;  %v1545_v20 = vpop.f32.mrb[1].mxu0  ;;  %v3052_v21 = vadd.f32 %v1625_v12, %v275_v15  ;;  %v1627_v22 = vpop.f32.mrb[1].mxu1 }
 0x14e   :  { %v3051_v57 = vadd.f32 %v1545_v20, %v271_v16  ;;  %v1547_v23 = vpop.f32.mrb[2].mxu0  ;;  %v3053_v26 = vadd.f32 %v1627_v22, %v279_v17  ;;  %v1629_v24 = vpop.f32.mrb[2].mxu1 }
 0x14f   :  { %v1796_v25 = vmax.f32 %v3050_v19, 0.0  ;;  %v1548_v27 = vpop.f32.mrb[3].mxu0  ;;  %v1798_v28 = vmax.f32 %v3052_v21, 0.0  ;;  %v1630_v30 = vpop.f32.mrb[3].mxu1 }
 0x150   :  { %v1797_v29 = vmax.f32 %v3051_v57, 0.0  ;;  %v1799_v33 = vmax.f32 %v3053_v26, 0.0 }
 0x151   :  { %v1805_v31 = vsel %vm1804_vm1, %v1796_v25, 0.0  ;;  %v1869_v32 = vrot.slane %v1796_v25, 4  ;;  %v1819_v35 = vsel %vm1804_vm1, %v1798_v28, 0.0  ;;  %v1871_v36 = vrot.slane %v1798_v28, 4 }
 0x152   :  { %v1806_v34 = vrot.slane %v1805_v31, 4  ;;  %v1812_v37 = vsel %vm1804_vm1, %v1797_v29, 0.0  ;;  %v1820_v39 = vrot.slane %v1819_v35, 4  ;;  %v1870_v41 = vrot.slane %v1797_v29, 4 }
 0x153   :  { %v1885_v38 = vsel %vm1804_vm1, %v1869_v32, 0.0  ;;  %v1813_v40 = vrot.slane %v1812_v37, 4  ;;  %v1899_v62 = vsel %vm1804_vm1, %v1871_v36, 0.0  ;;  %v1826_v44 = vsel %vm1804_vm1, %v1799_v33, 0.0  ;;  %v3109_v36 = vld [vmem:[%s4187_s3 + $0x100] sm:$0xff]  }
 0x154   :  { %v1807_v42 = vadd.f32 %v1806_v34, %v1805_v31  ;;  %v1886_v43 = vrot.slane %v1885_v38, 4  ;;  %v1821_v45 = vadd.f32 %v1820_v39, %v1819_v35  ;;  %v1900_v46 = vrot.slane %v1899_v62, 4 }
 0x155   :  { %v1814_v47 = vadd.f32 %v1813_v40, %v1812_v37  ;;  %v1892_v48 = vsel %vm1804_vm1, %v1870_v41, 0.0  ;;  %v1827_v52 = vrot.slane %v1826_v44, 4  ;;  %v1872_v56 = vrot.slane %v1799_v33, 4 }
 0x156   :  { %v1808_v49 = vrot.slane %v1807_v42, 2  ;;  %v1887_v50 = vadd.f32 %v1886_v43, %v1885_v38  ;;  %v1893_v51 = vrot.slane %v1892_v48, 4  ;;  %v1822_v53 = vrot.slane %v1821_v45, 2  ;;  %v3111_v38 = vld [vmem:[%s4187_s3 + $0x148] sm:$0xff]  }
 0x157   :  { %v1901_v54 = vadd.f32 %v1900_v46, %v1899_v62  ;;  %v1815_v55 = vrot.slane %v1814_v47, 2  ;;  %v1828_v61 = vadd.f32 %v1827_v52, %v1826_v44  ;;  %v1906_v2 = vsel %vm1804_vm1, %v1872_v56, 0.0  ;;  %v3110_v62 = vld [vmem:[%s4187_s3 + $0x180] sm:$0xff]   ;;  %v3115_v44 = vld [vmem:[%s4187_s3 + $0x150] sm:$0xff]   ;;  %v3112_v46 = vld [vmem:[%s4187_s3 + $0x1c8] sm:$0xff]  }
 0x158   :  { %v1809_v58 = vadd.f32 %v1808_v49, %v1807_v42  ;;  %v1888_v59 = vrot.slane %v1887_v50, 2  ;;  %v1894_v60 = vadd.f32 %v1893_v51, %v1892_v48  ;;  %v1823_v63 = vadd.f32 %v1822_v53, %v1821_v45  ;;  %v3113_v42 = vld [vmem:[%s4187_s3 + $0x108] sm:$0xff]   ;;  %v3119_v49 = vld [vmem:[%s4187_s3 + $0x158] sm:$0xff]   ;;  %v3118_v52 = vld [vmem:[%s4187_s3 + $0x190] sm:$0xff]  }
 0x159   :  { %v1902_v0 = vrot.slane %v1901_v54, 2  ;;  %v1816_v1 = vadd.f32 %v1815_v55, %v1814_v47  ;;  %v1829_v6 = vrot.slane %v1828_v61, 2  ;;  %v1907_v10 = vrot.slane %v1906_v2, 4  ;;  %v3117_v47 = vld [vmem:[%s4187_s3 + $0x110] sm:$0xff]   ;;  %v3114_v48 = vld [vmem:[%s4187_s3 + $0x188] sm:$0xff]   ;;  %v3121_v51 = vld [vmem:[%s4187_s3 + $0x118] sm:$0xff]  }
 0x15a   :  { %v1810_v3 = vrot.slane %v1809_v58, 1  ;;  %v1889_v4 = vadd.f32 %v1888_v59, %v1887_v50  ;;  %v1895_v5 = vrot.slane %v1894_v60, 2  ;;  %v1824_v12 = vrot.slane %v1823_v63, 1  ;;  %v3116_v50 = vld [vmem:[%s4187_s3 + $0x1d0] sm:$0xff]   ;;  %v3123_v53 = vld [vmem:[%s4187_s3 + $0x160] sm:$0xff]   ;;  %v3122_v56 = vld [vmem:[%s4187_s3 + $0x198] sm:$0xff]  }
 0x15b   :  { %v1903_v8 = vadd.f32 %v1902_v0, %v1901_v54  ;;  %v1817_v13 = vrot.slane %v1816_v1, 1  ;;  %v1830_v16 = vadd.f32 %v1829_v6, %v1828_v61  ;;  %v1908_v17 = vadd.f32 %v1907_v10, %v1906_v2  ;;  %v3120_v54 = vld [vmem:[%s4187_s3 + $0x1d8] sm:$0xff]   ;;  %v3125_v55 = vld [vmem:[%s4187_s3 + $0x120] sm:$0xff]   ;;  %v3128_v0 = vld [vmem:[%s4187_s3 + $0x1e8] sm:$0xff]  }
 0x15c   :  { %v1890_v11 = vrot.slane %v1889_v4, 1  ;;  %v1896_v14 = vadd.f32 %v1895_v5, %v1894_v60  ;;  %v1811_v18 = vadd.f32 %v1810_v3, %v1809_v58  ;;  %v1825_v27 = vadd.f32 %v1824_v12, %v1823_v63  ;;  %v3127_v58 = vld [vmem:[%s4187_s3 + $0x168] sm:$0xff]   ;;  %v3124_v59 = vld [vmem:[%s4187_s3 + $0x1e0] sm:$0xff]   ;;  %v3131_v63 = vld [vmem:[%s4187_s3 + $0x170] sm:$0xff]  }
 0x15d   :  { %v1904_v15 = vrot.slane %v1903_v8, 1  ;;  %v1909_v21 = vrot.slane %v1908_v17, 2  ;;  %v1818_v22 = vadd.f32 %v1817_v13, %v1816_v1  ;;  %v1831_v26 = vrot.slane %v1830_v16, 1  ;;  %v3129_v60 = vld [vmem:[%s4187_s3 + $0x128] sm:$0xff]   ;;  %v3126_v61 = vld [vmem:[%s4187_s3 + $0x1a0] sm:$0xff]   ;;  %v3133_v1 = vld [vmem:[%s4187_s3 + $0x130] sm:$0xff]  }
 0x15e   :  { %v1891_v19 = vadd.f32 %v1890_v11, %v1889_v4  ;;  %v1897_v20 = vrot.slane %v1896_v14, 1  ;;  %v3130_v2 = vld [vmem:[%s4187_s3 + $0x1a8] sm:$0xff]   ;;  %v3135_v3 = vld [vmem:[%s4187_s3 + $0x178] sm:$0xff]   ;;  %v3132_v4 = vld [vmem:[%s4187_s3 + $0x1f0] sm:$0xff]   ;;  %v282_v11 = vsub.s32 4, %v4032_v7  ;;  %v290_v13 = vsub.s32 6, %v4032_v7 }
 0x15f   :  { %v1905_v57 = vadd.f32 %v1904_v15, %v1903_v8  ;;  %v1910_v24 = vadd.f32 %v1909_v21, %v1908_v17  ;;  %v1832_v33 = vadd.f32 %v1831_v26, %v1830_v16  ;;  %v3137_v5 = vld [vmem:[%s4187_s3 + $0x138] sm:$0xff]   ;;  %v3134_v6 = vld [vmem:[%s4187_s3 + $0x1b0] sm:$0xff]   ;;  %v294_v15 = vsub.s32 7, %v4032_v7 }
 0x160   :  { %v1898_v23 = vadd.f32 %v1897_v20, %v1896_v14  ;;  %v1942_v25 = vsel %vm1941_vm2, %v1811_v18, %v1891_v19  ;;  %v3136_v8 = vld [vmem:[%s4187_s3 + $0x1f8] sm:$0xff]   ;;  %v286_v14 = vsub.s32 5, %v4032_v7  ;;  %v283_v16 = vrot.slane %v4038_v9, %v282_v11 }
 0x161   :  { %v1950_v29 = vmul.f32 0.25, %v1942_v25  ;;  %v1911_v30 = vrot.slane %v1910_v24, 1  ;;  %v1944_v32 = vsel %vm1941_vm2, %v1825_v27, %v1905_v57  ;;  %v3138_v10 = vld [vmem:[%s4187_s3 + $0x1b8] sm:$0xff]   ;;  %v291_v17 = vrot.slane %v4038_v9, %v290_v13 }
 0x162   :  { %v1943_v28 = vsel %vm1941_vm2, %v1818_v22, %v1898_v23  ;;  %v1952_v40 = vmul.f32 0.25, %v1944_v32  ;;  %v287_v18 = vrot.slane %v4038_v9, %v286_v14  ;;  %v295_v19 = vrot.slane %v4038_v9, %v294_v15 }
 0x163   :  { %v1951_v31 = vmul.f32 0.25, %v1943_v28  ;;  %v1912_v35 = vadd.f32 %v1911_v30, %v1910_v24  ;;  %v1958_v37 = vpack.c.bf16 %v1950_v29, %v1950_v29 }
 0x164   :  { %v1960_v45 = vpack.c.bf16 %v1952_v40, %v1952_v40 }
 0x165   :  { %v1959_v34 = vpack.c.bf16 %v1951_v31, %v1951_v31  ;;  %v1945_v39 = vsel %vm1941_vm2, %v1832_v33, %v1912_v35 }
 0x166   :  { %v1953_v41 = vmul.f32 0.25, %v1945_v39 }
 0x167   :  { %2517 = vmatprep.mubr.bf16.mxu0 %v1959_v34 }
 0x168   :  { %2518 = vmatmul.mubr.bf16.vlgmr.msra.gmra.mrb[8].mxu0 %v1958_v37  ;;  %v1961_v43 = vpack.c.bf16 %v1953_v41, %v1953_v41 }
 0x169   :  { %3007 = vmatpush3.bf16.msra.mxu0 %v3109_v36 }
 0x16a   :  { %3008 = vmatprep.subr.bf16.mxu0 %v3111_v38  ;;  %2557 = vmatprep.mubr.bf16.mxu1 %v1961_v43 }
 0x16b   :  { %2558 = vmatmul.mubr.bf16.vlgmr.msra.gmra.mrb[8].mxu1 %v1960_v45 }
 0x16c   :  { %3029 = vmatpush3.bf16.msra.mxu1 %v3110_v62 }
 0x16d   :  { %3009 = vmatpush3.bf16.msra.mxu0 %v3113_v42  ;;  %3030 = vmatprep.subr.bf16.mxu1 %v3112_v46 }
 0x16e   :  { %3010 = vmatprep.subr.bf16.mxu0 %v3115_v44 }
 0x170   :  { %3031 = vmatpush3.bf16.msra.mxu1 %v3114_v48 }
 0x171   :  { %3011 = vmatpush3.bf16.msra.mxu0 %v3117_v47  ;;  %3032 = vmatprep.subr.bf16.mxu1 %v3116_v50 }
 0x172   :  { %3012 = vmatprep.subr.bf16.mxu0 %v3119_v49 }
 0x174   :  { %3033 = vmatpush3.bf16.msra.mxu1 %v3118_v52 }
 0x175   :  { %3013 = vmatpush3.bf16.msra.mxu0 %v3121_v51  ;;  %3034 = vmatprep.subr.bf16.mxu1 %v3120_v54 }
 0x176   :  { %3014 = vmatprep.subr.bf16.mxu0 %v3123_v53 }
 0x178   :  { %3035 = vmatpush3.bf16.msra.mxu1 %v3122_v56 }
 0x179   :  { %3015 = vmatpush3.bf16.msra.mxu0 %v3125_v55  ;;  %3036 = vmatprep.subr.bf16.mxu1 %v3124_v59 }
 0x17a   :  { %3016 = vmatprep.subr.bf16.mxu0 %v3127_v58 }
 0x17c   :  { %3037 = vmatpush3.bf16.msra.mxu1 %v3126_v61 }
 0x17d   :  { %3017 = vmatpush3.bf16.msra.mxu0 %v3129_v60  ;;  %3038 = vmatprep.subr.bf16.mxu1 %v3128_v0 }
 0x17e   :  { %3018 = vmatprep.subr.bf16.mxu0 %v3131_v63 }
 0x180   :  { %3039 = vmatpush3.bf16.msra.mxu1 %v3130_v2 }
 0x181   :  { %3019 = vmatpush3.bf16.msra.mxu0 %v3133_v1  ;;  %3040 = vmatprep.subr.bf16.mxu1 %v3132_v4 }
 0x182   :  { %3020 = vmatprep.subr.bf16.mxu0 %v3135_v3 }
 0x184   :  { %3041 = vmatpush3.bf16.msra.mxu1 %v3134_v6 }
 0x185   :  { %3021 = vmatpush3.bf16.msra.mxu0 %v3137_v5  ;;  %3042 = vmatprep.subr.bf16.mxu1 %v3136_v8 }
 0x188   :  { %3043 = vmatpush3.bf16.msra.mxu1 %v3138_v10 }
 0x1c0   :  { %v1707_v12 = vpop.f32.mrb[4].mxu0 }
 0x1c1   :  { %v3054_v20 = vadd.f32 %v1707_v12, %v283_v16  ;;  %v1789_v21 = vpop.f32.mrb[4].mxu1  ;;  %v1709_v57 = vpop.f32.mrb[5].mxu0 }
 0x1c2   :  { %v3056_v22 = vadd.f32 %v1789_v21, %v291_v17  ;;  %v3055_v23 = vadd.f32 %v1709_v57, %v287_v18  ;;  %v1791_v25 = vpop.f32.mrb[5].mxu1  ;;  %v1711_v26 = vpop.f32.mrb[6].mxu0 }
 0x1c3   :  { %v1800_v24 = vmax.f32 %v3054_v20, 0.0  ;;  %v3057_v27 = vadd.f32 %v1791_v25, %v295_v19  ;;  %v1793_v28 = vpop.f32.mrb[6].mxu1  ;;  %v1712_v7 = vpop.f32.mrb[7].mxu0 }
 0x1c4   :  { %v1802_v29 = vmax.f32 %v3056_v22, 0.0  ;;  %v1801_v30 = vmax.f32 %v3055_v23, 0.0  ;;  %v1794_v31 = vpop.f32.mrb[7].mxu1 }
 0x1c5   :  { %v1833_v32 = vsel %vm1804_vm1, %v1800_v24, 0.0  ;;  %v1873_v33 = vrot.slane %v1800_v24, 4  ;;  %v1803_v34 = vmax.f32 %v3057_v27, 0.0 }
 0x1c6   :  { %v1834_v9 = vrot.slane %v1833_v32, 4  ;;  %v1847_v35 = vsel %vm1804_vm1, %v1802_v29, 0.0  ;;  %v1875_v36 = vrot.slane %v1802_v29, 4  ;;  %v1840_v37 = vsel %vm1804_vm1, %v1801_v30, 0.0 }
 0x1c7   :  { %v1913_v38 = vsel %vm1804_vm1, %v1873_v33, 0.0  ;;  %v1848_v39 = vrot.slane %v1847_v35, 4  ;;  %v1841_v40 = vrot.slane %v1840_v37, 4  ;;  %v1874_v41 = vrot.slane %v1801_v30, 4 }
 0x1c8   :  { %v1835_v42 = vadd.f32 %v1834_v9, %v1833_v32  ;;  %v1914_v43 = vrot.slane %v1913_v38, 4  ;;  %v1927_v62 = vsel %vm1804_vm1, %v1875_v36, 0.0  ;;  %v1854_v44 = vsel %vm1804_vm1, %v1803_v34, 0.0 }
 0x1c9   :  { %v1849_v45 = vadd.f32 %v1848_v39, %v1847_v35  ;;  %v1928_v46 = vrot.slane %v1927_v62, 4  ;;  %v1842_v47 = vadd.f32 %v1841_v40, %v1840_v37  ;;  %v1920_v48 = vsel %vm1804_vm1, %v1874_v41, 0.0 }
 0x1ca   :  { %v1836_v49 = vrot.slane %v1835_v42, 2  ;;  %v1915_v50 = vadd.f32 %v1914_v43, %v1913_v38  ;;  %v1921_v51 = vrot.slane %v1920_v48, 4  ;;  %v1855_v52 = vrot.slane %v1854_v44, 4 }
 0x1cb   :  { %v1850_v53 = vrot.slane %v1849_v45, 2  ;;  %v1929_v54 = vadd.f32 %v1928_v46, %v1927_v62  ;;  %v1843_v55 = vrot.slane %v1842_v47, 2  ;;  %v1876_v56 = vrot.slane %v1803_v34, 4 }
 0x1cc   :  { %v1837_v58 = vadd.f32 %v1836_v49, %v1835_v42  ;;  %v1916_v59 = vrot.slane %v1915_v50, 2  ;;  %v1922_v60 = vadd.f32 %v1921_v51, %v1920_v48  ;;  %v1856_v61 = vadd.f32 %v1855_v52, %v1854_v44  ;;  %v2897_v42 = vld [vmem:[%s4188_s4] ss:$0 sm:$0xff]  ;;  %s2653_s4 = sshll.u32 %s3163_s24, 4  ;;  %s2654_s4 = int_to_ptr.vmem [resolvable:$true] %s2653_s4 }
 0x1cd   :  { %v1851_v63 = vadd.f32 %v1850_v53, %v1849_v45  ;;  %v1930_v0 = vrot.slane %v1929_v54, 2  ;;  %v1844_v1 = vadd.f32 %v1843_v55, %v1842_v47  ;;  %v1934_v2 = vsel %vm1804_vm1, %v1876_v56, 0.0  ;;  %s3139_s25 = scalar_lea.vmem %s2654_s4, 32  ;;  %p3144_p1 = scmp.lt.s32.totalorder %s2654_s4, %s2654_s4 }
 0x1ce   :  { %v1838_v3 = vrot.slane %v1837_v58, 1  ;;  %v1917_v4 = vadd.f32 %v1916_v59, %v1915_v50  ;;  %v1923_v5 = vrot.slane %v1922_v60, 2  ;;  %v1857_v6 = vrot.slane %v1856_v61, 2  ;;  %p3140_p0 = scmp.ne.s32.totalorder %s2654_s4, %s3139_s25  ;;  %p3145_p2 = scmp.lt.s32.totalorder %s3139_s25, %s3139_s25 }
 0x1cf   :  { %v1931_v8 = vadd.f32 %v1930_v0, %v1929_v54  ;;  %v1935_v10 = vrot.slane %v1934_v2, 4  ;;  %v1845_v13 = vrot.slane %v1844_v1, 1  ;;  %v1852_v12 = vrot.slane %v1851_v63, 1 }
 0x1d0   :  { %v1918_v11 = vrot.slane %v1917_v4, 1  ;;  %v1924_v14 = vadd.f32 %v1923_v5, %v1922_v60  ;;  %v1858_v16 = vadd.f32 %v1857_v6, %v1856_v61  ;;  %v1839_v18 = vadd.f32 %v1838_v3, %v1837_v58  ;;  %p3146_p3 = por %p3145_p2, %p3144_p1 }
 0x1d1   :  { %v1932_v15 = vrot.slane %v1931_v8, 1  ;;  %v1936_v17 = vadd.f32 %v1935_v10, %v1934_v2  ;;  %v1846_v22 = vadd.f32 %v1845_v13, %v1844_v1  ;;  %v1853_v27 = vadd.f32 %v1852_v12, %v1851_v63 }
 0x1d2   :  { %v1919_v19 = vadd.f32 %v1918_v11, %v1917_v4  ;;  %v1925_v20 = vrot.slane %v1924_v14, 1  ;;  %v1859_v26 = vrot.slane %v1858_v16, 1  ;;  %p3147_p4 = pnand %p3146_p3, %p3140_p0 }
 0x1d3   :  { %v1937_v21 = vrot.slane %v1936_v17, 2  ;;  %v1933_v57 = vadd.f32 %v1932_v15, %v1931_v8 }
 0x1d4   :  { %v1926_v23 = vadd.f32 %v1925_v20, %v1924_v14  ;;  %v1946_v25 = vsel %vm1941_vm2, %v1839_v18, %v1919_v19  ;;  %v1860_v32 = vadd.f32 %v1859_v26, %v1858_v16 }
 0x1d5   :  { %v1938_v24 = vadd.f32 %v1937_v21, %v1936_v17  ;;  %v1954_v7 = vmul.f32 0.25, %v1946_v25  ;;  %v1948_v31 = vsel %vm1941_vm2, %v1853_v27, %v1933_v57 }
 0x1d6   :  { %v1947_v28 = vsel %vm1941_vm2, %v1846_v22, %v1926_v23  ;;  %v1956_v36 = vmul.f32 0.25, %v1948_v31 }
 0x1d7   :  { %v1939_v29 = vrot.slane %v1938_v24, 1  ;;  %v1955_v30 = vmul.f32 0.25, %v1947_v28  ;;  %v1962_v9 = vpack.c.bf16 %v1954_v7, %v1954_v7 }
 0x1d8   :  { %v1964_v39 = vpack.c.bf16 %v1956_v36, %v1956_v36 }
 0x1d9   :  { %v1963_v33 = vpack.c.bf16 %v1955_v30, %v1955_v30  ;;  %v1940_v34 = vadd.f32 %v1939_v29, %v1938_v24 }
 0x1db   :  { %2597 = vmatprep.mubr.bf16.mxu0 %v1963_v33  ;;  %v1949_v35 = vsel %vm1941_vm2, %v1860_v32, %v1940_v34 }
 0x1dc   :  { %v1957_v37 = vmul.f32 0.25, %v1949_v35  ;;  %2598 = vmatmul.mubr.bf16.vlgmr.msra.gmra.mrb[12].mxu0 %v1962_v9 }
 0x1de   :  { %v1965_v38 = vpack.c.bf16 %v1957_v37, %v1957_v37 }
 0x1e0   :  { %2637 = vmatprep.mubr.bf16.mxu1 %v1965_v38 }
 0x1e1   :  { %2638 = vmatmul.mubr.bf16.vlgmr.msra.gmra.mrb[12].mxu1 %v1964_v39 }
 0x23b   :  { %v2978_v40 = vpop.f32.mrb[8].mxu0 }
 0x23c   :  { %v2979_v41 = vpop.f32.mrb[9].mxu0 }
 0x23d   :  { %v2980_v43 = vadd.f32 %v2979_v41, %v2978_v40  ;;  %v2981_v62 = vpop.f32.mrb[10].mxu0 }
 0x23e   :  { %v2982_v44 = vpop.f32.mrb[11].mxu0  ;;  %v3000_v45 = vpop.f32.mrb[8].mxu1 }
 0x23f   :  { %v2520_v46 = vadd.f32 %v2980_v43, %v2897_v42  ;;  %v3001_v47 = vpop.f32.mrb[9].mxu1 }
 0x240   :  { %v3002_v48 = vadd.f32 %v3001_v47, %v3000_v45  ;;  %v3003_v49 = vpop.f32.mrb[10].mxu1 }
 0x241   :  { %v3004_v50 = vpop.f32.mrb[11].mxu1 }
 0x242   :  { %v2560_v51 = vadd.f32 %v3002_v48, %v2520_v46 }
 0x2af   :  { %v3022_v52 = vpop.f32.mrb[12].mxu0 }
 0x2b0   :  { %v3023_v53 = vpop.f32.mrb[13].mxu0 }
 0x2b1   :  { %v3024_v54 = vadd.f32 %v3023_v53, %v3022_v52  ;;  %v3025_v55 = vpop.f32.mrb[14].mxu0 }
 0x2b2   :  { %v3026_v56 = vpop.f32.mrb[15].mxu0 }
 0x2b3   :  { %v2600_v58 = vadd.f32 %v3024_v54, %v2560_v51 }
 0x2b4   :  { %v3044_v59 = vpop.f32.mrb[12].mxu1 }
 0x2b5   :  { %v3045_v60 = vpop.f32.mrb[13].mxu1 }
 0x2b6   :  { %v3046_v61 = vadd.f32 %v3045_v60, %v3044_v59  ;;  %v3047_v63 = vpop.f32.mrb[14].mxu1 }
 0x2b7   :  { %v3048_v0 = vpop.f32.mrb[15].mxu1 }
 0x2b8   :  { %v2640_v1 = vadd.f32 %v3046_v61, %v2600_v58 }
 0x2ba   :  { %2646 = vst.msk [vmem:[#allocation2] sm:$0x3] %vm2645_vm3, %v2640_v1 }
 0x2bb   :  { %3150 = shalt.err (!%p3147_p4)
}
 0x2bc   :  { %s3151_s28 = scalar_lea.hbm %s4189_s5, 32 }
 0x2bd   :  { %p3152_p5 = scmp.ne.s32.totalorder %s4189_s5, %s3151_s28  ;;  %p3155_p6 = scmp.lt.u32.totalorder %s3151_s28, %s4189_s5 }
 0x2bf   :  { %p3157_p7 = pnand %p3155_p6, %p3152_p5 }
 0x2c1   :  { %3160 = shalt.err (!%p3157_p7)
}
 0x2c2   :  { %2656 = dma.vmem_to_hbm [thread:$0]  %s2654_s4, 32, %s4189_s5, [#allocation3]  }
 0x2c3   :  { %3161 = dma.done.wait [#allocation3], 32  }
 0x2c4   :  { %3162 = vsyncadd [#allocation3], 4294967264 }
 0x2c5   :  { %2660 = vsyncpa [#allocation3], 1 }

</bundles_post_ra>
